<compile_context>
chip_gen: v6e
topology: v6e:2x2x1
jax: 0.10.0
libtpu: 0.0.40
codegen_flags: <defaults>
</compile_context>

<pallas_src>
import functools

import jax
import jax.numpy as jnp
from jax.experimental import pallas as pl
from jax.experimental.pallas import tpu as pltpu

F32 = jnp.float32
BF16 = jnp.bfloat16


def _mm(a, b):
    # MXU matmul: bf16 operands, f32 accumulation.
    return jnp.dot(a.astype(BF16), b.astype(BF16), preferred_element_type=jnp.float32)


# ----------------------------------------------------------------------------
# fused kernel: whole MPNNEncoder forward in one pallas_call
# ----------------------------------------------------------------------------
def _mpnn_fused_kernel(dim, n_layers, s2s_steps,
                       x_ref, ea_ref, gsrc_ref, adjt_ref, invdeg_ref, pmat_ref,
                       rep_ref, fold_ref,
                       lin0_w_ref, lin0_b_ref,
                       mlp_w1_ref, mlp_b1_ref, mlp_w2_ref, mlp_b2_ref, conv_b_ref,
                       gru_wih_ref, gru_whh_ref, gru_bih_ref, gru_bhh_ref,
                       lstm_wq_ref, lstm_wr_ref, lstm_whh_ref, lstm_b_ref,
                       o_ref, wed_ref):
    N = x_ref.shape[0]
    G = pmat_ref.shape[0]

    # ---- lin0 + ReLU ; h = out ---------------------------------------------
    out = jnp.maximum(_mm(x_ref[...], lin0_w_ref[...]) + lin0_b_ref[...], 0.0)
    h = out

    # ---- edge MLP (loop-invariant, hoisted; staged in VMEM scratch) --------
    h1 = jnp.maximum(_mm(ea_ref[...], mlp_w1_ref[...]) + mlp_b1_ref[...], 0.0)
    wed_ref[...] = _mm(h1, mlp_w2_ref[...]) + mlp_b2_ref[...]    # (E, dim*dim) f32

    gsrc = gsrc_ref[...]        # (E, N)  bf16 one-hot gather of x[src]
    adjt = adjt_ref[...]        # (N, E)  bf16 0/1 dst-adjacency (sum aggregation)
    inv_deg = invdeg_ref[...]   # (N, 1)  f32 1/deg, applied post-sum -> exact mean

    # ---- biases / weights broadcast once (outside the loops) ---------------
    conv_b = jnp.broadcast_to(conv_b_ref[...], (N, dim))
    gru_wih = gru_wih_ref[...]                                   # (dim, 3*dim) [r|z|n]
    gru_whh = gru_whh_ref[...]                                   # (dim, 3*dim)
    b_rz = jnp.broadcast_to(gru_bih_ref[...][:, :2 * dim] +
                            gru_bhh_ref[...][:, :2 * dim], (N, 2 * dim))
    b_in = jnp.broadcast_to(gru_bih_ref[...][:, 2 * dim:], (N, dim))
    b_hn = jnp.broadcast_to(gru_bhh_ref[...][:, 2 * dim:], (N, dim))

    # ---- 3 x [ NNConv(mean, root_weight=False) + ReLU -> GRU step ] --------
    for _ in range(n_layers):
        # gather source node features x_j = x[edge_index[0]]  (bf16 MXU)
        x_src = _mm(gsrc, out)                                   # (E, dim)
        # per-edge matvec msg[e,k] = sum_d x_src[e,d] * W_e[d,k] via MXU
        # expand -> lane-dense elementwise multiply -> fold (no slice-FMA chain)
        prod = _mm(x_src, rep_ref[...]) * wed_ref[...]           # (E, dim*dim) f32
        msg = _mm(prod, fold_ref[...])                           # (E, dim)
        # sum over incoming edges (bf16 0/1 matmul), exact f32 mean scale
        agg = _mm(adjt, msg) * inv_deg                           # (N, dim)
        m = jnp.maximum(agg + conv_b, 0.0)

        # single-step GRU cell, gate weights packed along lanes [r | z | n]
        pre_i = _mm(m, gru_wih)                                  # (N, 3*dim)
        pre_h = _mm(h, gru_whh)                                  # (N, 3*dim)
        rz = jax.nn.sigmoid(pre_i[:, :2 * dim] + pre_h[:, :2 * dim] + b_rz)
        r = rz[:, :dim]
        z = rz[:, dim:]
        n = jnp.tanh(pre_i[:, 2 * dim:] + b_in + r * (pre_h[:, 2 * dim:] + b_hn))
        h = (1.0 - z) * n + z * h
        out = h

    # ---- Set2Set(dim, processing_steps=3) -----------------------------------
    pm = pmat_ref[...]                                   # (G, N) graph membership
    mask = pm > 0.0
    neg = jnp.float32(jnp.finfo(jnp.float32).min * 0.5)  # overflow-safe mask constant

    out16 = out.astype(BF16)                             # hoisted readout operand
    out_t16 = out.T.astype(BF16)                         # hoisted: one transpose total

    lstm_wq = lstm_wq_ref[...]                           # (dim, 4*dim)  [i|f|o|g]
    lstm_wr = lstm_wr_ref[...]                           # (dim, 4*dim)
    lstm_whh = lstm_whh_ref[...]                         # (dim, 4*dim)
    b_all = jnp.broadcast_to(lstm_b_ref[...], (G, 4 * dim))   # b_ih + b_hh

    q = jnp.zeros((G, dim), F32)
    r_read = jnp.zeros((G, dim), F32)
    hh = jnp.zeros((G, dim), F32)
    cc = jnp.zeros((G, dim), F32)
    for _ in range(s2s_steps):
        # LSTM cell on q_star = [q | r_read]; input weights split -> no concat
        pre = (_mm(q, lstm_wq) + _mm(r_read, lstm_wr) +
               _mm(hh, lstm_whh) + b_all)                        # (G, 4*dim)
        sig = jax.nn.sigmoid(pre[:, :3 * dim])                   # packed [i|f|o]
        g_g = jnp.tanh(pre[:, 3 * dim:])                         # g gate
        i_g = sig[:, :dim]
        f_g = sig[:, dim:2 * dim]
        o_g = sig[:, 2 * dim:]
        cc = f_g * cc + i_g * g_g
        hh = o_g * jnp.tanh(cc)
        q = hh                                                   # (G, dim)

        # per-graph attention readout (masked softmax over each graph's nodes)
        s = _mm(q, out_t16)                                      # (G, N)
        s_m = jnp.where(mask, s, neg)
        mx = jnp.max(s_m, axis=1, keepdims=True)                 # (G, 1)
        ex = jnp.where(mask, jnp.exp(s_m - mx), 0.0)             # no inf path
        denom = jnp.maximum(jnp.sum(ex, axis=1, keepdims=True), jnp.float32(1e-30))
        a = ex / denom
        r_read = _mm(a, out16)                                   # (G, dim)

    o_ref[...] = jnp.concatenate([q, r_read], axis=-1)           # (G, 2*dim)


# ----------------------------------------------------------------------------
# wrapper: single pallas_call, everything VMEM-resident
# ----------------------------------------------------------------------------
def mpnn_encoder_forward(params, x, edge_attr_pad, gsrc, adjt, inv_deg, pmat, dim,
                         n_layers=3, s2s_steps=3):
    G = pmat.shape[0]
    E = edge_attr_pad.shape[0]

    # fixed 0/1 MXU operators for the expand / multiply / fold message matvec
    eye = jnp.eye(dim, dtype=F32)
    rep_op = jnp.repeat(eye, dim, axis=1).astype(BF16)    # (dim, dim*dim): R[d, d*dim+k]=1
    fold_op = jnp.tile(eye, (dim, 1)).astype(BF16)        # (dim*dim, dim): F[d*dim+k, k]=1

    kernel = functools.partial(_mpnn_fused_kernel, dim, n_layers, s2s_steps)
    args = (x, edge_attr_pad, gsrc, adjt, inv_deg, pmat, rep_op, fold_op,
            params["lin0_w"], params["lin0_b"],
            params["mlp_w1"], params["mlp_b1"], params["mlp_w2"], params["mlp_b2"],
            params["conv_b"],
            params["gru_wih"], params["gru_whh"], params["gru_bih"], params["gru_bhh"],
            params["lstm_wq"], params["lstm_wr"], params["lstm_whh"], params["lstm_b"])
    # TODO(synk): add a "parallel" graph-batch grid axis (dimension_semantics)
    # for v7x's 2 TensorCores once the workload has a non-trivial batch.
    return pl.pallas_call(
        kernel,
        out_shape=jax.ShapeDtypeStruct((G, 2 * dim), F32),
        in_specs=[pl.BlockSpec(memory_space=pltpu.MemorySpace.VMEM) for _ in args],
        out_specs=pl.BlockSpec(memory_space=pltpu.MemorySpace.VMEM),
        scratch_shapes=[pltpu.VMEM((E, dim * dim), F32)],   # staged edge weights
    )(*args)


# ----------------------------------------------------------------------------
# main: deterministic synthetic graph + parameters
# ----------------------------------------------------------------------------
if __name__ == "__main__":
    num_features = 16
    dim = 32
    nodes_per_graph = 8
    G = 2
    N = nodes_per_graph * G

    key = jax.random.PRNGKey(0)
    ks = jax.random.split(key, 17)

    # two disjoint bidirectional chain graphs (8 nodes each)
    src_list, dst_list = [], []
    for g in range(G):
        base = g * nodes_per_graph
        for i in range(nodes_per_graph - 1):
            src_list += [base + i, base + i + 1]
            dst_list += [base + i + 1, base + i]
    src = jnp.array(src_list, dtype=jnp.int32)
    dst = jnp.array(dst_list, dtype=jnp.int32)
    E = int(src.shape[0])
    E_pad = ((E + 7) // 8) * 8           # pad edge rows to a sublane multiple
    batch = jnp.repeat(jnp.arange(G, dtype=jnp.int32), nodes_per_graph)

    x = jax.random.normal(ks[0], (N, num_features), F32)
    edge_attr = jax.random.normal(ks[1], (E, 5), F32)
    edge_attr_pad = jnp.pad(edge_attr, ((0, E_pad - E), (0, 3)))   # (E_pad, 8)

    # dense graph operators (index setup = glue); 0/1 operators are exact in bf16.
    # Padded edge rows/cols are zero, so they never contribute to messages.
    gsrc = jnp.pad(jax.nn.one_hot(src, N, dtype=F32),
                   ((0, E_pad - E), (0, 0))).astype(BF16)           # (E_pad, N)
    adjt = jnp.pad(jax.nn.one_hot(dst, N, dtype=F32).T,
                   ((0, 0), (0, E_pad - E))).astype(BF16)           # (N, E_pad)
    deg = jnp.zeros((N,), F32).at[dst].add(1.0)
    inv_deg = (1.0 / jnp.maximum(deg, 1.0))[:, None]                # (N, 1) f32
    pmat = jax.nn.one_hot(batch, G, dtype=F32).T                    # (G, N)

    s = 0.1
    params = dict(
        # weights stored (in, out); matmul weights cast to bf16 once here
        lin0_w=(s * jax.random.normal(ks[2], (num_features, dim), F32)).astype(BF16),
        lin0_b=s * jax.random.normal(ks[3], (1, dim), F32),
        # Linear(5, 128): weight rows 5..7 zero-padded to match padded edge_attr
        mlp_w1=jnp.pad(s * jax.random.normal(ks[4], (5, 128), F32),
                       ((0, 3), (0, 0))).astype(BF16),
        mlp_b1=s * jax.random.normal(ks[5], (1, 128), F32),
        mlp_w2=(s * jax.random.normal(ks[6], (128, dim * dim), F32)).astype(BF16),
        mlp_b2=s * jax.random.normal(ks[7], (1, dim * dim), F32),
        conv_b=s * jax.random.normal(ks[8], (1, dim), F32),          # NNConv bias
        # GRU: gates packed along the output lane axis, order [r | z | n]
        gru_wih=(s * jax.random.normal(ks[9], (dim, 3 * dim), F32)).astype(BF16),
        gru_whh=(s * jax.random.normal(ks[10], (dim, 3 * dim), F32)).astype(BF16),
        gru_bih=s * jax.random.normal(ks[11], (1, 3 * dim), F32),
        gru_bhh=s * jax.random.normal(ks[12], (1, 3 * dim), F32),
        # Set2Set LSTM: gates packed along lanes, order [i | f | o | g];
        # input weights split into q-half / r-half of q_star = [q | r]
        lstm_wq=(s * jax.random.normal(ks[13], (dim, 4 * dim), F32)).astype(BF16),
        lstm_wr=(s * jax.random.normal(ks[14], (dim, 4 * dim), F32)).astype(BF16),
        lstm_whh=(s * jax.random.normal(ks[15], (dim, 4 * dim), F32)).astype(BF16),
        lstm_b=s * jax.random.normal(ks[16], (1, 4 * dim), F32),     # b_ih + b_hh
    )

    fwd = jax.jit(functools.partial(mpnn_encoder_forward, dim=dim))
    out = fwd(params, x, edge_attr_pad, gsrc, adjt, inv_deg, pmat)
    out = jax.block_until_ready(out)
    assert out.shape == (G, 2 * dim), out.shape
    assert bool(jnp.all(jnp.isfinite(out)))
    print("KERNEL_OK")
</pallas_src>

<mosaic_0001>
module attributes {stable_mosaic.version = 11 : i64} {
  func.func @_mpnn_fused_kernel(%arg0: memref<16x16xf32, #tpu.memory_space<vmem>>, %arg1: memref<32x8xf32, #tpu.memory_space<vmem>>, %arg2: memref<32x16xbf16, #tpu.memory_space<vmem>>, %arg3: memref<16x32xbf16, #tpu.memory_space<vmem>>, %arg4: memref<16x1xf32, #tpu.memory_space<vmem>>, %arg5: memref<2x16xf32, #tpu.memory_space<vmem>>, %arg6: memref<32x1024xbf16, #tpu.memory_space<vmem>>, %arg7: memref<1024x32xbf16, #tpu.memory_space<vmem>>, %arg8: memref<16x32xbf16, #tpu.memory_space<vmem>>, %arg9: memref<1x32xf32, #tpu.memory_space<vmem>>, %arg10: memref<8x128xbf16, #tpu.memory_space<vmem>>, %arg11: memref<1x128xf32, #tpu.memory_space<vmem>>, %arg12: memref<128x1024xbf16, #tpu.memory_space<vmem>>, %arg13: memref<1x1024xf32, #tpu.memory_space<vmem>>, %arg14: memref<1x32xf32, #tpu.memory_space<vmem>>, %arg15: memref<32x96xbf16, #tpu.memory_space<vmem>>, %arg16: memref<32x96xbf16, #tpu.memory_space<vmem>>, %arg17: memref<1x96xf32, #tpu.memory_space<vmem>>, %arg18: memref<1x96xf32, #tpu.memory_space<vmem>>, %arg19: memref<32x128xbf16, #tpu.memory_space<vmem>>, %arg20: memref<32x128xbf16, #tpu.memory_space<vmem>>, %arg21: memref<32x128xbf16, #tpu.memory_space<vmem>>, %arg22: memref<1x128xf32, #tpu.memory_space<vmem>>, %arg23: memref<2x64xf32, #tpu.memory_space<vmem>>, %arg24: memref<32x1024xf32, #tpu.memory_space<vmem>>) attributes {dimension_semantics = [], scalar_prefetch = 0 : i64, scratch_operands = 1 : i64, tpu.core_type = #tpu.core_type<tc>} {
    %c0 = arith.constant 0 : index
    %c0_0 = arith.constant 0 : index
    %0 = vector.load %arg0[%c0, %c0_0] : memref<16x16xf32, #tpu.memory_space<vmem>>, vector<16x16xf32>
    %c0_1 = arith.constant 0 : index
    %c0_2 = arith.constant 0 : index
    %1 = vector.load %arg8[%c0_1, %c0_2] : memref<16x32xbf16, #tpu.memory_space<vmem>>, vector<16x32xbf16>
    %2 = arith.truncf %0 : vector<16x16xf32> to vector<16x16xbf16>
    %cst = arith.constant dense<0.000000e+00> : vector<16x32xf32>
    %3 = tpu.matmul %2, %1, %cst {dimension_numbers = #tpu.dot_dimension_numbers<[1], [0], [0], [1], [0, 0, 1, 1], [], []>} : vector<16x16xbf16>, vector<16x32xbf16>, vector<16x32xf32> -> vector<16x32xf32>
    %c0_3 = arith.constant 0 : index
    %c0_4 = arith.constant 0 : index
    %4 = vector.load %arg9[%c0_3, %c0_4] : memref<1x32xf32, #tpu.memory_space<vmem>>, vector<1x32xf32>
    %5 = vector.broadcast %4 : vector<1x32xf32> to vector<16x32xf32>
    %6 = arith.addf %3, %5 : vector<16x32xf32>
    %cst_5 = arith.constant 0.000000e+00 : f32
    %7 = vector.broadcast %cst_5 : f32 to vector<16x32xf32>
    %8 = arith.maximumf %6, %7 : vector<16x32xf32>
    %c0_6 = arith.constant 0 : index
    %c0_7 = arith.constant 0 : index
    %9 = vector.load %arg1[%c0_6, %c0_7] : memref<32x8xf32, #tpu.memory_space<vmem>>, vector<32x8xf32>
    %c0_8 = arith.constant 0 : index
    %c0_9 = arith.constant 0 : index
    %10 = vector.load %arg10[%c0_8, %c0_9] : memref<8x128xbf16, #tpu.memory_space<vmem>>, vector<8x128xbf16>
    %11 = arith.truncf %9 : vector<32x8xf32> to vector<32x8xbf16>
    %cst_10 = arith.constant dense<0.000000e+00> : vector<32x128xf32>
    %12 = tpu.matmul %11, %10, %cst_10 {dimension_numbers = #tpu.dot_dimension_numbers<[1], [0], [0], [1], [0, 0, 1, 1], [], []>} : vector<32x8xbf16>, vector<8x128xbf16>, vector<32x128xf32> -> vector<32x128xf32>
    %c0_11 = arith.constant 0 : index
    %c0_12 = arith.constant 0 : index
    %13 = vector.load %arg11[%c0_11, %c0_12] : memref<1x128xf32, #tpu.memory_space<vmem>>, vector<1x128xf32>
    %14 = vector.broadcast %13 : vector<1x128xf32> to vector<32x128xf32>
    %15 = arith.addf %12, %14 : vector<32x128xf32>
    %cst_13 = arith.constant 0.000000e+00 : f32
    %16 = vector.broadcast %cst_13 : f32 to vector<32x128xf32>
    %17 = arith.maximumf %15, %16 : vector<32x128xf32>
    %c0_14 = arith.constant 0 : index
    %c0_15 = arith.constant 0 : index
    %18 = vector.load %arg12[%c0_14, %c0_15] : memref<128x1024xbf16, #tpu.memory_space<vmem>>, vector<128x1024xbf16>
    %19 = arith.truncf %17 : vector<32x128xf32> to vector<32x128xbf16>
    %cst_16 = arith.constant dense<0.000000e+00> : vector<32x1024xf32>
    %20 = tpu.matmul %19, %18, %cst_16 {dimension_numbers = #tpu.dot_dimension_numbers<[1], [0], [0], [1], [0, 0, 1, 1], [], []>} : vector<32x128xbf16>, vector<128x1024xbf16>, vector<32x1024xf32> -> vector<32x1024xf32>
    %c0_17 = arith.constant 0 : index
    %c0_18 = arith.constant 0 : index
    %21 = vector.load %arg13[%c0_17, %c0_18] : memref<1x1024xf32, #tpu.memory_space<vmem>>, vector<1x1024xf32>
    %22 = vector.broadcast %21 : vector<1x1024xf32> to vector<32x1024xf32>
    %23 = arith.addf %20, %22 : vector<32x1024xf32>
    %c0_19 = arith.constant 0 : index
    %c0_20 = arith.constant 0 : index
    %24 = vector.load %arg24[%c0_19, %c0_20] : memref<32x1024xf32, #tpu.memory_space<vmem>>, vector<32x1024xf32>
    tpu.vector_store %arg24[%c0_19, %c0_20], %23 {strides = array<i32>} : memref<32x1024xf32, #tpu.memory_space<vmem>>, vector<32x1024xf32>,
    %c0_21 = arith.constant 0 : index
    %c0_22 = arith.constant 0 : index
    %25 = vector.load %arg2[%c0_21, %c0_22] : memref<32x16xbf16, #tpu.memory_space<vmem>>, vector<32x16xbf16>
    %c0_23 = arith.constant 0 : index
    %c0_24 = arith.constant 0 : index
    %26 = vector.load %arg3[%c0_23, %c0_24] : memref<16x32xbf16, #tpu.memory_space<vmem>>, vector<16x32xbf16>
    %c0_25 = arith.constant 0 : index
    %c0_26 = arith.constant 0 : index
    %27 = vector.load %arg4[%c0_25, %c0_26] : memref<16x1xf32, #tpu.memory_space<vmem>>, vector<16x1xf32>
    %c0_27 = arith.constant 0 : index
    %c0_28 = arith.constant 0 : index
    %28 = vector.load %arg14[%c0_27, %c0_28] : memref<1x32xf32, #tpu.memory_space<vmem>>, vector<1x32xf32>
    %29 = vector.shape_cast %28 : vector<1x32xf32> to vector<1x32xf32>
    %30 = vector.broadcast %29 : vector<1x32xf32> to vector<16x32xf32>
    %c0_29 = arith.constant 0 : index
    %c0_30 = arith.constant 0 : index
    %31 = vector.load %arg15[%c0_29, %c0_30] : memref<32x96xbf16, #tpu.memory_space<vmem>>, vector<32x96xbf16>
    %c0_31 = arith.constant 0 : index
    %c0_32 = arith.constant 0 : index
    %32 = vector.load %arg16[%c0_31, %c0_32] : memref<32x96xbf16, #tpu.memory_space<vmem>>, vector<32x96xbf16>
    %c0_33 = arith.constant 0 : index
    %c0_34 = arith.constant 0 : index
    %33 = vector.load %arg17[%c0_33, %c0_34] : memref<1x96xf32, #tpu.memory_space<vmem>>, vector<1x96xf32>
    %34 = vector.extract_strided_slice %33 {offsets = [0, 0], sizes = [1, 64], strides = [1, 1]} : vector<1x96xf32> to vector<1x64xf32>
    %c0_35 = arith.constant 0 : index
    %c0_36 = arith.constant 0 : index
    %35 = vector.load %arg18[%c0_35, %c0_36] : memref<1x96xf32, #tpu.memory_space<vmem>>, vector<1x96xf32>
    %36 = vector.extract_strided_slice %35 {offsets = [0, 0], sizes = [1, 64], strides = [1, 1]} : vector<1x96xf32> to vector<1x64xf32>
    %37 = arith.addf %34, %36 : vector<1x64xf32>
    %38 = vector.shape_cast %37 : vector<1x64xf32> to vector<1x64xf32>
    %39 = vector.broadcast %38 : vector<1x64xf32> to vector<16x64xf32>
    %c0_37 = arith.constant 0 : index
    %c0_38 = arith.constant 0 : index
    %40 = vector.load %arg17[%c0_37, %c0_38] : memref<1x96xf32, #tpu.memory_space<vmem>>, vector<1x96xf32>
    %41 = vector.extract_strided_slice %40 {offsets = [0, 64], sizes = [1, 32], strides = [1, 1]} : vector<1x96xf32> to vector<1x32xf32>
    %42 = vector.shape_cast %41 : vector<1x32xf32> to vector<1x32xf32>
    %43 = vector.broadcast %42 : vector<1x32xf32> to vector<16x32xf32>
    %c0_39 = arith.constant 0 : index
    %c0_40 = arith.constant 0 : index
    %44 = vector.load %arg18[%c0_39, %c0_40] : memref<1x96xf32, #tpu.memory_space<vmem>>, vector<1x96xf32>
    %45 = vector.extract_strided_slice %44 {offsets = [0, 64], sizes = [1, 32], strides = [1, 1]} : vector<1x96xf32> to vector<1x32xf32>
    %46 = vector.shape_cast %45 : vector<1x32xf32> to vector<1x32xf32>
    %47 = vector.broadcast %46 : vector<1x32xf32> to vector<16x32xf32>
    %48 = arith.truncf %8 : vector<16x32xf32> to vector<16x32xbf16>
    %cst_41 = arith.constant dense<0.000000e+00> : vector<32x32xf32>
    %49 = tpu.matmul %25, %48, %cst_41 {dimension_numbers = #tpu.dot_dimension_numbers<[1], [0], [0], [1], [0, 0, 1, 1], [], []>} : vector<32x16xbf16>, vector<16x32xbf16>, vector<32x32xf32> -> vector<32x32xf32>
    %c0_42 = arith.constant 0 : index
    %c0_43 = arith.constant 0 : index
    %50 = vector.load %arg6[%c0_42, %c0_43] : memref<32x1024xbf16, #tpu.memory_space<vmem>>, vector<32x1024xbf16>
    %51 = arith.truncf %49 : vector<32x32xf32> to vector<32x32xbf16>
    %cst_44 = arith.constant dense<0.000000e+00> : vector<32x1024xf32>
    %52 = tpu.matmul %51, %50, %cst_44 {dimension_numbers = #tpu.dot_dimension_numbers<[1], [0], [0], [1], [0, 0, 1, 1], [], []>} : vector<32x32xbf16>, vector<32x1024xbf16>, vector<32x1024xf32> -> vector<32x1024xf32>
    %c0_45 = arith.constant 0 : index
    %c0_46 = arith.constant 0 : index
    %53 = vector.load %arg24[%c0_45, %c0_46] : memref<32x1024xf32, #tpu.memory_space<vmem>>, vector<32x1024xf32>
    %54 = arith.mulf %52, %53 : vector<32x1024xf32>
    %c0_47 = arith.constant 0 : index
    %c0_48 = arith.constant 0 : index
    %55 = vector.load %arg7[%c0_47, %c0_48] : memref<1024x32xbf16, #tpu.memory_space<vmem>>, vector<1024x32xbf16>
    %56 = arith.truncf %54 : vector<32x1024xf32> to vector<32x1024xbf16>
    %cst_49 = arith.constant dense<0.000000e+00> : vector<32x32xf32>
    %57 = tpu.matmul %56, %55, %cst_49 {dimension_numbers = #tpu.dot_dimension_numbers<[1], [0], [0], [1], [0, 0, 1, 1], [], []>} : vector<32x1024xbf16>, vector<1024x32xbf16>, vector<32x32xf32> -> vector<32x32xf32>
    %58 = arith.truncf %57 : vector<32x32xf32> to vector<32x32xbf16>
    %cst_50 = arith.constant dense<0.000000e+00> : vector<16x32xf32>
    %59 = tpu.matmul %26, %58, %cst_50 {dimension_numbers = #tpu.dot_dimension_numbers<[1], [0], [0], [1], [0, 0, 1, 1], [], []>} : vector<16x32xbf16>, vector<32x32xbf16>, vector<16x32xf32> -> vector<16x32xf32>
    %60 = vector.broadcast %27 : vector<16x1xf32> to vector<16x32xf32>
    %61 = arith.mulf %59, %60 : vector<16x32xf32>
    %62 = arith.addf %61, %30 : vector<16x32xf32>
    %cst_51 = arith.constant 0.000000e+00 : f32
    %63 = vector.broadcast %cst_51 : f32 to vector<16x32xf32>
    %64 = arith.maximumf %62, %63 : vector<16x32xf32>
    %65 = arith.truncf %64 : vector<16x32xf32> to vector<16x32xbf16>
    %cst_52 = arith.constant dense<0.000000e+00> : vector<16x96xf32>
    %66 = tpu.matmul %65, %31, %cst_52 {dimension_numbers = #tpu.dot_dimension_numbers<[1], [0], [0], [1], [0, 0, 1, 1], [], []>} : vector<16x32xbf16>, vector<32x96xbf16>, vector<16x96xf32> -> vector<16x96xf32>
    %67 = arith.truncf %8 : vector<16x32xf32> to vector<16x32xbf16>
    %cst_53 = arith.constant dense<0.000000e+00> : vector<16x96xf32>
    %68 = tpu.matmul %67, %32, %cst_53 {dimension_numbers = #tpu.dot_dimension_numbers<[1], [0], [0], [1], [0, 0, 1, 1], [], []>} : vector<16x32xbf16>, vector<32x96xbf16>, vector<16x96xf32> -> vector<16x96xf32>
    %69 = vector.extract_strided_slice %66 {offsets = [0, 0], sizes = [16, 64], strides = [1, 1]} : vector<16x96xf32> to vector<16x64xf32>
    %70 = vector.extract_strided_slice %68 {offsets = [0, 0], sizes = [16, 64], strides = [1, 1]} : vector<16x96xf32> to vector<16x64xf32>
    %71 = arith.addf %69, %70 : vector<16x64xf32>
    %72 = arith.addf %71, %39 : vector<16x64xf32>
    %73 = arith.negf %72 : vector<16x64xf32>
    %74 = math.exp %73 : vector<16x64xf32>
    %cst_54 = arith.constant 1.000000e+00 : f32
    %75 = vector.broadcast %cst_54 : f32 to vector<16x64xf32>
    %76 = arith.addf %75, %74 : vector<16x64xf32>
    %77 = arith.divf %75, %76 : vector<16x64xf32>
    %78 = vector.extract_strided_slice %77 {offsets = [0, 0], sizes = [16, 32], strides = [1, 1]} : vector<16x64xf32> to vector<16x32xf32>
    %79 = vector.extract_strided_slice %77 {offsets = [0, 32], sizes = [16, 32], strides = [1, 1]} : vector<16x64xf32> to vector<16x32xf32>
    %80 = vector.extract_strided_slice %66 {offsets = [0, 64], sizes = [16, 32], strides = [1, 1]} : vector<16x96xf32> to vector<16x32xf32>
    %81 = arith.addf %80, %43 : vector<16x32xf32>
    %82 = vector.extract_strided_slice %68 {offsets = [0, 64], sizes = [16, 32], strides = [1, 1]} : vector<16x96xf32> to vector<16x32xf32>
    %83 = arith.addf %82, %47 : vector<16x32xf32>
    %84 = arith.mulf %78, %83 : vector<16x32xf32>
    %85 = arith.addf %81, %84 : vector<16x32xf32>
    %86 = math.tanh %85 : vector<16x32xf32>
    %cst_55 = arith.constant 1.000000e+00 : f32
    %87 = vector.broadcast %cst_55 : f32 to vector<16x32xf32>
    %88 = arith.subf %87, %79 : vector<16x32xf32>
    %89 = arith.mulf %88, %86 : vector<16x32xf32>
    %90 = arith.mulf %79, %8 : vector<16x32xf32>
    %91 = arith.addf %89, %90 : vector<16x32xf32>
    %92 = arith.truncf %91 : vector<16x32xf32> to vector<16x32xbf16>
    %cst_56 = arith.constant dense<0.000000e+00> : vector<32x32xf32>
    %93 = tpu.matmul %25, %92, %cst_56 {dimension_numbers = #tpu.dot_dimension_numbers<[1], [0], [0], [1], [0, 0, 1, 1], [], []>} : vector<32x16xbf16>, vector<16x32xbf16>, vector<32x32xf32> -> vector<32x32xf32>
    %c0_57 = arith.constant 0 : index
    %c0_58 = arith.constant 0 : index
    %94 = vector.load %arg6[%c0_57, %c0_58] : memref<32x1024xbf16, #tpu.memory_space<vmem>>, vector<32x1024xbf16>
    %95 = arith.truncf %93 : vector<32x32xf32> to vector<32x32xbf16>
    %cst_59 = arith.constant dense<0.000000e+00> : vector<32x1024xf32>
    %96 = tpu.matmul %95, %94, %cst_59 {dimension_numbers = #tpu.dot_dimension_numbers<[1], [0], [0], [1], [0, 0, 1, 1], [], []>} : vector<32x32xbf16>, vector<32x1024xbf16>, vector<32x1024xf32> -> vector<32x1024xf32>
    %c0_60 = arith.constant 0 : index
    %c0_61 = arith.constant 0 : index
    %97 = vector.load %arg24[%c0_60, %c0_61] : memref<32x1024xf32, #tpu.memory_space<vmem>>, vector<32x1024xf32>
    %98 = arith.mulf %96, %97 : vector<32x1024xf32>
    %c0_62 = arith.constant 0 : index
    %c0_63 = arith.constant 0 : index
    %99 = vector.load %arg7[%c0_62, %c0_63] : memref<1024x32xbf16, #tpu.memory_space<vmem>>, vector<1024x32xbf16>
    %100 = arith.truncf %98 : vector<32x1024xf32> to vector<32x1024xbf16>
    %cst_64 = arith.constant dense<0.000000e+00> : vector<32x32xf32>
    %101 = tpu.matmul %100, %99, %cst_64 {dimension_numbers = #tpu.dot_dimension_numbers<[1], [0], [0], [1], [0, 0, 1, 1], [], []>} : vector<32x1024xbf16>, vector<1024x32xbf16>, vector<32x32xf32> -> vector<32x32xf32>
    %102 = arith.truncf %101 : vector<32x32xf32> to vector<32x32xbf16>
    %cst_65 = arith.constant dense<0.000000e+00> : vector<16x32xf32>
    %103 = tpu.matmul %26, %102, %cst_65 {dimension_numbers = #tpu.dot_dimension_numbers<[1], [0], [0], [1], [0, 0, 1, 1], [], []>} : vector<16x32xbf16>, vector<32x32xbf16>, vector<16x32xf32> -> vector<16x32xf32>
    %104 = vector.broadcast %27 : vector<16x1xf32> to vector<16x32xf32>
    %105 = arith.mulf %103, %104 : vector<16x32xf32>
    %106 = arith.addf %105, %30 : vector<16x32xf32>
    %cst_66 = arith.constant 0.000000e+00 : f32
    %107 = vector.broadcast %cst_66 : f32 to vector<16x32xf32>
    %108 = arith.maximumf %106, %107 : vector<16x32xf32>
    %109 = arith.truncf %108 : vector<16x32xf32> to vector<16x32xbf16>
    %cst_67 = arith.constant dense<0.000000e+00> : vector<16x96xf32>
    %110 = tpu.matmul %109, %31, %cst_67 {dimension_numbers = #tpu.dot_dimension_numbers<[1], [0], [0], [1], [0, 0, 1, 1], [], []>} : vector<16x32xbf16>, vector<32x96xbf16>, vector<16x96xf32> -> vector<16x96xf32>
    %111 = arith.truncf %91 : vector<16x32xf32> to vector<16x32xbf16>
    %cst_68 = arith.constant dense<0.000000e+00> : vector<16x96xf32>
    %112 = tpu.matmul %111, %32, %cst_68 {dimension_numbers = #tpu.dot_dimension_numbers<[1], [0], [0], [1], [0, 0, 1, 1], [], []>} : vector<16x32xbf16>, vector<32x96xbf16>, vector<16x96xf32> -> vector<16x96xf32>
    %113 = vector.extract_strided_slice %110 {offsets = [0, 0], sizes = [16, 64], strides = [1, 1]} : vector<16x96xf32> to vector<16x64xf32>
    %114 = vector.extract_strided_slice %112 {offsets = [0, 0], sizes = [16, 64], strides = [1, 1]} : vector<16x96xf32> to vector<16x64xf32>
    %115 = arith.addf %113, %114 : vector<16x64xf32>
    %116 = arith.addf %115, %39 : vector<16x64xf32>
    %117 = arith.negf %116 : vector<16x64xf32>
    %118 = math.exp %117 : vector<16x64xf32>
    %cst_69 = arith.constant 1.000000e+00 : f32
    %119 = vector.broadcast %cst_69 : f32 to vector<16x64xf32>
    %120 = arith.addf %119, %118 : vector<16x64xf32>
    %121 = arith.divf %119, %120 : vector<16x64xf32>
    %122 = vector.extract_strided_slice %121 {offsets = [0, 0], sizes = [16, 32], strides = [1, 1]} : vector<16x64xf32> to vector<16x32xf32>
    %123 = vector.extract_strided_slice %121 {offsets = [0, 32], sizes = [16, 32], strides = [1, 1]} : vector<16x64xf32> to vector<16x32xf32>
    %124 = vector.extract_strided_slice %110 {offsets = [0, 64], sizes = [16, 32], strides = [1, 1]} : vector<16x96xf32> to vector<16x32xf32>
    %125 = arith.addf %124, %43 : vector<16x32xf32>
    %126 = vector.extract_strided_slice %112 {offsets = [0, 64], sizes = [16, 32], strides = [1, 1]} : vector<16x96xf32> to vector<16x32xf32>
    %127 = arith.addf %126, %47 : vector<16x32xf32>
    %128 = arith.mulf %122, %127 : vector<16x32xf32>
    %129 = arith.addf %125, %128 : vector<16x32xf32>
    %130 = math.tanh %129 : vector<16x32xf32>
    %cst_70 = arith.constant 1.000000e+00 : f32
    %131 = vector.broadcast %cst_70 : f32 to vector<16x32xf32>
    %132 = arith.subf %131, %123 : vector<16x32xf32>
    %133 = arith.mulf %132, %130 : vector<16x32xf32>
    %134 = arith.mulf %123, %91 : vector<16x32xf32>
    %135 = arith.addf %133, %134 : vector<16x32xf32>
    %136 = arith.truncf %135 : vector<16x32xf32> to vector<16x32xbf16>
    %cst_71 = arith.constant dense<0.000000e+00> : vector<32x32xf32>
    %137 = tpu.matmul %25, %136, %cst_71 {dimension_numbers = #tpu.dot_dimension_numbers<[1], [0], [0], [1], [0, 0, 1, 1], [], []>} : vector<32x16xbf16>, vector<16x32xbf16>, vector<32x32xf32> -> vector<32x32xf32>
    %c0_72 = arith.constant 0 : index
    %c0_73 = arith.constant 0 : index
    %138 = vector.load %arg6[%c0_72, %c0_73] : memref<32x1024xbf16, #tpu.memory_space<vmem>>, vector<32x1024xbf16>
    %139 = arith.truncf %137 : vector<32x32xf32> to vector<32x32xbf16>
    %cst_74 = arith.constant dense<0.000000e+00> : vector<32x1024xf32>
    %140 = tpu.matmul %139, %138, %cst_74 {dimension_numbers = #tpu.dot_dimension_numbers<[1], [0], [0], [1], [0, 0, 1, 1], [], []>} : vector<32x32xbf16>, vector<32x1024xbf16>, vector<32x1024xf32> -> vector<32x1024xf32>
    %c0_75 = arith.constant 0 : index
    %c0_76 = arith.constant 0 : index
    %141 = vector.load %arg24[%c0_75, %c0_76] : memref<32x1024xf32, #tpu.memory_space<vmem>>, vector<32x1024xf32>
    %142 = arith.mulf %140, %141 : vector<32x1024xf32>
    %c0_77 = arith.constant 0 : index
    %c0_78 = arith.constant 0 : index
    %143 = vector.load %arg7[%c0_77, %c0_78] : memref<1024x32xbf16, #tpu.memory_space<vmem>>, vector<1024x32xbf16>
    %144 = arith.truncf %142 : vector<32x1024xf32> to vector<32x1024xbf16>
    %cst_79 = arith.constant dense<0.000000e+00> : vector<32x32xf32>
    %145 = tpu.matmul %144, %143, %cst_79 {dimension_numbers = #tpu.dot_dimension_numbers<[1], [0], [0], [1], [0, 0, 1, 1], [], []>} : vector<32x1024xbf16>, vector<1024x32xbf16>, vector<32x32xf32> -> vector<32x32xf32>
    %146 = arith.truncf %145 : vector<32x32xf32> to vector<32x32xbf16>
    %cst_80 = arith.constant dense<0.000000e+00> : vector<16x32xf32>
    %147 = tpu.matmul %26, %146, %cst_80 {dimension_numbers = #tpu.dot_dimension_numbers<[1], [0], [0], [1], [0, 0, 1, 1], [], []>} : vector<16x32xbf16>, vector<32x32xbf16>, vector<16x32xf32> -> vector<16x32xf32>
    %148 = vector.broadcast %27 : vector<16x1xf32> to vector<16x32xf32>
    %149 = arith.mulf %147, %148 : vector<16x32xf32>
    %150 = arith.addf %149, %30 : vector<16x32xf32>
    %cst_81 = arith.constant 0.000000e+00 : f32
    %151 = vector.broadcast %cst_81 : f32 to vector<16x32xf32>
    %152 = arith.maximumf %150, %151 : vector<16x32xf32>
    %153 = arith.truncf %152 : vector<16x32xf32> to vector<16x32xbf16>
    %cst_82 = arith.constant dense<0.000000e+00> : vector<16x96xf32>
    %154 = tpu.matmul %153, %31, %cst_82 {dimension_numbers = #tpu.dot_dimension_numbers<[1], [0], [0], [1], [0, 0, 1, 1], [], []>} : vector<16x32xbf16>, vector<32x96xbf16>, vector<16x96xf32> -> vector<16x96xf32>
    %155 = arith.truncf %135 : vector<16x32xf32> to vector<16x32xbf16>
    %cst_83 = arith.constant dense<0.000000e+00> : vector<16x96xf32>
    %156 = tpu.matmul %155, %32, %cst_83 {dimension_numbers = #tpu.dot_dimension_numbers<[1], [0], [0], [1], [0, 0, 1, 1], [], []>} : vector<16x32xbf16>, vector<32x96xbf16>, vector<16x96xf32> -> vector<16x96xf32>
    %157 = vector.extract_strided_slice %154 {offsets = [0, 0], sizes = [16, 64], strides = [1, 1]} : vector<16x96xf32> to vector<16x64xf32>
    %158 = vector.extract_strided_slice %156 {offsets = [0, 0], sizes = [16, 64], strides = [1, 1]} : vector<16x96xf32> to vector<16x64xf32>
    %159 = arith.addf %157, %158 : vector<16x64xf32>
    %160 = arith.addf %159, %39 : vector<16x64xf32>
    %161 = arith.negf %160 : vector<16x64xf32>
    %162 = math.exp %161 : vector<16x64xf32>
    %cst_84 = arith.constant 1.000000e+00 : f32
    %163 = vector.broadcast %cst_84 : f32 to vector<16x64xf32>
    %164 = arith.addf %163, %162 : vector<16x64xf32>
    %165 = arith.divf %163, %164 : vector<16x64xf32>
    %166 = vector.extract_strided_slice %165 {offsets = [0, 0], sizes = [16, 32], strides = [1, 1]} : vector<16x64xf32> to vector<16x32xf32>
    %167 = vector.extract_strided_slice %165 {offsets = [0, 32], sizes = [16, 32], strides = [1, 1]} : vector<16x64xf32> to vector<16x32xf32>
    %168 = vector.extract_strided_slice %154 {offsets = [0, 64], sizes = [16, 32], strides = [1, 1]} : vector<16x96xf32> to vector<16x32xf32>
    %169 = arith.addf %168, %43 : vector<16x32xf32>
    %170 = vector.extract_strided_slice %156 {offsets = [0, 64], sizes = [16, 32], strides = [1, 1]} : vector<16x96xf32> to vector<16x32xf32>
    %171 = arith.addf %170, %47 : vector<16x32xf32>
    %172 = arith.mulf %166, %171 : vector<16x32xf32>
    %173 = arith.addf %169, %172 : vector<16x32xf32>
    %174 = math.tanh %173 : vector<16x32xf32>
    %cst_85 = arith.constant 1.000000e+00 : f32
    %175 = vector.broadcast %cst_85 : f32 to vector<16x32xf32>
    %176 = arith.subf %175, %167 : vector<16x32xf32>
    %177 = arith.mulf %176, %174 : vector<16x32xf32>
    %178 = arith.mulf %167, %135 : vector<16x32xf32>
    %179 = arith.addf %177, %178 : vector<16x32xf32>
    %c0_86 = arith.constant 0 : index
    %c0_87 = arith.constant 0 : index
    %180 = vector.load %arg5[%c0_86, %c0_87] : memref<2x16xf32, #tpu.memory_space<vmem>>, vector<2x16xf32>
    %cst_88 = arith.constant 0.000000e+00 : f32
    %181 = vector.broadcast %cst_88 : f32 to vector<2x16xf32>
    %182 = arith.cmpf ogt, %180, %181 : vector<2x16xf32>
    %183 = arith.truncf %179 : vector<16x32xf32> to vector<16x32xbf16>
    %184 = tpu.transpose %179, [1, 0] : vector<16x32xf32> -> vector<32x16xf32>
    %185 = arith.truncf %184 : vector<32x16xf32> to vector<32x16xbf16>
    %c0_89 = arith.constant 0 : index
    %c0_90 = arith.constant 0 : index
    %186 = vector.load %arg19[%c0_89, %c0_90] : memref<32x128xbf16, #tpu.memory_space<vmem>>, vector<32x128xbf16>
    %c0_91 = arith.constant 0 : index
    %c0_92 = arith.constant 0 : index
    %187 = vector.load %arg20[%c0_91, %c0_92] : memref<32x128xbf16, #tpu.memory_space<vmem>>, vector<32x128xbf16>
    %c0_93 = arith.constant 0 : index
    %c0_94 = arith.constant 0 : index
    %188 = vector.load %arg21[%c0_93, %c0_94] : memref<32x128xbf16, #tpu.memory_space<vmem>>, vector<32x128xbf16>
    %c0_95 = arith.constant 0 : index
    %c0_96 = arith.constant 0 : index
    %189 = vector.load %arg22[%c0_95, %c0_96] : memref<1x128xf32, #tpu.memory_space<vmem>>, vector<1x128xf32>
    %190 = vector.shape_cast %189 : vector<1x128xf32> to vector<1x128xf32>
    %191 = vector.broadcast %190 : vector<1x128xf32> to vector<2x128xf32>
    %cst_97 = arith.constant 0.000000e+00 : f32
    %192 = vector.broadcast %cst_97 : f32 to vector<2x32xf32>
    %cst_98 = arith.constant 0.000000e+00 : f32
    %193 = vector.broadcast %cst_98 : f32 to vector<2x32xf32>
    %cst_99 = arith.constant 0.000000e+00 : f32
    %194 = vector.broadcast %cst_99 : f32 to vector<2x32xf32>
    %cst_100 = arith.constant 0.000000e+00 : f32
    %195 = vector.broadcast %cst_100 : f32 to vector<2x32xf32>
    %196 = arith.truncf %192 : vector<2x32xf32> to vector<2x32xbf16>
    %cst_101 = arith.constant dense<0.000000e+00> : vector<2x128xf32>
    %197 = tpu.matmul %196, %186, %cst_101 {dimension_numbers = #tpu.dot_dimension_numbers<[1], [0], [0], [1], [0, 0, 1, 1], [], []>} : vector<2x32xbf16>, vector<32x128xbf16>, vector<2x128xf32> -> vector<2x128xf32>
    %198 = arith.truncf %193 : vector<2x32xf32> to vector<2x32xbf16>
    %cst_102 = arith.constant dense<0.000000e+00> : vector<2x128xf32>
    %199 = tpu.matmul %198, %187, %cst_102 {dimension_numbers = #tpu.dot_dimension_numbers<[1], [0], [0], [1], [0, 0, 1, 1], [], []>} : vector<2x32xbf16>, vector<32x128xbf16>, vector<2x128xf32> -> vector<2x128xf32>
    %200 = arith.addf %197, %199 : vector<2x128xf32>
    %201 = arith.truncf %194 : vector<2x32xf32> to vector<2x32xbf16>
    %cst_103 = arith.constant dense<0.000000e+00> : vector<2x128xf32>
    %202 = tpu.matmul %201, %188, %cst_103 {dimension_numbers = #tpu.dot_dimension_numbers<[1], [0], [0], [1], [0, 0, 1, 1], [], []>} : vector<2x32xbf16>, vector<32x128xbf16>, vector<2x128xf32> -> vector<2x128xf32>
    %203 = arith.addf %200, %202 : vector<2x128xf32>
    %204 = arith.addf %203, %191 : vector<2x128xf32>
    %205 = vector.extract_strided_slice %204 {offsets = [0, 0], sizes = [2, 96], strides = [1, 1]} : vector<2x128xf32> to vector<2x96xf32>
    %206 = arith.negf %205 : vector<2x96xf32>
    %207 = math.exp %206 : vector<2x96xf32>
    %cst_104 = arith.constant 1.000000e+00 : f32
    %208 = vector.broadcast %cst_104 : f32 to vector<2x96xf32>
    %209 = arith.addf %208, %207 : vector<2x96xf32>
    %210 = arith.divf %208, %209 : vector<2x96xf32>
    %211 = vector.extract_strided_slice %204 {offsets = [0, 96], sizes = [2, 32], strides = [1, 1]} : vector<2x128xf32> to vector<2x32xf32>
    %212 = math.tanh %211 : vector<2x32xf32>
    %213 = vector.extract_strided_slice %210 {offsets = [0, 0], sizes = [2, 32], strides = [1, 1]} : vector<2x96xf32> to vector<2x32xf32>
    %214 = vector.extract_strided_slice %210 {offsets = [0, 32], sizes = [2, 32], strides = [1, 1]} : vector<2x96xf32> to vector<2x32xf32>
    %215 = vector.extract_strided_slice %210 {offsets = [0, 64], sizes = [2, 32], strides = [1, 1]} : vector<2x96xf32> to vector<2x32xf32>
    %216 = arith.mulf %214, %195 : vector<2x32xf32>
    %217 = arith.mulf %213, %212 : vector<2x32xf32>
    %218 = arith.addf %216, %217 : vector<2x32xf32>
    %219 = math.tanh %218 : vector<2x32xf32>
    %220 = arith.mulf %215, %219 : vector<2x32xf32>
    %221 = arith.truncf %220 : vector<2x32xf32> to vector<2x32xbf16>
    %cst_105 = arith.constant dense<0.000000e+00> : vector<2x16xf32>
    %222 = tpu.matmul %221, %185, %cst_105 {dimension_numbers = #tpu.dot_dimension_numbers<[1], [0], [0], [1], [0, 0, 1, 1], [], []>} : vector<2x32xbf16>, vector<32x16xbf16>, vector<2x16xf32> -> vector<2x16xf32>
    %cst_106 = arith.constant -1.70141173E+38 : f32
    %223 = vector.broadcast %cst_106 : f32 to vector<2x16xf32>
    %224 = arith.select %182, %222, %223 : vector<2x16xi1>, vector<2x16xf32>
    %cst_107 = arith.constant dense<0xFF800000> : vector<2xf32>
    %225 = vector.multi_reduction <maximumf>, %224, %cst_107 [1] : vector<2x16xf32> to vector<2xf32>
    %226 = vector.shape_cast %225 : vector<2xf32> to vector<2x1xf32>
    %227 = vector.broadcast %226 : vector<2x1xf32> to vector<2x16xf32>
    %228 = arith.subf %224, %227 : vector<2x16xf32>
    %229 = math.exp %228 : vector<2x16xf32>
    %cst_108 = arith.constant 0.000000e+00 : f32
    %230 = vector.broadcast %cst_108 : f32 to vector<2x16xf32>
    %231 = arith.select %182, %229, %230 : vector<2x16xi1>, vector<2x16xf32>
    %cst_109 = arith.constant dense<0.000000e+00> : vector<2xf32>
    %232 = vector.multi_reduction <add>, %231, %cst_109 [1] : vector<2x16xf32> to vector<2xf32>
    %233 = vector.shape_cast %232 : vector<2xf32> to vector<2x1xf32>
    %cst_110 = arith.constant 1.000000e-30 : f32
    %234 = vector.broadcast %cst_110 : f32 to vector<2x1xf32>
    %235 = arith.maximumf %233, %234 : vector<2x1xf32>
    %236 = vector.broadcast %235 : vector<2x1xf32> to vector<2x16xf32>
    %237 = arith.divf %231, %236 : vector<2x16xf32>
    %238 = arith.truncf %237 : vector<2x16xf32> to vector<2x16xbf16>
    %cst_111 = arith.constant dense<0.000000e+00> : vector<2x32xf32>
    %239 = tpu.matmul %238, %183, %cst_111 {dimension_numbers = #tpu.dot_dimension_numbers<[1], [0], [0], [1], [0, 0, 1, 1], [], []>} : vector<2x16xbf16>, vector<16x32xbf16>, vector<2x32xf32> -> vector<2x32xf32>
    %240 = arith.truncf %220 : vector<2x32xf32> to vector<2x32xbf16>
    %cst_112 = arith.constant dense<0.000000e+00> : vector<2x128xf32>
    %241 = tpu.matmul %240, %186, %cst_112 {dimension_numbers = #tpu.dot_dimension_numbers<[1], [0], [0], [1], [0, 0, 1, 1], [], []>} : vector<2x32xbf16>, vector<32x128xbf16>, vector<2x128xf32> -> vector<2x128xf32>
    %242 = arith.truncf %239 : vector<2x32xf32> to vector<2x32xbf16>
    %cst_113 = arith.constant dense<0.000000e+00> : vector<2x128xf32>
    %243 = tpu.matmul %242, %187, %cst_113 {dimension_numbers = #tpu.dot_dimension_numbers<[1], [0], [0], [1], [0, 0, 1, 1], [], []>} : vector<2x32xbf16>, vector<32x128xbf16>, vector<2x128xf32> -> vector<2x128xf32>
    %244 = arith.addf %241, %243 : vector<2x128xf32>
    %245 = arith.truncf %220 : vector<2x32xf32> to vector<2x32xbf16>
    %cst_114 = arith.constant dense<0.000000e+00> : vector<2x128xf32>
    %246 = tpu.matmul %245, %188, %cst_114 {dimension_numbers = #tpu.dot_dimension_numbers<[1], [0], [0], [1], [0, 0, 1, 1], [], []>} : vector<2x32xbf16>, vector<32x128xbf16>, vector<2x128xf32> -> vector<2x128xf32>
    %247 = arith.addf %244, %246 : vector<2x128xf32>
    %248 = arith.addf %247, %191 : vector<2x128xf32>
    %249 = vector.extract_strided_slice %248 {offsets = [0, 0], sizes = [2, 96], strides = [1, 1]} : vector<2x128xf32> to vector<2x96xf32>
    %250 = arith.negf %249 : vector<2x96xf32>
    %251 = math.exp %250 : vector<2x96xf32>
    %cst_115 = arith.constant 1.000000e+00 : f32
    %252 = vector.broadcast %cst_115 : f32 to vector<2x96xf32>
    %253 = arith.addf %252, %251 : vector<2x96xf32>
    %254 = arith.divf %252, %253 : vector<2x96xf32>
    %255 = vector.extract_strided_slice %248 {offsets = [0, 96], sizes = [2, 32], strides = [1, 1]} : vector<2x128xf32> to vector<2x32xf32>
    %256 = math.tanh %255 : vector<2x32xf32>
    %257 = vector.extract_strided_slice %254 {offsets = [0, 0], sizes = [2, 32], strides = [1, 1]} : vector<2x96xf32> to vector<2x32xf32>
    %258 = vector.extract_strided_slice %254 {offsets = [0, 32], sizes = [2, 32], strides = [1, 1]} : vector<2x96xf32> to vector<2x32xf32>
    %259 = vector.extract_strided_slice %254 {offsets = [0, 64], sizes = [2, 32], strides = [1, 1]} : vector<2x96xf32> to vector<2x32xf32>
    %260 = arith.mulf %258, %218 : vector<2x32xf32>
    %261 = arith.mulf %257, %256 : vector<2x32xf32>
    %262 = arith.addf %260, %261 : vector<2x32xf32>
    %263 = math.tanh %262 : vector<2x32xf32>
    %264 = arith.mulf %259, %263 : vector<2x32xf32>
    %265 = arith.truncf %264 : vector<2x32xf32> to vector<2x32xbf16>
    %cst_116 = arith.constant dense<0.000000e+00> : vector<2x16xf32>
    %266 = tpu.matmul %265, %185, %cst_116 {dimension_numbers = #tpu.dot_dimension_numbers<[1], [0], [0], [1], [0, 0, 1, 1], [], []>} : vector<2x32xbf16>, vector<32x16xbf16>, vector<2x16xf32> -> vector<2x16xf32>
    %cst_117 = arith.constant -1.70141173E+38 : f32
    %267 = vector.broadcast %cst_117 : f32 to vector<2x16xf32>
    %268 = arith.select %182, %266, %267 : vector<2x16xi1>, vector<2x16xf32>
    %cst_118 = arith.constant dense<0xFF800000> : vector<2xf32>
    %269 = vector.multi_reduction <maximumf>, %268, %cst_118 [1] : vector<2x16xf32> to vector<2xf32>
    %270 = vector.shape_cast %269 : vector<2xf32> to vector<2x1xf32>
    %271 = vector.broadcast %270 : vector<2x1xf32> to vector<2x16xf32>
    %272 = arith.subf %268, %271 : vector<2x16xf32>
    %273 = math.exp %272 : vector<2x16xf32>
    %cst_119 = arith.constant 0.000000e+00 : f32
    %274 = vector.broadcast %cst_119 : f32 to vector<2x16xf32>
    %275 = arith.select %182, %273, %274 : vector<2x16xi1>, vector<2x16xf32>
    %cst_120 = arith.constant dense<0.000000e+00> : vector<2xf32>
    %276 = vector.multi_reduction <add>, %275, %cst_120 [1] : vector<2x16xf32> to vector<2xf32>
    %277 = vector.shape_cast %276 : vector<2xf32> to vector<2x1xf32>
    %cst_121 = arith.constant 1.000000e-30 : f32
    %278 = vector.broadcast %cst_121 : f32 to vector<2x1xf32>
    %279 = arith.maximumf %277, %278 : vector<2x1xf32>
    %280 = vector.broadcast %279 : vector<2x1xf32> to vector<2x16xf32>
    %281 = arith.divf %275, %280 : vector<2x16xf32>
    %282 = arith.truncf %281 : vector<2x16xf32> to vector<2x16xbf16>
    %cst_122 = arith.constant dense<0.000000e+00> : vector<2x32xf32>
    %283 = tpu.matmul %282, %183, %cst_122 {dimension_numbers = #tpu.dot_dimension_numbers<[1], [0], [0], [1], [0, 0, 1, 1], [], []>} : vector<2x16xbf16>, vector<16x32xbf16>, vector<2x32xf32> -> vector<2x32xf32>
    %284 = arith.truncf %264 : vector<2x32xf32> to vector<2x32xbf16>
    %cst_123 = arith.constant dense<0.000000e+00> : vector<2x128xf32>
    %285 = tpu.matmul %284, %186, %cst_123 {dimension_numbers = #tpu.dot_dimension_numbers<[1], [0], [0], [1], [0, 0, 1, 1], [], []>} : vector<2x32xbf16>, vector<32x128xbf16>, vector<2x128xf32> -> vector<2x128xf32>
    %286 = arith.truncf %283 : vector<2x32xf32> to vector<2x32xbf16>
    %cst_124 = arith.constant dense<0.000000e+00> : vector<2x128xf32>
    %287 = tpu.matmul %286, %187, %cst_124 {dimension_numbers = #tpu.dot_dimension_numbers<[1], [0], [0], [1], [0, 0, 1, 1], [], []>} : vector<2x32xbf16>, vector<32x128xbf16>, vector<2x128xf32> -> vector<2x128xf32>
    %288 = arith.addf %285, %287 : vector<2x128xf32>
    %289 = arith.truncf %264 : vector<2x32xf32> to vector<2x32xbf16>
    %cst_125 = arith.constant dense<0.000000e+00> : vector<2x128xf32>
    %290 = tpu.matmul %289, %188, %cst_125 {dimension_numbers = #tpu.dot_dimension_numbers<[1], [0], [0], [1], [0, 0, 1, 1], [], []>} : vector<2x32xbf16>, vector<32x128xbf16>, vector<2x128xf32> -> vector<2x128xf32>
    %291 = arith.addf %288, %290 : vector<2x128xf32>
    %292 = arith.addf %291, %191 : vector<2x128xf32>
    %293 = vector.extract_strided_slice %292 {offsets = [0, 0], sizes = [2, 96], strides = [1, 1]} : vector<2x128xf32> to vector<2x96xf32>
    %294 = arith.negf %293 : vector<2x96xf32>
    %295 = math.exp %294 : vector<2x96xf32>
    %cst_126 = arith.constant 1.000000e+00 : f32
    %296 = vector.broadcast %cst_126 : f32 to vector<2x96xf32>
    %297 = arith.addf %296, %295 : vector<2x96xf32>
    %298 = arith.divf %296, %297 : vector<2x96xf32>
    %299 = vector.extract_strided_slice %292 {offsets = [0, 96], sizes = [2, 32], strides = [1, 1]} : vector<2x128xf32> to vector<2x32xf32>
    %300 = math.tanh %299 : vector<2x32xf32>
    %301 = vector.extract_strided_slice %298 {offsets = [0, 0], sizes = [2, 32], strides = [1, 1]} : vector<2x96xf32> to vector<2x32xf32>
    %302 = vector.extract_strided_slice %298 {offsets = [0, 32], sizes = [2, 32], strides = [1, 1]} : vector<2x96xf32> to vector<2x32xf32>
    %303 = vector.extract_strided_slice %298 {offsets = [0, 64], sizes = [2, 32], strides = [1, 1]} : vector<2x96xf32> to vector<2x32xf32>
    %304 = arith.mulf %302, %262 : vector<2x32xf32>
    %305 = arith.mulf %301, %300 : vector<2x32xf32>
    %306 = arith.addf %304, %305 : vector<2x32xf32>
    %307 = math.tanh %306 : vector<2x32xf32>
    %308 = arith.mulf %303, %307 : vector<2x32xf32>
    %309 = arith.truncf %308 : vector<2x32xf32> to vector<2x32xbf16>
    %cst_127 = arith.constant dense<0.000000e+00> : vector<2x16xf32>
    %310 = tpu.matmul %309, %185, %cst_127 {dimension_numbers = #tpu.dot_dimension_numbers<[1], [0], [0], [1], [0, 0, 1, 1], [], []>} : vector<2x32xbf16>, vector<32x16xbf16>, vector<2x16xf32> -> vector<2x16xf32>
    %cst_128 = arith.constant -1.70141173E+38 : f32
    %311 = vector.broadcast %cst_128 : f32 to vector<2x16xf32>
    %312 = arith.select %182, %310, %311 : vector<2x16xi1>, vector<2x16xf32>
    %cst_129 = arith.constant dense<0xFF800000> : vector<2xf32>
    %313 = vector.multi_reduction <maximumf>, %312, %cst_129 [1] : vector<2x16xf32> to vector<2xf32>
    %314 = vector.shape_cast %313 : vector<2xf32> to vector<2x1xf32>
    %315 = vector.broadcast %314 : vector<2x1xf32> to vector<2x16xf32>
    %316 = arith.subf %312, %315 : vector<2x16xf32>
    %317 = math.exp %316 : vector<2x16xf32>
    %cst_130 = arith.constant 0.000000e+00 : f32
    %318 = vector.broadcast %cst_130 : f32 to vector<2x16xf32>
    %319 = arith.select %182, %317, %318 : vector<2x16xi1>, vector<2x16xf32>
    %cst_131 = arith.constant dense<0.000000e+00> : vector<2xf32>
    %320 = vector.multi_reduction <add>, %319, %cst_131 [1] : vector<2x16xf32> to vector<2xf32>
    %321 = vector.shape_cast %320 : vector<2xf32> to vector<2x1xf32>
    %cst_132 = arith.constant 1.000000e-30 : f32
    %322 = vector.broadcast %cst_132 : f32 to vector<2x1xf32>
    %323 = arith.maximumf %321, %322 : vector<2x1xf32>
    %324 = vector.broadcast %323 : vector<2x1xf32> to vector<2x16xf32>
    %325 = arith.divf %319, %324 : vector<2x16xf32>
    %326 = arith.truncf %325 : vector<2x16xf32> to vector<2x16xbf16>
    %cst_133 = arith.constant dense<0.000000e+00> : vector<2x32xf32>
    %327 = tpu.matmul %326, %183, %cst_133 {dimension_numbers = #tpu.dot_dimension_numbers<[1], [0], [0], [1], [0, 0, 1, 1], [], []>} : vector<2x16xbf16>, vector<16x32xbf16>, vector<2x32xf32> -> vector<2x32xf32>
    %328 = tpu.concatenate %308, %327 in 1 : vector<2x32xf32>, vector<2x32xf32> -> vector<2x64xf32>
    %c0_134 = arith.constant 0 : index
    %c0_135 = arith.constant 0 : index
    %329 = vector.load %arg23[%c0_134, %c0_135] : memref<2x64xf32, #tpu.memory_space<vmem>>, vector<2x64xf32>
    tpu.vector_store %arg23[%c0_134, %c0_135], %328 {strides = array<i32>} : memref<2x64xf32, #tpu.memory_space<vmem>>, vector<2x64xf32>,
    return
  }
}

</mosaic_0001>

<bundles_post_ra>
// kernel: mpnn_encoder_forward.1
= control target key start
LH: loop header
LB: loop body
LE: loop exit
PB: predicated region body
PF: predicated region fallthrough
CT: control target
= control target key end

     0   :  { %s7739_s0 = inlined_call_operand.vmem [shape: f32[16,16], index: 0, kind: input, shape index: {}]   ;;  %s7740_s1 = inlined_call_operand.vmem [shape: f32[32,8], index: 1, kind: input, shape index: {}]   ;;  %s7741_s2 = inlined_call_operand.vmem [shape: bf16[32,16], index: 2, kind: input, shape index: {}]   ;;  %s7742_s3 = inlined_call_operand.vmem [shape: bf16[16,32], index: 3, kind: input, shape index: {}]   ;;  %s7743_s4 = inlined_call_operand.vmem [shape: f32[16,1], index: 4, kind: input, shape index: {}]   ;;  %s7744_s5 = inlined_call_operand.vmem [shape: f32[2,16], index: 5, kind: input, shape index: {}]   ;;  %s7745_s6 = inlined_call_operand.vmem [shape: bf16[32,1024], index: 6, kind: input, shape index: {}]   ;;  %s7746_s7 = inlined_call_operand.vmem [shape: bf16[1024,32], index: 7, kind: input, shape index: {}]   ;;  %s7747_s8 = inlined_call_operand.vmem [shape: bf16[16,32], index: 8, kind: input, shape index: {}]   ;;  %s7748_s9 = inlined_call_operand.vmem [shape: f32[1,32], index: 9, kind: input, shape index: {}]   ;;  %s7749_s10 = inlined_call_operand.vmem [shape: bf16[8,128], index: 10, kind: input, shape index: {}]   ;;  %s7750_s11 = inlined_call_operand.vmem [shape: f32[1,128], index: 11, kind: input, shape index: {}]   ;;  %s7751_s12 = inlined_call_operand.vmem [shape: bf16[128,1024], index: 12, kind: input, shape index: {}]   ;;  %s7752_s13 = inlined_call_operand.vmem [shape: f32[1,1024], index: 13, kind: input, shape index: {}]   ;;  %s7753_s14 = inlined_call_operand.vmem [shape: f32[1,32], index: 14, kind: input, shape index: {}]   ;;  %s7754_s15 = inlined_call_operand.vmem [shape: bf16[32,96], index: 15, kind: input, shape index: {}]   ;;  %s7755_s16 = inlined_call_operand.vmem [shape: bf16[32,96], index: 16, kind: input, shape index: {}]   ;;  %s7756_s17 = inlined_call_operand.vmem [shape: f32[1,96], index: 17, kind: input, shape index: {}]   ;;  %s7757_s18 = inlined_call_operand.vmem [shape: f32[1,96], index: 18, kind: input, shape index: {}]   ;;  %s7758_s19 = inlined_call_operand.vmem [shape: bf16[32,128], index: 19, kind: input, shape index: {}]   ;;  %s7759_s20 = inlined_call_operand.vmem [shape: bf16[32,128], index: 20, kind: input, shape index: {}]   ;;  %s7760_s21 = inlined_call_operand.vmem [shape: bf16[32,128], index: 21, kind: input, shape index: {}]   ;;  %s7761_s22 = inlined_call_operand.vmem [shape: f32[1,128], index: 22, kind: input, shape index: {}]   ;;  %s7762_s23 = inlined_call_operand.hbm [shape: f32[2,64], index: 23, kind: output, shape index: {}]  }
   0x1   :  { %7919 = sst [smem:[#allocation114_spill]] %s7739_s0 }
   0x2   :  { %7920 = sst [smem:[#allocation115_spill]] %s7740_s1 }
   0x3   :  { %7921 = sst [smem:[#allocation116_spill]] %s7741_s2 }
   0x4   :  { %7922 = sst [smem:[#allocation117_spill]] %s7742_s3 }
   0x5   :  { %7923 = sst [smem:[#allocation118_spill]] %s7743_s4 }
   0x6   :  { %7924 = sst [smem:[#allocation119_spill]] %s7744_s5 }
   0x7   :  { %7925 = sst [smem:[#allocation120_spill]] %s7745_s6 }
   0x8   :  { %7926 = sst [smem:[#allocation121_spill]] %s7746_s7 }
   0x9   :  { %v145_v0 = vld [vmem:[%s7749_s10] sm:$0xf]  ;;  %vm162_vm0 = vcmask 1043456   ;;  %s7927_s5 = sld [smem:[#allocation115_spill]]  ;;  %vm155_vm1 = vcmask 64512   ;;  %v7774_v8 = vmov 0.0  }
   0xa   :  { %5534 = vmatprep.subr.msk.bf16.mxu1 %vm162_vm0, %v145_v0  ;;  %v164_v3 = vsel %vm162_vm0, %v145_v0, 0  ;;  %5318 = vmatprep.subr.bf16.mxu0 %v7774_v8  ;;  %v5543_v9 = vld [vmem:[%s7747_s8] sm:$0xff]   ;;  %s7928_s0 = sld [smem:[#allocation114_spill]]  ;;  %vm5788_vm2 = vmmov 0   ;;  %vm94_vm3 = vcmask 130048   ;;  %v276_v17 = vld [vmem:[%s7751_s12 + $0x1c8] sm:$0xff] }
   0xb   :  { %5325 = vmatpush3.bf16.msra.mxu1 %v164_v3  ;;  %5320 = vmatprep.mubr.msk.bf16.mxu0 %vm5788_vm2, %v7774_v8  ;;  %v275_v12 = vld [vmem:[%s7751_s12 + $0x1c0] sm:$0xff]  ;;  %v280_v18 = vld [vmem:[%s7751_s12 + $0x1e8] sm:$0xff] }
   0xc   :  { %v279_v13 = vld [vmem:[%s7751_s12 + $0x1e0] sm:$0xff]  ;;  %5319 = vmatpush3.bf16.msra.mxu0 %v5543_v9  ;;  %v4738_v20 = vcombine.low %v276_v17, %v280_v18  ;;  %v4739_v21 = vcombine.high %v276_v17, %v280_v18  ;;  %v268_v23 = vld [vmem:[%s7751_s12 + $0x188] sm:$0xff] }
   0xd   :  { %v4736_v15 = vcombine.low %v275_v12, %v279_v13  ;;  %v4737_v16 = vcombine.high %v275_v12, %v279_v13  ;;  %v267_v19 = vld [vmem:[%s7751_s12 + $0x180] sm:$0xff]  ;;  %v272_v24 = vld [vmem:[%s7751_s12 + $0x1a8] sm:$0xff] }
   0xe   :  { %v271_v22 = vld [vmem:[%s7751_s12 + $0x1a0] sm:$0xff]  ;;  %v4731_v26 = vcombine.high %v268_v23, %v272_v24  ;;  %v260_v29 = vld [vmem:[%s7751_s12 + $0x148] sm:$0xff]  ;;  %700 = vmatprep.subr.bf16.mxu1 %v4739_v21  ;;  %v4730_v32 = vcombine.low %v268_v23, %v272_v24 }
   0xf   :  { %v141_v1 = vld [vmem:[%s7927_s5] sm:$0xff]  ;;  %v142_v2 = vld [vmem:[%s7927_s5 + $0x8] sm:$0xff]  ;;  %v143_v5 = vld [vmem:[%s7927_s5 + $0x10] sm:$0xff]  ;;  %647 = vmatprep.subr.bf16.mxu0 %v4737_v16  ;;  %v4729_v25 = vcombine.high %v267_v19, %v271_v22  ;;  %v4728_v31 = vcombine.low %v267_v19, %v271_v22 }
  0x10   :  { %v146_v4 = vpack.c.bf16 %v142_v2, %v141_v1  ;;  %v144_v6 = vld [vmem:[%s7927_s5 + $0x18] sm:$0xff]  ;;  %v76_v10 = vld [vmem:[%s7928_s0] sm:$0xff]  ;;  %v77_v11 = vld [vmem:[%s7928_s0 + $0x8] sm:$0xff] }
  0x11   :  { %v147_v7 = vpack.c.bf16 %v144_v6, %v143_v5  ;;  %v80_v14 = vpack.c.bf16 %v77_v11, %v76_v10  ;;  %v259_v27 = vld [vmem:[%s7751_s12 + $0x140] sm:$0xff]  ;;  %v264_v30 = vld [vmem:[%s7751_s12 + $0x168] sm:$0xff] }
  0x12   :  { %5326 = vmatprep.mubr.msk.bf16.mxu1 %vm155_vm1, %v146_v4  ;;  %v263_v28 = vld [vmem:[%s7751_s12 + $0x160] sm:$0xff]  ;;  %v4723_v35 = vcombine.high %v260_v29, %v264_v30  ;;  %v252_v37 = vld [vmem:[%s7751_s12 + $0x108] sm:$0xff]  ;;  %v4722_v40 = vcombine.low %v260_v29, %v264_v30 }
  0x13   :  { %5327 = vmatmul.mubr.msk.bf16.vlgmr.msra.gmra.mxu1 %vm155_vm1, %v147_v7  ;;  %5321 = vmatmul.mubr.msk.bf16.vlgmr.msra.gmra.mxu0 %vm94_vm3, %v80_v14  ;;  %v251_v33 = vld [vmem:[%s7751_s12 + $0x100] sm:$0xff]  ;;  %v4721_v34 = vcombine.high %v259_v27, %v263_v28  ;;  %v256_v38 = vld [vmem:[%s7751_s12 + $0x128] sm:$0xff]  ;;  %v4720_v39 = vcombine.low %v259_v27, %v263_v28 }
  0x14   :  { %648 = vmatpush1.bf16.msra.mxu0 %v4736_v15  ;;  %701 = vmatpush1.bf16.msra.mxu1 %v4738_v20  ;;  %v255_v36 = vld [vmem:[%s7751_s12 + $0x120] sm:$0xff]  ;;  %v244_v43 = vld [vmem:[%s7751_s12 + $0xc8] sm:$0xff]  ;;  %v4715_v46 = vcombine.high %v252_v37, %v256_v38  ;;  %v4714_v48 = vcombine.low %v252_v37, %v256_v38 }
  0x15   :  { %649 = vmatprep.subr.bf16.mxu0 %v4729_v25  ;;  %702 = vmatprep.subr.bf16.mxu1 %v4731_v26  ;;  %v243_v41 = vld [vmem:[%s7751_s12 + $0xc0] sm:$0xff]  ;;  %v248_v44 = vld [vmem:[%s7751_s12 + $0xe8] sm:$0xff]  ;;  %v4713_v45 = vcombine.high %v251_v33, %v255_v36  ;;  %v4712_v47 = vcombine.low %v251_v33, %v255_v36 }
  0x16   :  { %v247_v42 = vld [vmem:[%s7751_s12 + $0xe0] sm:$0xff]  ;;  %v4707_v50 = vcombine.high %v244_v43, %v248_v44  ;;  %v4706_v52 = vcombine.low %v244_v43, %v248_v44 }
  0x17   :  { %v4705_v49 = vcombine.high %v243_v41, %v247_v42  ;;  %v4704_v51 = vcombine.low %v243_v41, %v247_v42 }
  0x18   :  { %650 = vmatpush1.bf16.msra.mxu0 %v4728_v31  ;;  %703 = vmatpush1.bf16.msra.mxu1 %v4730_v32 }
  0x19   :  { %651 = vmatprep.subr.bf16.mxu0 %v4721_v34  ;;  %704 = vmatprep.subr.bf16.mxu1 %v4723_v35 }
  0x1c   :  { %652 = vmatpush1.bf16.msra.mxu0 %v4720_v39  ;;  %705 = vmatpush1.bf16.msra.mxu1 %v4722_v40 }
  0x1d   :  { %653 = vmatprep.subr.bf16.mxu0 %v4713_v45  ;;  %706 = vmatprep.subr.bf16.mxu1 %v4715_v46 }
  0x20   :  { %654 = vmatpush1.bf16.msra.mxu0 %v4712_v47  ;;  %707 = vmatpush1.bf16.msra.mxu1 %v4714_v48 }
  0x21   :  { %655 = vmatprep.subr.bf16.mxu0 %v4705_v49  ;;  %708 = vmatprep.subr.bf16.mxu1 %v4707_v50 }
  0x24   :  { %656 = vmatpush1.bf16.msra.mxu0 %v4704_v51  ;;  %709 = vmatpush1.bf16.msra.mxu1 %v4706_v52 }
  0x25   :  { %28 = vsyncpa [#allocation4], 0  ;;  %v235_v53 = vld [vmem:[%s7751_s12 + $0x80] sm:$0xff]  ;;  %v236_v55 = vld [vmem:[%s7751_s12 + $0x88] sm:$0xff]  ;;  %v7772_v22 = vmov 0   ;;  %s7931_s10 = sld [smem:[#allocation116_spill]] }
  0x26   :  { %v239_v54 = vld [vmem:[%s7751_s12 + $0xa0] sm:$0xff]  ;;  %v240_v57 = vld [vmem:[%s7751_s12 + $0xa8] sm:$0xff]  ;;  %v277_v14 = vld [vmem:[%s7751_s12 + $0x1d0] sm:$0xff]  ;;  %679 = vmatprep.mubr.bf16.mxu0 %v7772_v22  ;;  %732 = vmatprep.mubr.bf16.mxu1 %v7772_v22  ;;  %s7933_s0 = sld [smem:[#allocation120_spill]]  ;;  %vm1099_vm4 = vcmask 261120   ;;  %vm4077_vm6 = vcmask 123904  }
  0x27   :  { %v4697_v56 = vcombine.high %v235_v53, %v239_v54  ;;  %v4696_v58 = vcombine.low %v235_v53, %v239_v54  ;;  %v4698_v59 = vcombine.low %v236_v55, %v240_v57  ;;  %v4699_v60 = vcombine.high %v236_v55, %v240_v57  ;;  %v227_v61 = vld [vmem:[%s7751_s12 + $0x40] sm:$0xff]  ;;  %v228_v63 = vld [vmem:[%s7751_s12 + $0x48] sm:$0xff]  ;;  %v281_v15 = vld [vmem:[%s7751_s12 + $0x1f0] sm:$0xff]  ;;  %5542 = vset.pattern.permute.xlu0 %v7772_v22  ;;  %s7945_s7 = sld [smem:[#allocation121_spill]] }
  0x28   :  { %v231_v62 = vld [vmem:[%s7751_s12 + $0x60] sm:$0xff]  ;;  %v232_v1 = vld [vmem:[%s7751_s12 + $0x68] sm:$0xff]  ;;  %v278_v16 = vld [vmem:[%s7751_s12 + $0x1d8] sm:$0xff]  ;;  %v4741_v17 = vcombine.high %v277_v14, %v281_v15  ;;  %v4740_v19 = vcombine.low %v277_v14, %v281_v15  ;;  %s8041_s28 = sld [smem:[#allocation118_spill]]  ;;  %vm4658_vm7 = vcmask 517120  }
  0x29   :  { %657 = vmatprep.subr.bf16.mxu0 %v4697_v56  ;;  %710 = vmatprep.subr.bf16.mxu1 %v4699_v60  ;;  %v4689_v0 = vcombine.high %v227_v61, %v231_v62  ;;  %v4688_v2 = vcombine.low %v227_v61, %v231_v62  ;;  %v4690_v3 = vcombine.low %v228_v63, %v232_v1  ;;  %v219_v5 = vld [vmem:[%s7751_s12] sm:$0xff]  ;;  %v220_v7 = vld [vmem:[%s7751_s12 + $0x8] sm:$0xff]  ;;  %v282_v18 = vld [vmem:[%s7751_s12 + $0x1f8] sm:$0xff]  ;;  %s8042_s30 = sld [smem:[#allocation117_spill]] }
  0x2a   :  { %658 = vmatpush1.bf16.msra.mxu0 %v4696_v58  ;;  %711 = vmatpush1.bf16.msra.mxu1 %v4698_v59  ;;  %v4691_v4 = vcombine.high %v228_v63, %v232_v1  ;;  %v223_v6 = vld [vmem:[%s7751_s12 + $0x20] sm:$0xff]  ;;  %v224_v10 = vld [vmem:[%s7751_s12 + $0x28] sm:$0xff]  ;;  %v4742_v20 = vcombine.low %v278_v16, %v282_v18  ;;  %v4743_v21 = vcombine.high %v278_v16, %v282_v18  ;;  %v269_v33 = vld [vmem:[%s7751_s12 + $0x190] sm:$0xff]  ;;  %s8190_s5 = sld [smem:[#allocation119_spill]] }
  0x2b   :  { %659 = vmatprep.subr.bf16.mxu0 %v4689_v0  ;;  %v4681_v9 = vcombine.high %v219_v5, %v223_v6  ;;  %v4680_v11 = vcombine.low %v219_v5, %v223_v6  ;;  %v4682_v12 = vcombine.low %v220_v7, %v224_v10  ;;  %v4683_v13 = vcombine.high %v220_v7, %v224_v10  ;;  %v4677_v26 = vld [vmem:[%s7750_s11] ss:$0 sm:$0xff]  ;;  %v273_v34 = vld [vmem:[%s7751_s12 + $0x1b0] sm:$0xff]  ;;  %v270_v35 = vld [vmem:[%s7751_s12 + $0x198] sm:$0xff]  ;;  %s5792_s11 = smov 32  }
  0x2c   :  { %712 = vmatprep.subr.bf16.mxu1 %v4691_v4  ;;  %v274_v36 = vld [vmem:[%s7751_s12 + $0x1b8] sm:$0xff]  ;;  %v4733_v42 = vcombine.high %v269_v33, %v273_v34  ;;  %v261_v44 = vld [vmem:[%s7751_s12 + $0x150] sm:$0xff]  ;;  %v4732_v49 = vcombine.low %v269_v33, %v273_v34 }
  0x2d   :  { %v4735_v43 = vcombine.high %v270_v35, %v274_v36  ;;  %v265_v45 = vld [vmem:[%s7751_s12 + $0x170] sm:$0xff]  ;;  %v262_v46 = vld [vmem:[%s7751_s12 + $0x158] sm:$0xff]  ;;  %v4734_v50 = vcombine.low %v270_v35, %v274_v36  ;;  %v6500_v8 = vld [vmem:[%s7945_s7 + $0x88] sm:$0xff]  }
  0x2e   :  { %660 = vmatpush1.bf16.msra.mxu0 %v4688_v2  ;;  %713 = vmatpush1.bf16.msra.mxu1 %v4690_v3  ;;  %v266_v47 = vld [vmem:[%s7751_s12 + $0x178] sm:$0xff]  ;;  %v4725_v52 = vcombine.high %v261_v44, %v265_v45  ;;  %v253_v54 = vld [vmem:[%s7751_s12 + $0x110] sm:$0xff]  ;;  %v4724_v59 = vcombine.low %v261_v44, %v265_v45  ;;  %v1009_v44 = vld [vmem:[%s7933_s0 + $0x40] sm:$0xff]  ;;  %7973 = vst [vmem:[#allocation47_spill] sm:$0xff] %v6500_v8 }
  0x2f   :  { %661 = vmatprep.subr.bf16.mxu0 %v4681_v9  ;;  %714 = vmatprep.subr.bf16.mxu1 %v4683_v13  ;;  %v4727_v53 = vcombine.high %v262_v46, %v266_v47  ;;  %v257_v55 = vld [vmem:[%s7751_s12 + $0x130] sm:$0xff]  ;;  %v254_v56 = vld [vmem:[%s7751_s12 + $0x118] sm:$0xff]  ;;  %v4726_v60 = vcombine.low %v262_v46, %v266_v47  ;;  %v1013_v45 = vld [vmem:[%s7933_s0 + $0x60] sm:$0xff] }
  0x30   :  { %v258_v57 = vld [vmem:[%s7751_s12 + $0x138] sm:$0xff]  ;;  %v4717_v62 = vcombine.high %v253_v54, %v257_v55  ;;  %v245_v0 = vld [vmem:[%s7751_s12 + $0xd0] sm:$0xff]  ;;  %v4716_v4 = vcombine.low %v253_v54, %v257_v55  ;;  %v1010_v46 = vld [vmem:[%s7933_s0 + $0x48] sm:$0xff]  ;;  %v6205_v47 = vcombine.high %v1009_v44, %v1013_v45 }
  0x31   :  { %v4719_v63 = vcombine.high %v254_v56, %v258_v57  ;;  %v249_v1 = vld [vmem:[%s7751_s12 + $0xf0] sm:$0xff]  ;;  %v246_v2 = vld [vmem:[%s7751_s12 + $0xd8] sm:$0xff]  ;;  %v4718_v5 = vcombine.low %v254_v56, %v258_v57  ;;  %v1002_v54 = vld [vmem:[%s7933_s0 + $0x8] sm:$0xff] }
  0x32   :  { %662 = vmatpush1.bf16.msra.mxu0 %v4680_v11  ;;  %715 = vmatpush1.bf16.msra.mxu1 %v4682_v12  ;;  %v250_v3 = vld [vmem:[%s7751_s12 + $0xf8] sm:$0xff]  ;;  %v4709_v6 = vcombine.high %v245_v0, %v249_v1  ;;  %v237_v9 = vld [vmem:[%s7751_s12 + $0x90] sm:$0xff]  ;;  %v4708_v13 = vcombine.low %v245_v0, %v249_v1  ;;  %v1006_v56 = vld [vmem:[%s7933_s0 + $0x28] sm:$0xff] }
  0x33   :  { %753 = vmatprep.subr.bf16.mxu0 %v4741_v17  ;;  %806 = vmatprep.subr.bf16.mxu1 %v4743_v21  ;;  %v4711_v7 = vcombine.high %v246_v2, %v250_v3  ;;  %v241_v10 = vld [vmem:[%s7751_s12 + $0xb0] sm:$0xff]  ;;  %v238_v11 = vld [vmem:[%s7751_s12 + $0x98] sm:$0xff]  ;;  %v4710_v14 = vcombine.low %v246_v2, %v250_v3 }
  0x34   :  { %v242_v12 = vld [vmem:[%s7751_s12 + $0xb8] sm:$0xff]  ;;  %v4701_v15 = vcombine.high %v237_v9, %v241_v10  ;;  %v229_v17 = vld [vmem:[%s7751_s12 + $0x50] sm:$0xff] }
  0x35   :  { %v4703_v16 = vcombine.high %v238_v11, %v242_v12  ;;  %v233_v18 = vld [vmem:[%s7751_s12 + $0x70] sm:$0xff]  ;;  %v234_v21 = vld [vmem:[%s7751_s12 + $0x78] sm:$0xff] }
  0x36   :  { %v222_v33 = vld [vmem:[%s7751_s12 + $0x18] sm:$0xff] }
  0x37   :  { %v1016_v0 = vld [vmem:[%s7933_s0 + $0x78] sm:$0xff] }
  0xd3   :  { %v5328_v23 = vpop.f32.mrf.mxu1  ;;  %v6055_v25 = vpop.f32.mrf.mxu0 }
  0xd4   :  { %v209_v48 = vadd.f32 %v5328_v23, %v4677_v26  ;;  %v4700_v23 = vcombine.low %v237_v9, %v241_v10 }
  0xd5   :  { %v200_v24 = vpop.f32.mrf.mxu1  ;;  %v5322_v28 = vpop.f32.mrf.mxu0 }
  0xd6   :  { %v201_v29 = vadd.f32 %v4677_v26, %v200_v24  ;;  %v217_v58 = vmax.f32 %v209_v48, 0.0  ;;  %v4702_v24 = vcombine.low %v238_v11, %v242_v12  ;;  %v1014_v48 = vld [vmem:[%s7933_s0 + $0x68] sm:$0xff] }
  0xd7   :  { %v5329_v27 = vpop.f32.mrf.mxu1  ;;  %v6060_v31 = vpop.f32.mrf.mxu0 }
  0xd8   :  { %v215_v38 = vmax.f32 %v201_v29, 0.0  ;;  %v212_v40 = vadd.f32 %v5329_v27, %v4677_v26 }
  0xd9   :  { %v203_v30 = vpop.f32.mrf.mxu1  ;;  %v5323_v37 = vpop.f32.mrf.mxu0 }
  0xda   :  { %v204_v32 = vadd.f32 %v4677_v26, %v203_v30  ;;  %v218_v51 = vmax.f32 %v212_v40, 0.0  ;;  %v4693_v26 = vcombine.high %v229_v17, %v233_v18  ;;  %v221_v30 = vld [vmem:[%s7751_s12 + $0x10] sm:$0xff] }
  0xdc   :  { %v216_v39 = vmax.f32 %v204_v32, 0.0  ;;  %v6104_v61 = vpack.c.bf16 %v218_v51, %v217_v58  ;;  %v225_v32 = vld [vmem:[%s7751_s12 + $0x30] sm:$0xff]  ;;  %v6214_v51 = vcombine.high %v1010_v46, %v1014_v48  ;;  %v6236_v58 = vcombine.low %v1002_v54, %v1006_v56 }
  0xdd   :  { %v4685_v37 = vcombine.high %v221_v30, %v225_v32 }
  0xde   :  { %v6074_v41 = vpack.c.bf16 %v216_v39, %v215_v38  ;;  %v4684_v39 = vcombine.low %v221_v30, %v225_v32  ;;  %7935 = vst [vmem:[#allocation10_spill] sm:$0xff] %v6214_v51  ;;  %7936 = vst [vmem:[#allocation11_spill] sm:$0xff] %v6236_v58  ;;  %v1004_v30 = vld [vmem:[%s7933_s0 + $0x18] sm:$0xff] }
  0xdf   :  { %v1008_v32 = vld [vmem:[%s7933_s0 + $0x38] sm:$0xff] }
  0xe0   :  { %680 = vmatmul.mubr.bf16.vlgmr.msra.gmra.mxu0 %v6074_v41  ;;  %733 = vmatmul.mubr.bf16.vlgmr.msra.gmra.mxu1 %v6074_v41 }
  0xe1   :  { %754 = vmatpush1.bf16.msra.mxu0 %v4740_v19  ;;  %807 = vmatpush1.bf16.msra.mxu1 %v4742_v20  ;;  %v4674_v19 = vld [vmem:[%s7748_s9] ss:$0 sm:$0xff]  ;;  %v230_v20 = vld [vmem:[%s7751_s12 + $0x58] sm:$0xff] }
  0xe2   :  { %755 = vmatprep.subr.bf16.mxu0 %v4733_v42  ;;  %808 = vmatprep.subr.bf16.mxu1 %v4735_v43  ;;  %v6150_v27 = vadd.f32 %v4674_v19, %v6055_v25  ;;  %v4695_v28 = vcombine.high %v230_v20, %v234_v21  ;;  %v6153_v29 = vadd.f32 %v4674_v19, %v6060_v31  ;;  %v226_v25 = vld [vmem:[%s7751_s12 + $0x38] sm:$0xff]  ;;  %v6184_v43 = vld [vmem:[%s7931_s10] sm:$0xff]  }
  0xe3   :  { %689 = vmatprep.mubr.bf16.mxu0 %v7772_v22  ;;  %742 = vmatprep.mubr.bf16.mxu1 %v7772_v22  ;;  %v4692_v31 = vcombine.low %v229_v17, %v233_v18  ;;  %v4694_v34 = vcombine.low %v230_v20, %v234_v21  ;;  %v4687_v38 = vcombine.high %v222_v33, %v226_v25 }
  0xe4   :  { %7929 = vst [vmem:[#allocation6_spill] sm:$0xff] %v6150_v27  ;;  %7930 = vst [vmem:[#allocation7_spill] sm:$0xff] %v6153_v29  ;;  %v7771_v35 = vmax.f32 %v6150_v27, 0.0  ;;  %v7770_v36 = vmax.f32 %v6153_v29, 0.0  ;;  %v4686_v40 = vcombine.low %v222_v33, %v226_v25 }
  0xe5   :  { %756 = vmatpush1.bf16.msra.mxu0 %v4732_v49  ;;  %809 = vmatpush1.bf16.msra.mxu1 %v4734_v50  ;;  %7932 = vst [vmem:[#allocation8_spill] sm:$0xff] %v6184_v43  ;;  %v6210_v49 = vcombine.low %v1009_v44, %v1013_v45  ;;  %v6212_v50 = vcombine.low %v1010_v46, %v1014_v48  ;;  %v6347_v44 = vld [vmem:[%s7945_s7 + $0x38] sm:$0xff]   ;;  %v6357_v46 = vld [vmem:[%s7945_s7 + $0x70] sm:$0xff]  }
  0xe6   :  { %757 = vmatprep.subr.bf16.mxu0 %v4725_v52  ;;  %810 = vmatprep.subr.bf16.mxu1 %v4727_v53  ;;  %v6173_v42 = vpack.c.bf16 %v7770_v36, %v7771_v35  ;;  %v1001_v52 = vld [vmem:[%s7933_s0] sm:$0xff]  ;;  %7948 = vst [vmem:[#allocation22_spill] sm:$0xff] %v6347_v44  ;;  %v6352_v45 = vld [vmem:[%s7945_s7 + $0xb8] sm:$0xff]   ;;  %7950 = vst [vmem:[#allocation24_spill] sm:$0xff] %v6357_v46 }
  0xe7   :  { %7934 = vst [vmem:[#allocation9_spill] sm:$0xff] %v6212_v50  ;;  %v1005_v53 = vld [vmem:[%s7933_s0 + $0x20] sm:$0xff]  ;;  %7949 = vst [vmem:[#allocation23_spill] sm:$0xff] %v6352_v45  ;;  %v6362_v48 = vld [vmem:[%s7945_s7 + $0xf0] sm:$0xff]  }
  0xe8   :  { %690 = vmatmul.mubr.bf16.gmra.mxu0 %v6104_v61  ;;  %743 = vmatmul.mubr.bf16.gmra.mxu1 %v6104_v61  ;;  %v6229_v55 = vcombine.high %v1001_v52, %v1005_v53  ;;  %v6234_v57 = vcombine.low %v1001_v52, %v1005_v53  ;;  %7951 = vst [vmem:[#allocation25_spill] sm:$0xff] %v6362_v48  ;;  %v6373_v52 = vld [vmem:[%s7945_s7 + $0x30] sm:$0xff]   ;;  %v6485_v36 = vld [vmem:[%s7945_s7 + $0x48] sm:$0xff]  }
  0xe9   :  { %758 = vmatpush1.bf16.msra.mxu0 %v4724_v59  ;;  %811 = vmatpush1.bf16.msra.mxu1 %v4726_v60  ;;  %v6238_v59 = vcombine.high %v1002_v54, %v1006_v56  ;;  %v1011_v60 = vld [vmem:[%s7933_s0 + $0x50] sm:$0xff]  ;;  %7952 = vst [vmem:[#allocation26_spill] sm:$0xff] %v6373_v52  ;;  %v6385_v54 = vld [vmem:[%s7945_s7 + $0x68] sm:$0xff]   ;;  %7970 = vst [vmem:[#allocation44_spill] sm:$0xff] %v6485_v36 }
  0xea   :  { %759 = vmatprep.subr.bf16.mxu0 %v4717_v62  ;;  %812 = vmatprep.subr.bf16.mxu1 %v4719_v63  ;;  %v1012_v62 = vld [vmem:[%s7933_s0 + $0x58] sm:$0xff]  ;;  %v6378_v53 = vld [vmem:[%s7945_s7 + $0xb0] sm:$0xff]   ;;  %7954 = vst [vmem:[#allocation28_spill] sm:$0xff] %v6385_v54  ;;  %v6390_v56 = vld [vmem:[%s7945_s7 + $0xe8] sm:$0xff]  }
  0xeb   :  { %785 = vmatprep.mubr.bf16.mxu0 %v7772_v22  ;;  %838 = vmatprep.mubr.bf16.mxu1 %v7772_v22  ;;  %7937 = vst [vmem:[#allocation12_spill] sm:$0xff] %v6238_v59  ;;  %v6260_v2 = vcombine.low %v1012_v62, %v1016_v0  ;;  %v6262_v3 = vcombine.high %v1012_v62, %v1016_v0  ;;  %7953 = vst [vmem:[#allocation27_spill] sm:$0xff] %v6378_v53  ;;  %v6409_v62 = vld [vmem:[%s7945_s7 + $0x60] sm:$0xff]   ;;  %v6490_v35 = vld [vmem:[%s7945_s7 + $0xc8] sm:$0xff]  }
  0xec   :  { %7955 = vst [vmem:[#allocation29_spill] sm:$0xff] %v6390_v56  ;;  %7958 = vst [vmem:[#allocation32_spill] sm:$0xff] %v6409_v62  ;;  %v6414_v0 = vld [vmem:[%s7945_s7 + $0xe0] sm:$0xff]  }
  0xed   :  { %760 = vmatpush1.bf16.msra.mxu0 %v4716_v4  ;;  %813 = vmatpush1.bf16.msra.mxu1 %v4718_v5  ;;  %7939 = vst [vmem:[#allocation14_spill] sm:$0xff] %v6260_v2  ;;  %7940 = vst [vmem:[#allocation15_spill] sm:$0xff] %v6262_v3 }
  0xee   :  { %761 = vmatprep.subr.bf16.mxu0 %v4709_v6  ;;  %814 = vmatprep.subr.bf16.mxu1 %v4711_v7  ;;  %7959 = vst [vmem:[#allocation33_spill] sm:$0xff] %v6414_v0  ;;  %7971 = vst [vmem:[#allocation45_spill] sm:$0xff] %v6490_v35 }
  0xf1   :  { %762 = vmatpush1.bf16.msra.mxu0 %v4708_v13  ;;  %815 = vmatpush1.bf16.msra.mxu1 %v4710_v14 }
  0xf2   :  { %763 = vmatprep.subr.bf16.mxu0 %v4701_v15  ;;  %816 = vmatprep.subr.bf16.mxu1 %v4703_v16 }
  0xf5   :  { %764 = vmatpush1.bf16.msra.mxu0 %v4700_v23  ;;  %817 = vmatpush1.bf16.msra.mxu1 %v4702_v24 }
  0xf6   :  { %765 = vmatprep.subr.bf16.mxu0 %v4693_v26  ;;  %818 = vmatprep.subr.bf16.mxu1 %v4695_v28  ;;  %v1003_v26 = vld [vmem:[%s7933_s0 + $0x10] sm:$0xff] }
  0xf7   :  { %v1007_v28 = vld [vmem:[%s7933_s0 + $0x30] sm:$0xff] }
  0xf9   :  { %766 = vmatpush1.bf16.msra.mxu0 %v4692_v31  ;;  %819 = vmatpush1.bf16.msra.mxu1 %v4694_v34  ;;  %v6310_v31 = vcombine.high %v1003_v26, %v1007_v28  ;;  %v6312_v34 = vcombine.high %v1004_v30, %v1008_v32 }
  0xfa   :  { %767 = vmatprep.subr.bf16.mxu0 %v4685_v37  ;;  %820 = vmatprep.subr.bf16.mxu1 %v4687_v38  ;;  %v6320_v37 = vcombine.low %v1003_v26, %v1007_v28  ;;  %v6322_v38 = vcombine.low %v1004_v30, %v1008_v32  ;;  %v6440_v26 = vld [vmem:[%s7945_s7 + $0xd8] sm:$0xff]   ;;  %v6459_v32 = vld [vmem:[%s7945_s7 + $0x50] sm:$0xff]  }
  0xfb   :  { %7941 = vst [vmem:[#allocation16_spill] sm:$0xff] %v6310_v31  ;;  %7942 = vst [vmem:[#allocation17_spill] sm:$0xff] %v6312_v34  ;;  %v6447_v28 = vld [vmem:[%s7945_s7 + $0x18] sm:$0xff]  }
  0xfc   :  { %7943 = vst [vmem:[#allocation18_spill] sm:$0xff] %v6320_v37  ;;  %7944 = vst [vmem:[#allocation19_spill] sm:$0xff] %v6322_v38  ;;  %v6452_v30 = vld [vmem:[%s7945_s7 + $0x98] sm:$0xff]  }
  0xfd   :  { %768 = vmatpush1.bf16.msra.mxu0 %v4684_v39  ;;  %821 = vmatpush1.bf16.msra.mxu1 %v4686_v40  ;;  %v6329_v39 = vld [vmem:[%s7945_s7 + $0x78] sm:$0xff]   ;;  %7963 = vst [vmem:[#allocation37_spill] sm:$0xff] %v6440_v26  ;;  %7964 = vst [vmem:[#allocation38_spill] sm:$0xff] %v6447_v28 }
  0xfe   :  { %5330 = vmatprep.subr.bf16.mxu0 %v6173_v42  ;;  %1118 = vmatprep.subr.bf16.mxu1 %v6205_v47  ;;  %7946 = vst [vmem:[#allocation20_spill] sm:$0xff] %v6329_v39  ;;  %v6334_v40 = vld [vmem:[%s7945_s7 + $0xf8] sm:$0xff]   ;;  %7965 = vst [vmem:[#allocation39_spill] sm:$0xff] %v6452_v30 }
  0xff   :  { %7947 = vst [vmem:[#allocation21_spill] sm:$0xff] %v6334_v40  ;;  %7966 = vst [vmem:[#allocation40_spill] sm:$0xff] %v6459_v32 }
 0x100   :  { %786 = vmatmul.mubr.bf16.vlgmr.msra.gmra.mxu0 %v6074_v41  ;;  %839 = vmatmul.mubr.bf16.vlgmr.msra.gmra.mxu1 %v6074_v41  ;;  %v5545_v41 = vld [vmem:[%s7931_s10 + $0x8] sm:$0xff]  }
 0x101   :  { %5331 = vmatpush3.bf16.msra.mxu0 %v6173_v42  ;;  %795 = vmatprep.mubr.bf16.mxu0 %v7772_v22 }
 0x102   :  { %848 = vmatprep.mubr.bf16.mxu1 %v7772_v22  ;;  %1171 = vmatprep.subr.bf16.mxu0 %v6214_v51 }
 0x103   :  { %1119 = vmatpush1.bf16.msra.mxu1 %v6210_v49 }
 0x104   :  { %1120 = vmatprep.subr.bf16.mxu1 %v6229_v55 }
 0x107   :  { %1121 = vmatpush1.bf16.msra.mxu1 %v6234_v57 }
 0x108   :  { %796 = vmatmul.mubr.bf16.gmra.mxu0 %v6104_v61  ;;  %849 = vmatmul.mubr.bf16.gmra.mxu1 %v6104_v61  ;;  %v1015_v61 = vld [vmem:[%s7933_s0 + $0x70] sm:$0xff] }
 0x109   :  { %5332 = vmatprep.mubr.msk.bf16.mxu0 %vm94_vm3, %v6184_v43  ;;  %1138 = vmatprep.mubr.bf16.mxu1 %v7772_v22  ;;  %v6253_v63 = vcombine.high %v1011_v60, %v1015_v61  ;;  %v6258_v1 = vcombine.low %v1011_v60, %v1015_v61  ;;  %v6397_v60 = vld [vmem:[%s7945_s7 + $0x28] sm:$0xff]  }
 0x10a   :  { %7956 = vst [vmem:[#allocation30_spill] sm:$0xff] %v6397_v60  ;;  %v6402_v61 = vld [vmem:[%s7945_s7 + $0xa8] sm:$0xff]  }
 0x10b   :  { %7938 = vst [vmem:[#allocation13_spill] sm:$0xff] %v6258_v1  ;;  %1224 = vmatprep.subr.bf16.mxu1 %v6253_v63  ;;  %7957 = vst [vmem:[#allocation31_spill] sm:$0xff] %v6402_v61 }
 0x110   :  { %5333 = vmatmul.mubr.msk.bf16.vlgmr.msra.gmra.mxu0 %vm94_vm3, %v5545_v41 }
 0x111   :  { %1191 = vmatprep.mubr.bf16.mxu0 %v7772_v22  ;;  %1172 = vmatpush1.bf16.msra.mxu0 %v6212_v50 }
 0x112   :  { %1173 = vmatprep.subr.bf16.mxu0 %v6238_v59 }
 0x115   :  { %1174 = vmatpush1.bf16.msra.mxu0 %v6236_v58 }
 0x116   :  { %1277 = vmatprep.subr.bf16.mxu0 %v6262_v3 }
 0x1a0   :  { %v6266_v4 = vpop.f32.mrf.mxu0 }
 0x1a2   :  { %v6268_v5 = vpop.f32.mrf.mxu0 }
 0x1a4   :  { %v6270_v6 = vpop.f32.mrf.mxu0 }
 0x1a6   :  { %v6272_v7 = vpop.f32.mrf.mxu0 }
 0x1a8   :  { %v6274_v9 = vpop.f32.mrf.mxu0 }
 0x1aa   :  { %v6276_v10 = vpop.f32.mrf.mxu0 }
 0x1ac   :  { %v6278_v11 = vpop.f32.mrf.mxu0 }
 0x1ae   :  { %v6280_v12 = vpop.f32.mrf.mxu0 }
 0x1c0   :  { %v6282_v13 = vpop.f32.mrf.mxu0 }
 0x1c2   :  { %v6284_v14 = vpop.f32.mrf.mxu0 }
 0x1c4   :  { %v6286_v15 = vpop.f32.mrf.mxu0 }
 0x1c6   :  { %v6288_v16 = vpop.f32.mrf.mxu0 }
 0x1c8   :  { %v6290_v17 = vpop.f32.mrf.mxu0 }
 0x1ca   :  { %v6292_v18 = vpop.f32.mrf.mxu0 }
 0x1cc   :  { %v6294_v19 = vpop.f32.mrf.mxu0 }
 0x1ce   :  { %v6296_v20 = vpop.f32.mrf.mxu0 }
 0x1d0   :  { %v5334_v21 = vpop.f32.mrf.mxu0 }
 0x1d2   :  { %v986_v23 = vpop.f32.mrf.mxu0 }
 0x1d4   :  { %v5335_v24 = vpop.f32.mrf.mxu0 }
 0x1d5   :  { %v1018_v41 = vpack.c.bf16 %v5335_v24, %v5334_v21  ;;  %v6423_v21 = vld [vmem:[%s7945_s7 + $0x20] sm:$0xff]   ;;  %v6435_v24 = vld [vmem:[%s7945_s7 + $0x58] sm:$0xff]  }
 0x1d6   :  { %v989_v33 = vpop.f32.mrf.mxu0  ;;  %7960 = vst [vmem:[#allocation34_spill] sm:$0xff] %v6423_v21  ;;  %7962 = vst [vmem:[#allocation36_spill] sm:$0xff] %v6435_v24 }
 0x1d7   :  { %v1017_v25 = vpack.c.bf16 %v989_v33, %v986_v23  ;;  %v6428_v23 = vld [vmem:[%s7945_s7 + $0xa0] sm:$0xff]   ;;  %v6464_v33 = vld [vmem:[%s7945_s7 + $0xd0] sm:$0xff]  }
 0x1d8   :  { %7961 = vst [vmem:[#allocation35_spill] sm:$0xff] %v6428_v23  ;;  %7967 = vst [vmem:[#allocation41_spill] sm:$0xff] %v6464_v33 }
 0x1d9   :  { %4765 = vmatmul.mubr.msk.bf16.vlgmr.msra.gmra.mxu1 %vm1099_vm4, %v1017_v25  ;;  %4767 = vmatmul.mubr.msk.bf16.vlgmr.msra.gmra.mxu0 %vm1099_vm4, %v1017_v25 }
 0x1da   :  { %1148 = vmatprep.mubr.bf16.mxu1 %v7772_v22  ;;  %1201 = vmatprep.mubr.bf16.mxu0 %v7772_v22 }
 0x1db   :  { %1225 = vmatpush1.bf16.msra.mxu1 %v6258_v1  ;;  %1278 = vmatpush1.bf16.msra.mxu0 %v6260_v2 }
 0x1dc   :  { %1226 = vmatprep.subr.bf16.mxu1 %v6310_v31  ;;  %1279 = vmatprep.subr.bf16.mxu0 %v6312_v34 }
 0x1df   :  { %1227 = vmatpush1.bf16.msra.mxu1 %v6320_v37  ;;  %1280 = vmatpush1.bf16.msra.mxu0 %v6322_v38 }
 0x1e0   :  { %4907 = vmatprep.subr.bf16.mxu1 %v6329_v39  ;;  %4935 = vmatprep.subr.bf16.mxu0 %v6334_v40 }
 0x1e1   :  { %4766 = vmatmul.mubr.msk.bf16.gmra.mxu1 %vm1099_vm4, %v1018_v41  ;;  %4768 = vmatmul.mubr.msk.bf16.gmra.mxu0 %vm1099_vm4, %v1018_v41 }
 0x1e2   :  { %1244 = vmatprep.mubr.bf16.mxu1 %v7772_v22  ;;  %1297 = vmatprep.mubr.bf16.mxu0 %v7772_v22 }
 0x1e9   :  { %4769 = vmatmul.mubr.msk.bf16.vlgmr.msra.gmra.mxu1 %vm1099_vm4, %v1017_v25  ;;  %4771 = vmatmul.mubr.msk.bf16.vlgmr.msra.gmra.mxu0 %vm1099_vm4, %v1017_v25  ;;  %v6473_v25 = vld [vmem:[%s7945_s7 + $0x10] sm:$0xff]  }
 0x1ea   :  { %1254 = vmatprep.mubr.bf16.mxu1 %v7772_v22  ;;  %1307 = vmatprep.mubr.bf16.mxu0 %v7772_v22  ;;  %7968 = vst [vmem:[#allocation42_spill] sm:$0xff] %v6473_v25  ;;  %v6495_v22 = vld [vmem:[%s7945_s7 + $0x8] sm:$0xff]  }
 0x1eb   :  { %4908 = vmatpush3.bf16.msra.mxu1 %v6347_v44  ;;  %4936 = vmatpush3.bf16.msra.mxu0 %v6352_v45  ;;  %7972 = vst [vmem:[#allocation46_spill] sm:$0xff] %v6495_v22 }
 0x1ec   :  { %4909 = vmatprep.subr.bf16.mxu1 %v6357_v46  ;;  %4937 = vmatprep.subr.bf16.mxu0 %v6362_v48  ;;  %v6575_v48 = vld [vmem:[%s7752_s13] sm:$0xff] }
 0x1ef   :  { %4910 = vmatpush3.bf16.msra.mxu1 %v6373_v52  ;;  %4938 = vmatpush3.bf16.msra.mxu0 %v6378_v53 }
 0x1f0   :  { %4911 = vmatprep.subr.bf16.mxu1 %v6385_v54  ;;  %4939 = vmatprep.subr.bf16.mxu0 %v6390_v56 }
 0x1f1   :  { %4770 = vmatmul.mubr.msk.bf16.gmra.mxu1 %vm1099_vm4, %v1018_v41  ;;  %4772 = vmatmul.mubr.msk.bf16.gmra.mxu0 %vm1099_vm4, %v1018_v41  ;;  %v6478_v41 = vld [vmem:[%s7945_s7 + $0x90] sm:$0xff]  }
 0x1f2   :  { %7969 = vst [vmem:[#allocation43_spill] sm:$0xff] %v6478_v41 }
 0x1f3   :  { %4912 = vmatpush3.bf16.msra.mxu1 %v6397_v60  ;;  %4940 = vmatpush3.bf16.msra.mxu0 %v6402_v61 }
 0x1f4   :  { %4913 = vmatprep.subr.bf16.mxu1 %v6409_v62  ;;  %4941 = vmatprep.subr.bf16.mxu0 %v6414_v0 }
 0x1f7   :  { %4914 = vmatpush3.bf16.msra.mxu1 %v6423_v21  ;;  %4942 = vmatpush3.bf16.msra.mxu0 %v6428_v23  ;;  %v287_v21 = vlaneseq }
 0x1f8   :  { %4915 = vmatprep.subr.bf16.mxu1 %v6435_v24  ;;  %4943 = vmatprep.subr.bf16.mxu0 %v6440_v26 }
 0x1f9   :  { %v6560_v62 = vshrl.u32 %v287_v21, 7 }
 0x1fb   :  { %4916 = vmatpush3.bf16.msra.mxu1 %v6447_v28  ;;  %4944 = vmatpush3.bf16.msra.mxu0 %v6452_v30  ;;  %v293_v60 = vsub.s32 1, %v6560_v62  ;;  %v301_v56 = vsub.s32 3, %v6560_v62  ;;  %v6567_v54 = vsub.s32 0, %v6560_v62  ;;  %v297_v53 = vsub.s32 2, %v6560_v62 }
 0x1fc   :  { %4917 = vmatprep.subr.bf16.mxu1 %v6459_v32  ;;  %4945 = vmatprep.subr.bf16.mxu0 %v6464_v33 }
 0x1fd   :  { %v294_v45 = vrot.slane %v6575_v48, %v293_v60  ;;  %v302_v44 = vrot.slane %v6575_v48, %v301_v56  ;;  %v290_v40 = vrot.slane %v6575_v48, %v6567_v54  ;;  %v298_v39 = vrot.slane %v6575_v48, %v297_v53 }
 0x1ff   :  { %4918 = vmatpush3.bf16.msra.mxu1 %v6473_v25  ;;  %4946 = vmatpush3.bf16.msra.mxu0 %v6478_v41  ;;  %v6509_v41 = vld [vmem:[%s7945_s7 + $0x40] sm:$0xff]   ;;  %v6583_v34 = vadd.f32 %v6270_v6, %v290_v40  ;;  %v6588_v3 = vadd.f32 %v6268_v5, %v294_v45  ;;  %v6593_v56 = vadd.f32 %v6272_v7, %v294_v45 }
 0x200   :  { %4919 = vmatprep.subr.bf16.mxu1 %v6485_v36  ;;  %4947 = vmatprep.subr.bf16.mxu0 %v6490_v35  ;;  %7974 = vst [vmem:[#allocation48_spill] sm:$0xff] %v6509_v41  ;;  %v6514_v25 = vld [vmem:[%s7945_s7 + $0xc0] sm:$0xff]   ;;  %v6538_v35 = vld [vmem:[%s7945_s7 + $0x1f8] sm:$0xff]   ;;  %v6598_v53 = vadd.f32 %v6266_v4, %v290_v40 }
 0x201   :  { %7975 = vst [vmem:[#allocation49_spill] sm:$0xff] %v6514_v25  ;;  %v6519_v36 = vld [vmem:[%s7945_s7] sm:$0xff]   ;;  %7979 = vst [vmem:[#allocation53_spill] sm:$0xff] %v6538_v35 }
 0x202   :  { %7976 = vst [vmem:[#allocation50_spill] sm:$0xff] %v6519_v36  ;;  %7980 = vst [vmem:[#allocation54_spill] sm:$0xff] %v6583_v34 }
 0x203   :  { %4920 = vmatpush3.bf16.msra.mxu1 %v6495_v22  ;;  %4948 = vmatpush3.bf16.msra.mxu0 %v6500_v8  ;;  %v6524_v22 = vld [vmem:[%s7945_s7 + $0x80] sm:$0xff]   ;;  %v6533_v8 = vld [vmem:[%s7945_s7 + $0x178] sm:$0xff]   ;;  %7982 = vst [vmem:[#allocation56_spill] sm:$0xff] %v6588_v3  ;;  %7984 = vst [vmem:[#allocation58_spill] sm:$0xff] %v6593_v56 }
 0x204   :  { %7977 = vst [vmem:[#allocation51_spill] sm:$0xff] %v6524_v22  ;;  %4921 = vmatprep.subr.bf16.mxu1 %v6509_v41  ;;  %4949 = vmatprep.subr.bf16.mxu0 %v6514_v25  ;;  %7978 = vst [vmem:[#allocation52_spill] sm:$0xff] %v6533_v8  ;;  %v734_v41 = vpop.f32.mrf.mxu1 }
 0x205   :  { %7986 = vst [vmem:[#allocation60_spill] sm:$0xff] %v6598_v53  ;;  %v6600_v59 = vadd.f32 %v734_v41, %v298_v39 }
 0x206   :  { %v736_v25 = vpop.f32.mrf.mxu1 }
 0x207   :  { %4922 = vmatpush3.bf16.msra.mxu1 %v6519_v36  ;;  %4950 = vmatpush3.bf16.msra.mxu0 %v6524_v22  ;;  %v6590_v60 = vadd.f32 %v736_v25, %v302_v44  ;;  %7987 = vst [vmem:[#allocation61_spill] sm:$0xff] %v6600_v59 }
 0x208   :  { %4963 = vmatprep.subr.bf16.mxu1 %v6533_v8  ;;  %4991 = vmatprep.subr.bf16.mxu0 %v6538_v35  ;;  %v738_v33 = vpop.f32.mrf.mxu1 }
 0x209   :  { %v6585_v31 = vadd.f32 %v738_v33, %v298_v39  ;;  %7983 = vst [vmem:[#allocation57_spill] sm:$0xff] %v6590_v60 }
 0x20a   :  { %v740_v36 = vpop.f32.mrf.mxu1 }
 0x20b   :  { %7981 = vst [vmem:[#allocation55_spill] sm:$0xff] %v6585_v31  ;;  %v6595_v58 = vadd.f32 %v740_v36, %v302_v44 }
 0x20c   :  { %v6542_v32 = vpop.f32.mrf.mxu1 }
 0x20d   :  { %7985 = vst [vmem:[#allocation59_spill] sm:$0xff] %v6595_v58 }
 0x20e   :  { %v746_v22 = vpop.f32.mrf.mxu1 }
 0x210   :  { %v6544_v30 = vpop.f32.mrf.mxu1 }
 0x212   :  { %v6546_v28 = vpop.f32.mrf.mxu1 }
 0x214   :  { %v6548_v26 = vpop.f32.mrf.mxu1 }
 0x216   :  { %v6550_v24 = vpop.f32.mrf.mxu1 }
 0x218   :  { %v6552_v23 = vpop.f32.mrf.mxu1 }
 0x21a   :  { %v6554_v8 = vpop.f32.mrf.mxu1 }
 0x21c   :  { %v6556_v35 = vpop.f32.mrf.mxu1 }
 0x21e   :  { %v6558_v0 = vpop.f32.mrf.mxu1 }
 0x220   :  { %v6562_v61 = vpop.f32.mrf.mxu1 }
 0x222   :  { %v6570_v52 = vpop.f32.mrf.mxu1 }
 0x299   :  { %v1140_v21 = vpop.f32.mrf.mxu1  ;;  %v1193_v46 = vpop.f32.mrf.mxu0 }
 0x29a   :  { %v1350_v29 = vmul.f32 %v1140_v21, %v6598_v53  ;;  %v1352_v4 = vmul.f32 %v1193_v46, %v6600_v59  ;;  %v6623_v46 = vld [vmem:[%s7945_s7 + $0x170] sm:$0xff]   ;;  %v6643_v59 = vadd.f32 %v6544_v30, %v298_v39 }
 0x29b   :  { %v1142_v38 = vpop.f32.mrf.mxu1  ;;  %v1195_v37 = vpop.f32.mrf.mxu0  ;;  %7988 = vst [vmem:[#allocation62_spill] sm:$0xff] %v6623_v46 }
 0x29c   :  { %v1351_v5 = vmul.f32 %v1142_v38, %v6588_v3  ;;  %v1353_v25 = vmul.f32 %v1195_v37, %v6590_v60  ;;  %v6618_v37 = vld [vmem:[%s7945_s7 + $0x1b8] sm:$0xff]   ;;  %7994 = vst [vmem:[#allocation68_spill] sm:$0xff] %v6643_v59 }
 0x29d   :  { %v1144_v2 = vpop.f32.mrf.mxu1  ;;  %v1197_v1 = vpop.f32.mrf.mxu0 }
 0x29e   :  { %v1358_v6 = vmul.f32 %v1144_v2, %v6583_v34  ;;  %v1360_v33 = vmul.f32 %v1197_v1, %v6585_v31  ;;  %v6613_v1 = vld [vmem:[%s7945_s7 + $0x138] sm:$0xff]  }
 0x29f   :  { %v1146_v50 = vpop.f32.mrf.mxu1  ;;  %v1199_v51 = vpop.f32.mrf.mxu0 }
 0x2a0   :  { %v1359_v7 = vmul.f32 %v1146_v50, %v6593_v56  ;;  %v1361_v36 = vmul.f32 %v1199_v51, %v6595_v58  ;;  %v1510_v50 = vpack.c.bf16 %v1358_v6, %v1350_v29  ;;  %v1512_v51 = vpack.c.bf16 %v1360_v33, %v1352_v4 }
 0x2a1   :  { %v1150_v41 = vpop.f32.mrf.mxu1  ;;  %v1203_v27 = vpop.f32.mrf.mxu0  ;;  %v6634_v29 = vadd.f32 %v6276_v10, %v294_v45  ;;  %v6636_v6 = vadd.f32 %v746_v22, %v302_v44  ;;  %v6639_v33 = vadd.f32 %v6278_v11, %v290_v40  ;;  %v317_v22 = vsub.s32 7, %v6560_v62  ;;  %v6657_v10 = vld [vmem:[%s7945_s7 + $0x130] sm:$0xff]  }
 0x2a2   :  { %v1511_v43 = vpack.c.bf16 %v1359_v7, %v1351_v5  ;;  %v1513_v2 = vpack.c.bf16 %v1361_v36, %v1353_v25  ;;  %v6628_v5 = vld [vmem:[%s7945_s7 + $0x1f0] sm:$0xff]   ;;  %v6631_v25 = vadd.f32 %v6274_v9, %v290_v40  ;;  %v309_v7 = vsub.s32 5, %v6560_v62  ;;  %7997 = vst [vmem:[#allocation71_spill] sm:$0xff] %v6657_v10 }
 0x2a3   :  { %v1152_v38 = vpop.f32.mrf.mxu1  ;;  %v1205_v21 = vpop.f32.mrf.mxu0  ;;  %7989 = vst [vmem:[#allocation63_spill] sm:$0xff] %v6628_v5  ;;  %7991 = vst [vmem:[#allocation65_spill] sm:$0xff] %v6634_v29  ;;  %v6649_v9 = vadd.f32 %v6546_v28, %v302_v44  ;;  %v6660_v11 = vadd.f32 %v6542_v32, %v298_v39  ;;  %v6669_v28 = vld [vmem:[%s7945_s7 + $0x1b0] sm:$0xff]   ;;  %v6674_v39 = vld [vmem:[%s7945_s7 + $0x168] sm:$0xff]  }
 0x2a4   :  { %7990 = vst [vmem:[#allocation64_spill] sm:$0xff] %v6631_v25  ;;  %1942 = vmatprep.mubr.bf16.mxu1 %v1511_v43  ;;  %1991 = vmatprep.mubr.bf16.mxu0 %v1513_v2  ;;  %7992 = vst [vmem:[#allocation66_spill] sm:$0xff] %v6636_v6  ;;  %v6646_v43 = vadd.f32 %v6280_v12, %v294_v45  ;;  %v1367_v12 = vmul.f32 %v1152_v38, %v6634_v29 }
 0x2a5   :  { %7993 = vst [vmem:[#allocation67_spill] sm:$0xff] %v6639_v33  ;;  %v1154_v36 = vpop.f32.mrf.mxu1  ;;  %v1207_v4 = vpop.f32.mrf.mxu0  ;;  %1943 = vmatmul.mubr.bf16.vlgmr.msra.gmra.mxu1 %v1510_v50  ;;  %1992 = vmatmul.mubr.bf16.vlgmr.msra.gmra.mxu0 %v1512_v51  ;;  %7996 = vst [vmem:[#allocation70_spill] sm:$0xff] %v6649_v9  ;;  %v1369_v30 = vmul.f32 %v1205_v21, %v6636_v6  ;;  %v6681_v51 = vrot.slane %v6575_v48, %v309_v7 }
 0x2a6   :  { %7995 = vst [vmem:[#allocation69_spill] sm:$0xff] %v6646_v43  ;;  %4964 = vmatpush3.bf16.msra.mxu1 %v6613_v1  ;;  %4992 = vmatpush3.bf16.msra.mxu0 %v6618_v37  ;;  %7998 = vst [vmem:[#allocation72_spill] sm:$0xff] %v6660_v11  ;;  %v1374_v40 = vmul.f32 %v1154_v36, %v6639_v33  ;;  %v1376_v32 = vmul.f32 %v1207_v4, %v6643_v59 }
 0x2a7   :  { %v1156_v44 = vpop.f32.mrf.mxu1  ;;  %v1209_v45 = vpop.f32.mrf.mxu0  ;;  %4965 = vmatprep.subr.bf16.mxu1 %v6623_v46  ;;  %4993 = vmatprep.subr.bf16.mxu0 %v6628_v5  ;;  %7999 = vst [vmem:[#allocation73_spill] sm:$0xff] %v6669_v28  ;;  %8000 = vst [vmem:[#allocation74_spill] sm:$0xff] %v6674_v39  ;;  %v1366_v38 = vmul.f32 %v1150_v41, %v6631_v25  ;;  %v6691_v46 = vld [vmem:[%s7945_s7 + $0x1e8] sm:$0xff]   ;;  %v6694_v21 = vrot.slane %v6575_v48, %v317_v22  ;;  %v6713_v22 = vld [vmem:[%s7945_s7 + $0x160] sm:$0xff]  }
 0x2a8   :  { %v1375_v2 = vmul.f32 %v1156_v44, %v6646_v43  ;;  %v1377_v50 = vmul.f32 %v1209_v45, %v6649_v9  ;;  %8001 = vst [vmem:[#allocation75_spill] sm:$0xff] %v6691_v46  ;;  %v1368_v4 = vmul.f32 %v1203_v27, %v6660_v11  ;;  %v6701_v41 = vld [vmem:[%s7945_s7 + $0x128] sm:$0xff]   ;;  %8004 = vst [vmem:[#allocation78_spill] sm:$0xff] %v6713_v22 }
 0x2a9   :  { %v6684_v36 = vpop.f32.mrf.mxu1  ;;  %v6686_v5 = vpop.f32.mrf.mxu0  ;;  %8002 = vst [vmem:[#allocation76_spill] sm:$0xff] %v6701_v41  ;;  %v1518_v7 = vpack.c.bf16 %v1374_v40, %v1366_v38  ;;  %v6708_v27 = vld [vmem:[%s7945_s7 + $0x1a8] sm:$0xff]   ;;  %v6718_v40 = vld [vmem:[%s7945_s7 + $0x1e0] sm:$0xff]   ;;  %v6735_v38 = vadd.f32 %v6288_v16, %v6681_v51 }
 0x2aa   :  { %v1519_v44 = vpack.c.bf16 %v1375_v2, %v1367_v12  ;;  %v1521_v45 = vpack.c.bf16 %v1377_v50, %v1369_v30  ;;  %4966 = vmatpush3.bf16.msra.mxu1 %v6657_v10  ;;  %4994 = vmatpush3.bf16.msra.mxu0 %v6669_v28  ;;  %8003 = vst [vmem:[#allocation77_spill] sm:$0xff] %v6708_v27  ;;  %8005 = vst [vmem:[#allocation79_spill] sm:$0xff] %v6718_v40  ;;  %v6752_v16 = vld [vmem:[%s7945_s7 + $0x1a0] sm:$0xff]  }
 0x2ab   :  { %v1248_v25 = vpop.f32.mrf.mxu1  ;;  %v1301_v9 = vpop.f32.mrf.mxu0  ;;  %4967 = vmatprep.subr.bf16.mxu1 %v6674_v39  ;;  %v1520_v12 = vpack.c.bf16 %v1376_v32, %v1368_v4  ;;  %v6722_v30 = vadd.f32 %v6284_v14, %v6681_v51  ;;  %4995 = vmatprep.subr.bf16.mxu0 %v6691_v46  ;;  %v6731_v32 = vadd.f32 %v6550_v24, %v6694_v21  ;;  %v6745_v14 = vld [vmem:[%s7945_s7 + $0x120] sm:$0xff]  }
 0x2ac   :  { %1950 = vmatprep.mubr.bf16.mxu1 %v1519_v44  ;;  %1999 = vmatprep.mubr.bf16.mxu0 %v1521_v45  ;;  %8008 = vst [vmem:[#allocation82_spill] sm:$0xff] %v6735_v38  ;;  %v6739_v4 = vadd.f32 %v6554_v8, %v6694_v21  ;;  %8010 = vst [vmem:[#allocation84_spill] sm:$0xff] %v6745_v14  ;;  %v6757_v8 = vld [vmem:[%s7945_s7 + $0x158] sm:$0xff]  }
 0x2ad   :  { %8006 = vst [vmem:[#allocation80_spill] sm:$0xff] %v6722_v30  ;;  %v6725_v2 = vpop.f32.mrf.mxu1  ;;  %v6727_v50 = vpop.f32.mrf.mxu0  ;;  %1951 = vmatmul.mubr.bf16.gmra.mxu1 %v1518_v7  ;;  %8007 = vst [vmem:[#allocation81_spill] sm:$0xff] %v6731_v32  ;;  %2000 = vmatmul.mubr.bf16.gmra.mxu0 %v1520_v12  ;;  %v1355_v45 = vmul.f32 %v1248_v25, %v6722_v30  ;;  %v1357_v7 = vmul.f32 %v1301_v9, %v6731_v32  ;;  %v6777_v25 = vld [vmem:[%s7945_s7 + $0x118] sm:$0xff]  }
 0x2ae   :  { %8009 = vst [vmem:[#allocation83_spill] sm:$0xff] %v6739_v4  ;;  %4968 = vmatpush3.bf16.msra.mxu1 %v6701_v41  ;;  %4996 = vmatpush3.bf16.msra.mxu0 %v6708_v27  ;;  %8011 = vst [vmem:[#allocation85_spill] sm:$0xff] %v6752_v16  ;;  %v6784_v9 = vld [vmem:[%s7945_s7 + $0x198] sm:$0xff]  }
 0x2af   :  { %v1252_v24 = vpop.f32.mrf.mxu1  ;;  %v1305_v44 = vpop.f32.mrf.mxu0  ;;  %4969 = vmatprep.subr.bf16.mxu1 %v6713_v22  ;;  %8012 = vst [vmem:[#allocation86_spill] sm:$0xff] %v6757_v8  ;;  %4997 = vmatprep.subr.bf16.mxu0 %v6718_v40  ;;  %v6767_v22 = vld [vmem:[%s7945_s7 + $0x1d8] sm:$0xff]   ;;  %8014 = vst [vmem:[#allocation88_spill] sm:$0xff] %v6777_v25  ;;  %v6857_v40 = vadd.f32 %v6296_v20, %v6681_v51  ;;  %v6879_v20 = vld [vmem:[%s7945_s7 + $0x180] sm:$0xff]  }
 0x2b0   :  { %v1363_v12 = vmul.f32 %v1252_v24, %v6735_v38  ;;  %v1365_v27 = vmul.f32 %v1305_v44, %v6739_v4  ;;  %8013 = vst [vmem:[#allocation87_spill] sm:$0xff] %v6767_v22  ;;  %8015 = vst [vmem:[#allocation89_spill] sm:$0xff] %v6784_v9  ;;  %v6795_v24 = vld [vmem:[%s7945_s7 + $0x1d0] sm:$0xff]  }
 0x2b1   :  { %v6769_v41 = vpop.f32.mrf.mxu1  ;;  %v6771_v28 = vpop.f32.mrf.mxu0  ;;  %8017 = vst [vmem:[#allocation91_spill] sm:$0xff] %v6795_v24  ;;  %8028 = vst [vmem:[#allocation102_spill] sm:$0xff] %v6857_v40 }
 0x2b2   :  { %v1515_v46 = vpack.c.bf16 %v1363_v12, %v1355_v45  ;;  %v1517_v39 = vpack.c.bf16 %v1365_v27, %v1357_v7  ;;  %4970 = vmatpush3.bf16.msra.mxu1 %v6745_v14  ;;  %4998 = vmatpush3.bf16.msra.mxu0 %v6752_v16  ;;  %v6789_v27 = vld [vmem:[%s7945_s7 + $0x150] sm:$0xff]   ;;  %v305_v12 = vsub.s32 4, %v6560_v62  ;;  %8032 = vst [vmem:[#allocation106_spill] sm:$0xff] %v6879_v20 }
 0x2b3   :  { %4971 = vmatprep.subr.bf16.mxu1 %v6757_v8  ;;  %8016 = vst [vmem:[#allocation90_spill] sm:$0xff] %v6789_v27  ;;  %4999 = vmatprep.subr.bf16.mxu0 %v6767_v22  ;;  %v1258_v44 = vpop.f32.mrf.mxu1  ;;  %v1311_v45 = vpop.f32.mrf.mxu0  ;;  %v6801_v7 = vld [vmem:[%s7945_s7 + $0x110] sm:$0xff]   ;;  %v6827_v8 = vld [vmem:[%s7945_s7 + $0x108] sm:$0xff]  }
 0x2b4   :  { %2040 = vmatprep.mubr.bf16.mxu1 %v1515_v46  ;;  %2089 = vmatprep.mubr.bf16.mxu0 %v1517_v39  ;;  %8018 = vst [vmem:[#allocation92_spill] sm:$0xff] %v6801_v7  ;;  %v6809_v46 = vld [vmem:[%s7945_s7 + $0x190] sm:$0xff]   ;;  %v6814_v39 = vld [vmem:[%s7945_s7 + $0x148] sm:$0xff]   ;;  %8022 = vst [vmem:[#allocation96_spill] sm:$0xff] %v6827_v8  ;;  %v306_v16 = vrot.slane %v6575_v48, %v305_v12 }
 0x2b5   :  { %8019 = vst [vmem:[#allocation93_spill] sm:$0xff] %v6809_v46  ;;  %8020 = vst [vmem:[#allocation94_spill] sm:$0xff] %v6814_v39  ;;  %v1313_v22 = vpop.f32.mrf.mxu0  ;;  %v6847_v12 = vld [vmem:[%s7945_s7 + $0x1c0] sm:$0xff]  }
 0x2b6   :  { %4972 = vmatpush3.bf16.msra.mxu1 %v6777_v25  ;;  %5000 = vmatpush3.bf16.msra.mxu0 %v6784_v9  ;;  %v313_v25 = vsub.s32 6, %v6560_v62  ;;  %v6821_v9 = vld [vmem:[%s7945_s7 + $0x1c8] sm:$0xff]   ;;  %8025 = vst [vmem:[#allocation99_spill] sm:$0xff] %v6847_v12 }
 0x2b7   :  { %4973 = vmatprep.subr.bf16.mxu1 %v6789_v27  ;;  %5001 = vmatprep.subr.bf16.mxu0 %v6795_v24  ;;  %8021 = vst [vmem:[#allocation95_spill] sm:$0xff] %v6821_v9  ;;  %v1260_v27 = vpop.f32.mrf.mxu1  ;;  %v6835_v62 = vld [vmem:[%s7945_s7 + $0x188] sm:$0xff]   ;;  %v1315_v4 = vpop.f32.mrf.mxu0 }
 0x2b8   :  { %8023 = vst [vmem:[#allocation97_spill] sm:$0xff] %v6835_v62  ;;  %v314_v24 = vrot.slane %v6575_v48, %v313_v25  ;;  %v6863_v48 = vld [vmem:[%s7945_s7 + $0x100] sm:$0xff]   ;;  %v6866_v25 = vadd.f32 %v6282_v13, %v306_v16  ;;  %v6886_v13 = vadd.f32 %v6292_v18, %v6681_v51 }
 0x2b9   :  { %8029 = vst [vmem:[#allocation103_spill] sm:$0xff] %v6863_v48 }
 0x2ba   :  { %4974 = vmatpush3.bf16.msra.mxu1 %v6801_v7  ;;  %5002 = vmatpush3.bf16.msra.mxu0 %v6809_v46  ;;  %v6840_v7 = vld [vmem:[%s7945_s7 + $0x140] sm:$0xff]   ;;  %v1262_v46 = vpop.f32.mrf.mxu1  ;;  %v6853_v14 = vadd.f32 %v6552_v23, %v314_v24  ;;  %8030 = vst [vmem:[#allocation104_spill] sm:$0xff] %v6866_v25  ;;  %8034 = vst [vmem:[#allocation108_spill] sm:$0xff] %v6886_v13  ;;  %v1371_v51 = vmul.f32 %v1258_v44, %v6886_v13 }
 0x2bb   :  { %4975 = vmatprep.subr.bf16.mxu1 %v6814_v39  ;;  %8024 = vst [vmem:[#allocation98_spill] sm:$0xff] %v6840_v7  ;;  %5003 = vmatprep.subr.bf16.mxu0 %v6821_v9  ;;  %v6850_v39 = vadd.f32 %v6286_v15, %v306_v16  ;;  %v6870_v15 = vadd.f32 %v6570_v52, %v6694_v21 }
 0x2bc   :  { %8027 = vst [vmem:[#allocation101_spill] sm:$0xff] %v6853_v14  ;;  %v1364_v52 = vmul.f32 %v6727_v50, %v6853_v14  ;;  %v6914_v44 = vadd.f32 %v6290_v17, %v306_v16  ;;  %v898_v17 = vld [vmem:[%s8041_s28 + $0x8] sm:$0xff] }
 0x2bd   :  { %8026 = vst [vmem:[#allocation100_spill] sm:$0xff] %v6850_v39  ;;  %8031 = vst [vmem:[#allocation105_spill] sm:$0xff] %v6870_v15  ;;  %v1362_v23 = vmul.f32 %v6725_v2, %v6850_v39  ;;  %v1379_v2 = vmul.f32 %v1262_v46, %v6857_v40 }
 0x2be   :  { %4976 = vmatpush3.bf16.msra.mxu1 %v6827_v8  ;;  %5004 = vmatpush3.bf16.msra.mxu0 %v6835_v62  ;;  %v6882_v8 = vadd.f32 %v6548_v26, %v314_v24  ;;  %v1354_v62 = vmul.f32 %v6684_v36, %v6866_v25  ;;  %v1381_v26 = vmul.f32 %v1315_v4, %v6870_v15 }
 0x2bf   :  { %4977 = vmatprep.subr.bf16.mxu1 %v6840_v7  ;;  %5005 = vmatprep.subr.bf16.mxu0 %v6847_v12  ;;  %v6894_v7 = vadd.f32 %v6558_v0, %v6694_v21  ;;  %v8036_v12 = vmov 0.0   ;;  %v1523_v21 = vpack.c.bf16 %v1379_v2, %v1371_v51  ;;  %v6908_v36 = vadd.f32 %v6294_v19, %v306_v16 }
 0x2c0   :  { %8033 = vst [vmem:[#allocation107_spill] sm:$0xff] %v6882_v8  ;;  %v1356_v18 = vmul.f32 %v6686_v5, %v6882_v8  ;;  %v1514_v50 = vpack.c.bf16 %v1362_v23, %v1354_v62  ;;  %v6911_v5 = vadd.f32 %v6562_v61, %v314_v24  ;;  %8039 = vst [vmem:[#allocation112_spill] sm:$0xff] %v6914_v44 }
 0x2c1   :  { %8035 = vst [vmem:[#allocation109_spill] sm:$0xff] %v6894_v7  ;;  %v1373_v46 = vmul.f32 %v1311_v45, %v6894_v7  ;;  %8037 = vst [vmem:[#allocation110_spill] sm:$0xff] %v6908_v36  ;;  %v1378_v45 = vmul.f32 %v1260_v27, %v6908_v36  ;;  %v6918_v62 = vadd.f32 %v6556_v35, %v314_v24  ;;  %v897_v35 = vld [vmem:[%s8041_s28] sm:$0xff] }
 0x2c2   :  { %4978 = vmatpush3.bf16.msra.mxu1 %v6863_v48  ;;  %5006 = vmatpush3.bf16.msra.mxu0 %v6879_v20  ;;  %v1516_v0 = vpack.c.bf16 %v1364_v52, %v1356_v18  ;;  %8038 = vst [vmem:[#allocation111_spill] sm:$0xff] %v6911_v5  ;;  %v1380_v23 = vmul.f32 %v1313_v22, %v6911_v5 }
 0x2c3   :  { %5336 = vmatprep.subr.bf16.mxu1 %v8036_v12  ;;  %5344 = vmatprep.subr.bf16.mxu0 %v8036_v12  ;;  %v1525_v4 = vpack.c.bf16 %v1381_v26, %v1373_v46  ;;  %8040 = vst [vmem:[#allocation113_spill] sm:$0xff] %v6918_v62  ;;  %v1370_v19 = vmul.f32 %v6769_v41, %v6914_v44 }
 0x2c4   :  { %v1372_v61 = vmul.f32 %v6771_v28, %v6918_v62  ;;  %2159 = vperm.xlu0 %5542, %v897_v35  }
 0x2c5   :  { %2041 = vmatmul.mubr.bf16.vlgmr.msra.gmra.mxu1 %v1514_v50  ;;  %2090 = vmatmul.mubr.bf16.vlgmr.msra.gmra.mxu0 %v1516_v0  ;;  %v1522_v52 = vpack.c.bf16 %v1378_v45, %v1370_v19 }
 0x2c6   :  { %2048 = vmatprep.mubr.bf16.mxu1 %v1523_v21  ;;  %2097 = vmatprep.mubr.bf16.mxu0 %v1525_v4  ;;  %v1524_v2 = vpack.c.bf16 %v1380_v23, %v1372_v61 }
 0x2c8   :  { %2164 = vperm.xlu0 %5542, %v898_v17  }
 0x2cd   :  { %2049 = vmatmul.mubr.bf16.gmra.mxu1 %v1522_v52  ;;  %2098 = vmatmul.mubr.bf16.gmra.mxu0 %v1524_v2 }
 0x2ce   :  { %5340 = vmatprep.mubr.msk.bf16.mxu1 %vm5788_vm2, %v8036_v12  ;;  %5348 = vmatprep.mubr.msk.bf16.mxu0 %vm5788_vm2, %v8036_v12 }
 0x365   :  { %v4923_v28 = vpop.f32.mrf.mxu1  ;;  %v4951_v41 = vpop.f32.mrf.mxu0 }
 0x367   :  { %v4924_v22 = vpop.f32.mrf.mxu1  ;;  %v4952_v16 = vpop.f32.mrf.mxu0 }
 0x368   :  { %v4925_v39 = vadd.f32 %v4924_v22, %v4923_v28  ;;  %v4953_v9 = vadd.f32 %v4952_v16, %v4951_v41 }
 0x369   :  { %v4926_v27 = vpop.f32.mrf.mxu1  ;;  %v4954_v24 = vpop.f32.mrf.mxu0 }
 0x36b   :  { %v4927_v26 = vpop.f32.mrf.mxu1  ;;  %v4955_v18 = vpop.f32.mrf.mxu0 }
 0x36c   :  { %v4928_v48 = vadd.f32 %v4927_v26, %v4926_v27  ;;  %v4956_v13 = vadd.f32 %v4955_v18, %v4954_v24  ;;  %v1994_v27 = vadd.f32 %v4953_v9, %v4925_v39  ;;  %v915_v9 = vld [vmem:[%s7757_s18] sm:$0x1]  ;;  %s5790_s18 = smov 64  }
 0x36d   :  { %v4929_v51 = vpop.f32.mrf.mxu1  ;;  %v4957_v50 = vpop.f32.mrf.mxu0 }
 0x36e   :  { %v1997_v11 = vadd.f32 %v4956_v13, %v4928_v48  ;;  %v6996_v13 = vrot.slane %v915_v9, %v6567_v54 }
 0x36f   :  { %v4930_v46 = vpop.f32.mrf.mxu1  ;;  %v4958_v0 = vpop.f32.mrf.mxu0 }
 0x370   :  { %v4931_v36 = vadd.f32 %v4930_v46, %v4929_v51  ;;  %v4959_v20 = vadd.f32 %v4958_v0, %v4957_v50 }
 0x371   :  { %v4932_v21 = vpop.f32.mrf.mxu1  ;;  %v4960_v4 = vpop.f32.mrf.mxu0 }
 0x372   :  { %v2002_v32 = vadd.f32 %v4959_v20, %v4931_v36 }
 0x373   :  { %v4933_v45 = vpop.f32.mrf.mxu1  ;;  %v4961_v23 = vpop.f32.mrf.mxu0 }
 0x374   :  { %v4934_v15 = vadd.f32 %v4933_v45, %v4932_v21  ;;  %v4962_v25 = vadd.f32 %v4961_v23, %v4960_v4 }
 0x376   :  { %v2005_v59 = vadd.f32 %v4962_v25, %v4934_v15 }
 0x385   :  { %v4979_v19 = vpop.f32.mrf.mxu1  ;;  %v5007_v61 = vpop.f32.mrf.mxu0 }
 0x387   :  { %v4980_v52 = vpop.f32.mrf.mxu1  ;;  %v5008_v2 = vpop.f32.mrf.mxu0 }
 0x388   :  { %v4981_v6 = vadd.f32 %v4980_v52, %v4979_v19  ;;  %v5009_v22 = vadd.f32 %v5008_v2, %v5007_v61 }
 0x389   :  { %v4982_v35 = vpop.f32.mrf.mxu1  ;;  %v5010_v17 = vpop.f32.mrf.mxu0 }
 0x38b   :  { %v4983_v62 = vpop.f32.mrf.mxu1  ;;  %v5011_v44 = vpop.f32.mrf.mxu0 }
 0x38c   :  { %v4984_v30 = vadd.f32 %v4983_v62, %v4982_v35 }
 0x38d   :  { %v4985_v5 = vpop.f32.mrf.mxu1  ;;  %v5013_v7 = vpop.f32.mrf.mxu0 }
 0x38e   :  { %v2046_v24 = vadd.f32 %v4984_v30, %v1997_v11  ;;  %v6970_v11 = vld [vmem:[%s7754_s15 + $0x8] sm:$0xff]  }
 0x38f   :  { %v4986_v8 = vpop.f32.mrf.mxu1  ;;  %v5014_v14 = vpop.f32.mrf.mxu0  ;;  %5345 = vmatpush3.bf16.msra.mxu0 %v6970_v11 }
 0x390   :  { %v4987_v40 = vadd.f32 %v4986_v8, %v4985_v5  ;;  %v5015_v26 = vadd.f32 %v5014_v14, %v5013_v7  ;;  %v2043_v8 = vadd.f32 %v4981_v6, %v1994_v27  ;;  %v5012_v5 = vadd.f32 %v5011_v44, %v5010_v17  ;;  %v6953_v6 = vld [vmem:[%s7755_s16] sm:$0xff]   ;;  %5346 = vmatprep.subr.bf16.mxu0 %v8036_v12  ;;  %v8044_v17 = vld [vmem:[#allocation8_spill] sm:$0xff] }
 0x391   :  { %v4988_v38 = vpop.f32.mrf.mxu1  ;;  %v5016_v10 = vpop.f32.mrf.mxu0 }
 0x392   :  { %v2051_v51 = vadd.f32 %v4987_v40, %v2002_v32  ;;  %v2095_v20 = vadd.f32 %v5012_v5, %v2046_v24  ;;  %v2092_v62 = vadd.f32 %v5009_v22, %v2043_v8  ;;  %v6980_v40 = vpop.permute.xlu0 %2159 }
 0x393   :  { %v4989_v43 = vpop.f32.mrf.mxu1  ;;  %v5017_v46 = vpop.f32.mrf.mxu0 }
 0x394   :  { %v4990_v50 = vadd.f32 %v4989_v43, %v4988_v38  ;;  %v5018_v0 = vadd.f32 %v5017_v46, %v5016_v10  ;;  %v2100_v28 = vadd.f32 %v5015_v26, %v2051_v51  ;;  %v2106_v48 = vpack.c.bf16 %v2095_v20, %v2092_v62  ;;  %v6939_v43 = vld [vmem:[%s8042_s30] sm:$0xff]  }
 0x395   :  { %v8043_v10 = vmov 0   ;;  %v6986_v38 = vld [vmem:[%s7753_s14] ss:$0 sm:$0xff] }
 0x396   :  { %v2054_v18 = vadd.f32 %v4990_v50, %v2005_v59  ;;  %v6944_v59 = vld [vmem:[%s7755_s16 + $0x8] sm:$0xff]   ;;  %v6991_v7 = vpop.permute.xlu0 %2164  ;;  %v914_v51 = vld [vmem:[%s7756_s17] sm:$0x1]  ;;  %s5791_s17 = smov 96  }
 0x397   :  { %v916_v50 = vadd.f32 %v915_v9, %v914_v51 }
 0x398   :  { %v2103_v41 = vadd.f32 %v5018_v0, %v2054_v18 }
 0x399   :  { %v7010_v46 = vrot.slane %v916_v50, %v6567_v54 }
 0x39a   :  { %v2107_v36 = vpack.c.bf16 %v2103_v41, %v2100_v28 }
 0x39c   :  { %5337 = vmatpush3.bf16.msra.mxu1 %v2107_v36 }
 0x39d   :  { %5338 = vmatprep.subr.bf16.mxu1 %v8036_v12 }
 0x3a0   :  { %5339 = vmatpush3.bf16.msra.mxu1 %v2106_v48 }
 0x3a1   :  { %5352 = vmatprep.subr.bf16.mxu1 %v8036_v12 }
 0x3a3   :  { %5341 = vmatmul.mubr.msk.bf16.vlgmr.msra.gmra.mxu1 %vm1099_vm4, %v6939_v43 }
 0x3a4   :  { %5353 = vmatpush3.bf16.msra.mxu1 %v6944_v59  ;;  %5356 = vmatprep.mubr.msk.bf16.mxu1 %vm5788_vm2, %v8036_v12 }
 0x3a5   :  { %5354 = vmatprep.subr.bf16.mxu1 %v8036_v12 }
 0x3a8   :  { %5355 = vmatpush3.bf16.msra.mxu1 %v6953_v6 }
 0x3a9   :  { %2426 = vmatprep.subr.bf16.mxu1 %v6205_v47 }
 0x3ab   :  { %5357 = vmatmul.mubr.msk.bf16.vlgmr.msra.gmra.mxu1 %vm1099_vm4, %v6173_v42  ;;  %v6977_v42 = vld [vmem:[%s7754_s15] sm:$0xff]  }
 0x3ac   :  { %2427 = vmatpush1.bf16.msra.mxu1 %v6210_v49  ;;  %2446 = vmatprep.mubr.bf16.mxu1 %v8043_v10 }
 0x3ad   :  { %2428 = vmatprep.subr.bf16.mxu1 %v6229_v55  ;;  %5347 = vmatpush3.bf16.msra.mxu0 %v6977_v42 }
 0x3b0   :  { %2429 = vmatpush1.bf16.msra.mxu1 %v6234_v57 }
 0x3b1   :  { %2532 = vmatprep.subr.bf16.mxu1 %v6253_v63 }
 0x463   :  { %v2150_v30 = vpop.f32.mrf.mxu1 }
 0x464   :  { %v2167_v32 = vmul.f32 %v6980_v40, %v2150_v30 }
 0x465   :  { %v5342_v14 = vpop.f32.mrf.mxu1 }
 0x466   :  { %v2169_v25 = vadd.f32 %v6986_v38, %v2167_v32 }
 0x467   :  { %v2153_v39 = vpop.f32.mrf.mxu1 }
 0x468   :  { %v2168_v15 = vmul.f32 %v6991_v7, %v2153_v39  ;;  %v2171_v4 = vmax.f32 %v2169_v25, 0.0 }
 0x469   :  { %v5343_v44 = vpop.f32.mrf.mxu1 }
 0x46a   :  { %v2170_v16 = vadd.f32 %v6986_v38, %v2168_v15  ;;  %v7017_v15 = vrot.slane %v914_v51, %v6567_v54 }
 0x46b   :  { %v2279_v21 = vpop.f32.mrf.mxu1 }
 0x46c   :  { %v2172_v45 = vmax.f32 %v2170_v16, 0.0  ;;  %v2304_v23 = vadd.f32 %v2279_v21, %v6996_v13 }
 0x46d   :  { %v5358_v19 = vpop.f32.mrf.mxu1 }
 0x46e   :  { %v2173_v61 = vpack.c.bf16 %v2172_v45, %v2171_v4  ;;  %2308 = vrot.lane.b32.xlu1 %v2304_v23, %s5790_s18 }
 0x46f   :  { %v2282_v52 = vpop.f32.mrf.mxu1 }
 0x470   :  { %v2305_v2 = vadd.f32 %v2282_v52, %v6996_v13  ;;  %5349 = vmatmul.mubr.msk.bf16.vlgmr.msra.gmra.mxu0 %vm1099_vm4, %v2173_v61 }
 0x471   :  { %v5359_v35 = vpop.f32.mrf.mxu1  ;;  %5362 = vmatprep.mubr.msk.bf16.mxu0 %vm94_vm3, %v8044_v17 }
 0x472   :  { %2310 = vrot.lane.b32.xlu1 %v2305_v2, %s5790_s18  ;;  %v8047_v2 = vld [vmem:[#allocation7_spill] sm:$0xff] }
 0x473   :  { %v8048_v35 = vmax.f32 %v8047_v2, 0.0  ;;  %v8062_v2 = vld [vmem:[#allocation21_spill] sm:$0xff] }
 0x4e0   :  { %v2309_v30 = vpop.permute.xlu1 %2308 }
 0x4e4   :  { %v2311_v39 = vpop.permute.xlu1 %2310 }
 0x530   :  { %v2223_v27 = vpop.f32.mrf.mxu0 }
 0x531   :  { %v2286_v24 = vadd.f32 %v2279_v21, %v2223_v27  ;;  %v2302_v44 = vadd.f32 %v2223_v27, %v7017_v15 }
 0x532   :  { %v5350_v26 = vpop.f32.mrf.mxu0 }
 0x533   :  { %v2288_v18 = vadd.f32 %v2286_v24, %v7010_v46 }
 0x534   :  { %v2226_v0 = vpop.f32.mrf.mxu0 }
 0x535   :  { %v4845_v8 = vmul.f32 -1.442695, %v2288_v18  ;;  %v2287_v5 = vadd.f32 %v2282_v52, %v2226_v0  ;;  %v2303_v4 = vadd.f32 %v2226_v0, %v7017_v15  ;;  %v8045_v52 = vld [vmem:[#allocation6_spill] sm:$0xff] }
 0x536   :  { %v5351_v28 = vpop.f32.mrf.mxu0  ;;  %v8046_v54 = vmax.f32 %v8045_v52, 0.0  ;;  %v8060_v52 = vld [vmem:[#allocation19_spill] sm:$0xff] }
 0x537   :  { %5621 = vpow2.f32 %v4845_v8  ;;  %v2289_v41 = vadd.f32 %v2287_v5, %v7010_v46 }
 0x539   :  { %v4846_v22 = vmul.f32 -1.442695, %v2289_v41 }
 0x53b   :  { %5623 = vpow2.f32 %v4846_v22 }
 0x544   :  { %v5622_v20 = vpop.eup %5621 }
 0x545   :  { %v2296_v36 = vadd.f32 1.0, %v5622_v20 }
 0x547   :  { %5625 = vrcp.f32 %v2296_v36  ;;  %v8049_v36 = vld [vmem:[#allocation10_spill] sm:$0xff] }
 0x548   :  { %v5624_v62 = vpop.eup %5623 }
 0x549   :  { %v2297_v48 = vadd.f32 1.0, %v5624_v62  ;;  %v7044_v62 = vld [vmem:[%s7931_s10 + $0x8] sm:$0xff]  }
 0x54a   :  { %8050 = vst [vmem:[#allocation8_spill] sm:$0xff] %v7044_v62 }
 0x54b   :  { %5627 = vrcp.f32 %v2297_v48  ;;  %v8051_v48 = vld [vmem:[#allocation9_spill] sm:$0xff] }
 0x554   :  { %v5626_v32 = vpop.eup %5625 }
 0x555   :  { %v2314_v14 = vmul.f32 %v5626_v32, %v2309_v30  ;;  %v2328_v27 = vsub.f32 1.0, %v5626_v32  ;;  %v8052_v30 = vld [vmem:[#allocation12_spill] sm:$0xff] }
 0x557   :  { %2318 = vrot.lane.b32.xlu0 %v2314_v14, %s5790_s18  ;;  %v8054_v14 = vld [vmem:[#allocation15_spill] sm:$0xff] }
 0x558   :  { %v5628_v9 = vpop.eup %5627 }
 0x559   :  { %v2315_v25 = vmul.f32 %v5628_v9, %v2311_v39  ;;  %v2329_v26 = vsub.f32 1.0, %v5628_v9 }
 0x55b   :  { %2320 = vrot.lane.b32.xlu1 %v2315_v25, %s5790_s18 }
 0x5c9   :  { %v2319_v16 = vpop.permute.xlu0 %2318 }
 0x5ca   :  { %v2324_v21 = vadd.f32 %v2319_v16, %v2302_v44 }
 0x5cc   :  { %5629 = vtanh.f32 %v2324_v21  ;;  %v8055_v21 = vld [vmem:[#allocation13_spill] sm:$0xff] }
 0x5cd   :  { %v2321_v45 = vpop.permute.xlu1 %2320 }
 0x5ce   :  { %v2325_v23 = vadd.f32 %v2321_v45, %v2303_v4  ;;  %v8056_v4 = vld [vmem:[#allocation14_spill] sm:$0xff]  ;;  %v8057_v45 = vld [vmem:[#allocation16_spill] sm:$0xff] }
 0x5d0   :  { %5631 = vtanh.f32 %v2325_v23  ;;  %v8058_v23 = vld [vmem:[#allocation17_spill] sm:$0xff] }
 0x5d9   :  { %v5630_v19 = vpop.eup %5629 }
 0x5da   :  { %2332 = vrot.lane.b32.xlu0 %v5630_v19, %s5791_s17 }
 0x5dd   :  { %v5632_v61 = vpop.eup %5631 }
 0x5de   :  { %2342 = vrot.lane.b32.xlu0 %v8046_v54, %s5792_s11  ;;  %2334 = vrot.lane.b32.xlu1 %v5632_v61, %s5791_s17  ;;  %v8059_v61 = vld [vmem:[#allocation18_spill] sm:$0xff]  ;;  %v8061_v54 = vld [vmem:[#allocation20_spill] sm:$0xff] }
 0x5e2   :  { %2344 = vrot.lane.b32.xlu1 %v8048_v35, %s5792_s11  ;;  %v8063_v35 = vld [vmem:[#allocation22_spill] sm:$0xff] }
 0x64c   :  { %v2333_v17 = vpop.permute.xlu0 %2332 }
 0x64d   :  { %v2338_v0 = vmul.f32 %v2333_v17, %v2328_v27  ;;  %v8064_v17 = vld [vmem:[#allocation23_spill] sm:$0xff]  ;;  %v8067_v27 = vld [vmem:[#allocation26_spill] sm:$0xff] }
 0x650   :  { %v2343_v51 = vpop.permute.xlu0 %2342  ;;  %v2335_v50 = vpop.permute.xlu1 %2334 }
 0x651   :  { %v2348_v24 = vmul.f32 %v5626_v32, %v2343_v51  ;;  %v2339_v8 = vmul.f32 %v2335_v50, %v2329_v26  ;;  %v8053_v32 = vld [vmem:[#allocation11_spill] sm:$0xff]  ;;  %v8065_v51 = vld [vmem:[#allocation24_spill] sm:$0xff]  ;;  %v8066_v50 = vld [vmem:[#allocation25_spill] sm:$0xff] }
 0x652   :  { %v8069_v26 = vld [vmem:[#allocation28_spill] sm:$0xff] }
 0x653   :  { %v7029_v28 = vadd.f32 %v2348_v24, %v2338_v0  ;;  %v8068_v24 = vld [vmem:[#allocation27_spill] sm:$0xff]  ;;  %v8071_v0 = vld [vmem:[#allocation30_spill] sm:$0xff] }
 0x654   :  { %v2345_v18 = vpop.permute.xlu1 %2344 }
 0x655   :  { %v2349_v5 = vmul.f32 %v5628_v9, %v2345_v18  ;;  %v8070_v18 = vld [vmem:[#allocation29_spill] sm:$0xff] }
 0x657   :  { %v7031_v41 = vadd.f32 %v2349_v5, %v2339_v8  ;;  %v8072_v8 = vld [vmem:[#allocation31_spill] sm:$0xff]  ;;  %v8073_v5 = vld [vmem:[#allocation32_spill] sm:$0xff] }
 0x659   :  { %v2352_v22 = vpack.c.bf16 %v7031_v41, %v7029_v28 }
 0x65b   :  { %2354 = vrot.lane.b32.xlu0 %v2352_v22, %s5791_s17  ;;  %v8074_v22 = vld [vmem:[#allocation33_spill] sm:$0xff] }
 0x6cd   :  { %v7036_v20 = vpop.permute.xlu0 %2354 }
 0x6ce   :  { %5360 = vmatprep.subr.bf16.mxu0 %v7036_v20 }
 0x6cf   :  { %5361 = vmatpush3.bf16.msra.mxu0 %v7036_v20 }
 0x6d0   :  { %2479 = vmatprep.subr.bf16.mxu0 %v8049_v36 }
 0x6d2   :  { %5363 = vmatmul.mubr.msk.bf16.vlgmr.msra.gmra.mxu0 %vm94_vm3, %v7044_v62 }
 0x6d3   :  { %2480 = vmatpush1.bf16.msra.mxu0 %v8051_v48  ;;  %2499 = vmatprep.mubr.bf16.mxu0 %v8043_v10 }
 0x6d4   :  { %2481 = vmatprep.subr.bf16.mxu0 %v8052_v30 }
 0x6d7   :  { %2482 = vmatpush1.bf16.msra.mxu0 %v8053_v32 }
 0x6d8   :  { %2585 = vmatprep.subr.bf16.mxu0 %v8054_v14 }
 0x792   :  { %v5364_v9 = vpop.f32.mrf.mxu0 }
 0x794   :  { %v2391_v39 = vpop.f32.mrf.mxu0 }
 0x796   :  { %v5365_v25 = vpop.f32.mrf.mxu0 }
 0x797   :  { %v2407_v19 = vpack.c.bf16 %v5365_v25, %v5364_v9  ;;  %v8075_v9 = vld [vmem:[#allocation34_spill] sm:$0xff]  ;;  %v8077_v25 = vld [vmem:[#allocation36_spill] sm:$0xff] }
 0x798   :  { %v2394_v44 = vpop.f32.mrf.mxu0 }
 0x799   :  { %v2406_v16 = vpack.c.bf16 %v2394_v44, %v2391_v39  ;;  %v8076_v39 = vld [vmem:[#allocation35_spill] sm:$0xff]  ;;  %v8078_v44 = vld [vmem:[#allocation37_spill] sm:$0xff] }
 0x79b   :  { %4849 = vmatmul.mubr.msk.bf16.vlgmr.msra.gmra.mxu1 %vm1099_vm4, %v2406_v16  ;;  %4851 = vmatmul.mubr.msk.bf16.vlgmr.msra.gmra.mxu0 %vm1099_vm4, %v2406_v16 }
 0x79c   :  { %2456 = vmatprep.mubr.bf16.mxu1 %v8043_v10  ;;  %2509 = vmatprep.mubr.bf16.mxu0 %v8043_v10 }
 0x79d   :  { %2533 = vmatpush1.bf16.msra.mxu1 %v8055_v21  ;;  %2586 = vmatpush1.bf16.msra.mxu0 %v8056_v4 }
 0x79e   :  { %2534 = vmatprep.subr.bf16.mxu1 %v8057_v45  ;;  %2587 = vmatprep.subr.bf16.mxu0 %v8058_v23 }
 0x7a1   :  { %2535 = vmatpush1.bf16.msra.mxu1 %v8059_v61  ;;  %2588 = vmatpush1.bf16.msra.mxu0 %v8060_v52 }
 0x7a2   :  { %5031 = vmatprep.subr.bf16.mxu1 %v8061_v54  ;;  %5059 = vmatprep.subr.bf16.mxu0 %v8062_v2  ;;  %v8080_v54 = vld [vmem:[#allocation39_spill] sm:$0xff]  ;;  %v8082_v2 = vld [vmem:[#allocation41_spill] sm:$0xff] }
 0x7a3   :  { %4850 = vmatmul.mubr.msk.bf16.gmra.mxu1 %vm1099_vm4, %v2407_v19  ;;  %4852 = vmatmul.mubr.msk.bf16.gmra.mxu0 %vm1099_vm4, %v2407_v19 }
 0x7a4   :  { %2552 = vmatprep.mubr.bf16.mxu1 %v8043_v10  ;;  %2605 = vmatprep.mubr.bf16.mxu0 %v8043_v10 }
 0x7ab   :  { %4853 = vmatmul.mubr.msk.bf16.vlgmr.msra.gmra.mxu1 %vm1099_vm4, %v2406_v16  ;;  %4855 = vmatmul.mubr.msk.bf16.vlgmr.msra.gmra.mxu0 %vm1099_vm4, %v2406_v16  ;;  %v8079_v16 = vld [vmem:[#allocation38_spill] sm:$0xff] }
 0x7ac   :  { %2562 = vmatprep.mubr.bf16.mxu1 %v8043_v10  ;;  %2615 = vmatprep.mubr.bf16.mxu0 %v8043_v10 }
 0x7ad   :  { %5032 = vmatpush3.bf16.msra.mxu1 %v8063_v35  ;;  %5060 = vmatpush3.bf16.msra.mxu0 %v8064_v17  ;;  %v8083_v35 = vld [vmem:[#allocation42_spill] sm:$0xff]  ;;  %v8084_v17 = vld [vmem:[#allocation43_spill] sm:$0xff] }
 0x7ae   :  { %5033 = vmatprep.subr.bf16.mxu1 %v8065_v51  ;;  %5061 = vmatprep.subr.bf16.mxu0 %v8066_v50  ;;  %v8085_v51 = vld [vmem:[#allocation44_spill] sm:$0xff]  ;;  %v8086_v50 = vld [vmem:[#allocation45_spill] sm:$0xff] }
 0x7b1   :  { %5034 = vmatpush3.bf16.msra.mxu1 %v8067_v27  ;;  %5062 = vmatpush3.bf16.msra.mxu0 %v8068_v24  ;;  %v8087_v27 = vld [vmem:[#allocation46_spill] sm:$0xff]  ;;  %v8088_v24 = vld [vmem:[#allocation47_spill] sm:$0xff] }
 0x7b2   :  { %5035 = vmatprep.subr.bf16.mxu1 %v8069_v26  ;;  %5063 = vmatprep.subr.bf16.mxu0 %v8070_v18  ;;  %v8089_v26 = vld [vmem:[#allocation48_spill] sm:$0xff]  ;;  %v8090_v18 = vld [vmem:[#allocation49_spill] sm:$0xff] }
 0x7b3   :  { %4854 = vmatmul.mubr.msk.bf16.gmra.mxu1 %vm1099_vm4, %v2407_v19  ;;  %4856 = vmatmul.mubr.msk.bf16.gmra.mxu0 %vm1099_vm4, %v2407_v19  ;;  %v8081_v19 = vld [vmem:[#allocation40_spill] sm:$0xff] }
 0x7b5   :  { %5036 = vmatpush3.bf16.msra.mxu1 %v8071_v0  ;;  %5064 = vmatpush3.bf16.msra.mxu0 %v8072_v8  ;;  %v8091_v0 = vld [vmem:[#allocation50_spill] sm:$0xff]  ;;  %v8092_v8 = vld [vmem:[#allocation51_spill] sm:$0xff] }
 0x7b6   :  { %5037 = vmatprep.subr.bf16.mxu1 %v8073_v5  ;;  %5065 = vmatprep.subr.bf16.mxu0 %v8074_v22  ;;  %v8093_v5 = vld [vmem:[#allocation52_spill] sm:$0xff]  ;;  %v8094_v22 = vld [vmem:[#allocation53_spill] sm:$0xff] }
 0x7b9   :  { %5038 = vmatpush3.bf16.msra.mxu1 %v8075_v9  ;;  %5066 = vmatpush3.bf16.msra.mxu0 %v8076_v39 }
 0x7ba   :  { %5039 = vmatprep.subr.bf16.mxu1 %v8077_v25  ;;  %5067 = vmatprep.subr.bf16.mxu0 %v8078_v44 }
 0x7bd   :  { %5040 = vmatpush3.bf16.msra.mxu1 %v8079_v16  ;;  %5068 = vmatpush3.bf16.msra.mxu0 %v8080_v54 }
 0x7be   :  { %5041 = vmatprep.subr.bf16.mxu1 %v8081_v19  ;;  %5069 = vmatprep.subr.bf16.mxu0 %v8082_v2 }
 0x7c1   :  { %5042 = vmatpush3.bf16.msra.mxu1 %v8083_v35  ;;  %5070 = vmatpush3.bf16.msra.mxu0 %v8084_v17 }
 0x7c2   :  { %5043 = vmatprep.subr.bf16.mxu1 %v8085_v51  ;;  %5071 = vmatprep.subr.bf16.mxu0 %v8086_v50 }
 0x7c5   :  { %5044 = vmatpush3.bf16.msra.mxu1 %v8087_v27  ;;  %5072 = vmatpush3.bf16.msra.mxu0 %v8088_v24 }
 0x7c6   :  { %5045 = vmatprep.subr.bf16.mxu1 %v8089_v26  ;;  %5073 = vmatprep.subr.bf16.mxu0 %v8090_v18  ;;  %v8095_v18 = vld [vmem:[#allocation61_spill] sm:$0xff] }
 0x7c9   :  { %5046 = vmatpush3.bf16.msra.mxu1 %v8091_v0  ;;  %5074 = vmatpush3.bf16.msra.mxu0 %v8092_v8 }
 0x7ca   :  { %5087 = vmatprep.subr.bf16.mxu1 %v8093_v5  ;;  %5115 = vmatprep.subr.bf16.mxu0 %v8094_v22 }
 0x85b   :  { %v2448_v9 = vpop.f32.mrf.mxu1  ;;  %v2501_v39 = vpop.f32.mrf.mxu0 }
 0x85c   :  { %v2626_v26 = vmul.f32 %v2448_v9, %v6598_v53  ;;  %v2628_v0 = vmul.f32 %v2501_v39, %v8095_v18  ;;  %v8104_v18 = vld [vmem:[#allocation71_spill] sm:$0xff] }
 0x85d   :  { %v2450_v25 = vpop.f32.mrf.mxu1  ;;  %v2503_v44 = vpop.f32.mrf.mxu0 }
 0x85e   :  { %v2627_v51 = vmul.f32 %v2450_v25, %v6588_v3  ;;  %v2629_v50 = vmul.f32 %v2503_v44, %v6590_v60 }
 0x85f   :  { %v2452_v16 = vpop.f32.mrf.mxu1  ;;  %v2505_v54 = vpop.f32.mrf.mxu0 }
 0x860   :  { %v2634_v19 = vmul.f32 %v2452_v16, %v6583_v34  ;;  %v2636_v2 = vmul.f32 %v2505_v54, %v6585_v31 }
 0x861   :  { %v2454_v35 = vpop.f32.mrf.mxu1  ;;  %v2507_v17 = vpop.f32.mrf.mxu0 }
 0x862   :  { %v2635_v27 = vmul.f32 %v2454_v35, %v6593_v56  ;;  %v2637_v24 = vmul.f32 %v2507_v17, %v6595_v58  ;;  %v2658_v34 = vpack.c.bf16 %v2634_v19, %v2626_v26  ;;  %v2660_v54 = vpack.c.bf16 %v2636_v2, %v2628_v0  ;;  %v8096_v19 = vld [vmem:[#allocation62_spill] sm:$0xff]  ;;  %v8097_v2 = vld [vmem:[#allocation63_spill] sm:$0xff]  ;;  %v8138_v58 = vld [vmem:[#allocation108_spill] sm:$0xff] }
 0x863   :  { %v2458_v8 = vpop.f32.mrf.mxu1  ;;  %v2511_v5 = vpop.f32.mrf.mxu0  ;;  %v8101_v0 = vld [vmem:[#allocation70_spill] sm:$0xff]  ;;  %v8139_v56 = vld [vmem:[#allocation103_spill] sm:$0xff] }
 0x864   :  { %v2659_v22 = vpack.c.bf16 %v2635_v27, %v2627_v51  ;;  %v2661_v16 = vpack.c.bf16 %v2637_v24, %v2629_v50  ;;  %v8098_v51 = vld [vmem:[#allocation66_spill] sm:$0xff]  ;;  %v8099_v27 = vld [vmem:[#allocation68_spill] sm:$0xff] }
 0x865   :  { %v2460_v31 = vpop.f32.mrf.mxu1  ;;  %v2513_v52 = vpop.f32.mrf.mxu0 }
 0x866   :  { %2706 = vmatprep.mubr.bf16.mxu1 %v2659_v22  ;;  %2755 = vmatprep.mubr.bf16.mxu0 %v2661_v16  ;;  %v2643_v9 = vmul.f32 %v2460_v31, %v6634_v29  ;;  %v2645_v50 = vmul.f32 %v2513_v52, %v8098_v51  ;;  %v8102_v22 = vld [vmem:[#allocation64_spill] sm:$0xff] }
 0x867   :  { %v2462_v25 = vpop.f32.mrf.mxu1  ;;  %v2515_v44 = vpop.f32.mrf.mxu0  ;;  %2707 = vmatmul.mubr.bf16.vlgmr.msra.gmra.mxu1 %v2658_v34  ;;  %2756 = vmatmul.mubr.bf16.vlgmr.msra.gmra.mxu0 %v2660_v54  ;;  %v8100_v34 = vld [vmem:[#allocation69_spill] sm:$0xff]  ;;  %v8103_v54 = vld [vmem:[#allocation72_spill] sm:$0xff] }
 0x868   :  { %5088 = vmatpush3.bf16.msra.mxu1 %v6613_v1  ;;  %5116 = vmatpush3.bf16.msra.mxu0 %v6618_v37  ;;  %v2650_v39 = vmul.f32 %v2462_v25, %v6639_v33  ;;  %v2652_v24 = vmul.f32 %v2515_v44, %v8099_v27  ;;  %v2642_v37 = vmul.f32 %v2458_v8, %v8102_v22  ;;  %v8106_v44 = vld [vmem:[#allocation74_spill] sm:$0xff]  ;;  %v8137_v27 = vld [vmem:[#allocation107_spill] sm:$0xff] }
 0x869   :  { %v2464_v35 = vpop.f32.mrf.mxu1  ;;  %v2517_v17 = vpop.f32.mrf.mxu0  ;;  %5089 = vmatprep.subr.bf16.mxu1 %v8096_v19  ;;  %5117 = vmatprep.subr.bf16.mxu0 %v8097_v2  ;;  %v2644_v25 = vmul.f32 %v2511_v5, %v8103_v54  ;;  %v8105_v2 = vld [vmem:[#allocation73_spill] sm:$0xff]  ;;  %v8108_v5 = vld [vmem:[#allocation76_spill] sm:$0xff] }
 0x86a   :  { %v2651_v26 = vmul.f32 %v2464_v35, %v8100_v34  ;;  %v2653_v1 = vmul.f32 %v2517_v17, %v8101_v0  ;;  %v2666_v19 = vpack.c.bf16 %v2650_v39, %v2642_v37  ;;  %v8107_v17 = vld [vmem:[#allocation75_spill] sm:$0xff]  ;;  %v8112_v37 = vld [vmem:[#allocation81_spill] sm:$0xff]  ;;  %v8116_v54 = vld [vmem:[#allocation84_spill] sm:$0xff] }
 0x86b   :  { %v2554_v16 = vpop.f32.mrf.mxu1  ;;  %v2607_v31 = vpop.f32.mrf.mxu0  ;;  %v2668_v35 = vpack.c.bf16 %v2652_v24, %v2644_v25  ;;  %v8114_v25 = vld [vmem:[#allocation83_spill] sm:$0xff]  ;;  %v8118_v0 = vld [vmem:[#allocation86_spill] sm:$0xff]  ;;  %v8136_v34 = vld [vmem:[#allocation105_spill] sm:$0xff] }
 0x86c   :  { %v2667_v33 = vpack.c.bf16 %v2651_v26, %v2643_v9  ;;  %v2669_v29 = vpack.c.bf16 %v2653_v1, %v2645_v50  ;;  %5090 = vmatpush3.bf16.msra.mxu1 %v8104_v18  ;;  %5118 = vmatpush3.bf16.msra.mxu0 %v8105_v2  ;;  %v8109_v9 = vld [vmem:[#allocation77_spill] sm:$0xff]  ;;  %v8110_v50 = vld [vmem:[#allocation78_spill] sm:$0xff]  ;;  %v8111_v26 = vld [vmem:[#allocation80_spill] sm:$0xff]  ;;  %v2632_v53 = vmul.f32 %v2607_v31, %v8137_v27 }
 0x86d   :  { %v2556_v52 = vpop.f32.mrf.mxu1  ;;  %v2609_v51 = vpop.f32.mrf.mxu0  ;;  %5091 = vmatprep.subr.bf16.mxu1 %v8106_v44  ;;  %5119 = vmatprep.subr.bf16.mxu0 %v8107_v17  ;;  %v8115_v44 = vld [vmem:[#allocation79_spill] sm:$0xff]  ;;  %v8142_v31 = vld [vmem:[#allocation110_spill] sm:$0xff] }
 0x86e   :  { %2714 = vmatprep.mubr.bf16.mxu1 %v2667_v33  ;;  %2763 = vmatprep.mubr.bf16.mxu0 %v2669_v29  ;;  %v2631_v1 = vmul.f32 %v2556_v52, %v8111_v26  ;;  %v2633_v24 = vmul.f32 %v2609_v51, %v8112_v37  ;;  %v8113_v33 = vld [vmem:[#allocation82_spill] sm:$0xff]  ;;  %v8119_v52 = vld [vmem:[#allocation87_spill] sm:$0xff] }
 0x86f   :  { %v2558_v8 = vpop.f32.mrf.mxu1  ;;  %v2611_v22 = vpop.f32.mrf.mxu0  ;;  %2715 = vmatmul.mubr.bf16.gmra.mxu1 %v2666_v19  ;;  %2764 = vmatmul.mubr.bf16.gmra.mxu0 %v2668_v35  ;;  %v8133_v37 = vld [vmem:[#allocation102_spill] sm:$0xff]  ;;  %v8134_v26 = vld [vmem:[#allocation99_spill] sm:$0xff] }
 0x870   :  { %5092 = vmatpush3.bf16.msra.mxu1 %v8108_v5  ;;  %5120 = vmatpush3.bf16.msra.mxu0 %v8109_v9  ;;  %v8117_v9 = vld [vmem:[#allocation85_spill] sm:$0xff] }
 0x871   :  { %v2560_v18 = vpop.f32.mrf.mxu1  ;;  %v2613_v39 = vpop.f32.mrf.mxu0  ;;  %5093 = vmatprep.subr.bf16.mxu1 %v8110_v50  ;;  %5121 = vmatprep.subr.bf16.mxu0 %v8115_v44  ;;  %v8120_v50 = vld [vmem:[#allocation88_spill] sm:$0xff]  ;;  %v8122_v44 = vld [vmem:[#allocation90_spill] sm:$0xff] }
 0x872   :  { %v2639_v29 = vmul.f32 %v2560_v18, %v8113_v33  ;;  %v2641_v2 = vmul.f32 %v2613_v39, %v8114_v25  ;;  %v8121_v39 = vld [vmem:[#allocation89_spill] sm:$0xff] }
 0x873   :  { %v2564_v19 = vpop.f32.mrf.mxu1  ;;  %v2617_v5 = vpop.f32.mrf.mxu0  ;;  %v8130_v25 = vld [vmem:[#allocation97_spill] sm:$0xff] }
 0x874   :  { %v2663_v35 = vpack.c.bf16 %v2639_v29, %v2631_v1  ;;  %v2665_v17 = vpack.c.bf16 %v2641_v2, %v2633_v24  ;;  %5094 = vmatpush3.bf16.msra.mxu1 %v8116_v54  ;;  %5122 = vmatpush3.bf16.msra.mxu0 %v8117_v9  ;;  %v8123_v1 = vld [vmem:[#allocation91_spill] sm:$0xff]  ;;  %v8124_v29 = vld [vmem:[#allocation92_spill] sm:$0xff]  ;;  %v8125_v2 = vld [vmem:[#allocation93_spill] sm:$0xff] }
 0x875   :  { %5095 = vmatprep.subr.bf16.mxu1 %v8118_v0  ;;  %5123 = vmatprep.subr.bf16.mxu0 %v8119_v52  ;;  %v2566_v51 = vpop.f32.mrf.mxu1  ;;  %v2619_v18 = vpop.f32.mrf.mxu0  ;;  %v8126_v0 = vld [vmem:[#allocation94_spill] sm:$0xff]  ;;  %v8128_v52 = vld [vmem:[#allocation96_spill] sm:$0xff] }
 0x876   :  { %2804 = vmatprep.mubr.bf16.mxu1 %v2663_v35  ;;  %2853 = vmatprep.mubr.bf16.mxu0 %v2665_v17  ;;  %v8127_v35 = vld [vmem:[#allocation95_spill] sm:$0xff] }
 0x877   :  { %v2568_v24 = vpop.f32.mrf.mxu1  ;;  %v2621_v54 = vpop.f32.mrf.mxu0 }
 0x878   :  { %5096 = vmatpush3.bf16.msra.mxu1 %v8120_v50  ;;  %5124 = vmatpush3.bf16.msra.mxu0 %v8121_v39  ;;  %v8129_v50 = vld [vmem:[#allocation100_spill] sm:$0xff] }
 0x879   :  { %5097 = vmatprep.subr.bf16.mxu1 %v8122_v44  ;;  %5125 = vmatprep.subr.bf16.mxu0 %v8123_v1  ;;  %v2570_v17 = vpop.f32.mrf.mxu1  ;;  %v2623_v9 = vpop.f32.mrf.mxu0  ;;  %v2638_v39 = vmul.f32 %v2558_v8, %v8129_v50  ;;  %v8131_v44 = vld [vmem:[#allocation98_spill] sm:$0xff]  ;;  %v8132_v1 = vld [vmem:[#allocation101_spill] sm:$0xff] }
 0x87a   :  { %v2640_v33 = vmul.f32 %v2611_v22, %v8132_v1 }
 0x87c   :  { %5098 = vmatpush3.bf16.msra.mxu1 %v8124_v29  ;;  %5126 = vmatpush3.bf16.msra.mxu0 %v8125_v2  ;;  %v2655_v29 = vmul.f32 %v2570_v17, %v8133_v37  ;;  %v8135_v2 = vld [vmem:[#allocation104_spill] sm:$0xff]  ;;  %v2664_v22 = vpack.c.bf16 %v2640_v33, %v2632_v53 }
 0x87d   :  { %5099 = vmatprep.subr.bf16.mxu1 %v8126_v0  ;;  %5127 = vmatprep.subr.bf16.mxu0 %v8127_v35  ;;  %v2630_v0 = vmul.f32 %v2554_v16, %v8135_v2  ;;  %v2657_v35 = vmul.f32 %v2623_v9, %v8136_v34 }
 0x87f   :  { %v2662_v8 = vpack.c.bf16 %v2638_v39, %v2630_v0  ;;  %v8145_v39 = vld [vmem:[#allocation113_spill] sm:$0xff] }
 0x880   :  { %5100 = vmatpush3.bf16.msra.mxu1 %v8128_v52  ;;  %5128 = vmatpush3.bf16.msra.mxu0 %v8130_v25  ;;  %v2647_v52 = vmul.f32 %v2566_v51, %v8138_v58  ;;  %v8140_v25 = vld [vmem:[#allocation109_spill] sm:$0xff]  ;;  %v2648_v53 = vmul.f32 %v2617_v5, %v8145_v39 }
 0x881   :  { %5101 = vmatprep.subr.bf16.mxu1 %v8131_v44  ;;  %5129 = vmatprep.subr.bf16.mxu0 %v8134_v26  ;;  %v2649_v50 = vmul.f32 %v2619_v18, %v8140_v25  ;;  %v8141_v44 = vld [vmem:[#allocation106_spill] sm:$0xff]  ;;  %v2654_v26 = vmul.f32 %v2568_v24, %v8142_v31  ;;  %v8144_v18 = vld [vmem:[#allocation112_spill] sm:$0xff] }
 0x882   :  { %v2671_v17 = vpack.c.bf16 %v2655_v29, %v2647_v52  ;;  %v2646_v9 = vmul.f32 %v2564_v19, %v8144_v18 }
 0x883   :  { %v2673_v16 = vpack.c.bf16 %v2657_v35, %v2649_v50 }
 0x884   :  { %5102 = vmatpush3.bf16.msra.mxu1 %v8139_v56  ;;  %5130 = vmatpush3.bf16.msra.mxu0 %v8141_v44  ;;  %v8143_v56 = vld [vmem:[#allocation111_spill] sm:$0xff]  ;;  %v2670_v33 = vpack.c.bf16 %v2654_v26, %v2646_v9 }
 0x885   :  { %5366 = vmatprep.subr.bf16.mxu1 %v8036_v12  ;;  %5374 = vmatprep.subr.bf16.mxu0 %v8036_v12  ;;  %v2656_v51 = vmul.f32 %v2621_v54, %v8143_v56 }
 0x887   :  { %2805 = vmatmul.mubr.bf16.vlgmr.msra.gmra.mxu1 %v2662_v8  ;;  %2854 = vmatmul.mubr.bf16.vlgmr.msra.gmra.mxu0 %v2664_v22  ;;  %v2672_v50 = vpack.c.bf16 %v2656_v51, %v2648_v53 }
 0x888   :  { %2812 = vmatprep.mubr.bf16.mxu1 %v2671_v17  ;;  %2861 = vmatprep.mubr.bf16.mxu0 %v2673_v16 }
 0x889   :  { %5375 = vmatpush3.bf16.msra.mxu0 %v6970_v11 }
 0x88a   :  { %5376 = vmatprep.subr.bf16.mxu0 %v8036_v12 }
 0x88d   :  { %5377 = vmatpush3.bf16.msra.mxu0 %v6977_v42 }
 0x88f   :  { %2813 = vmatmul.mubr.bf16.gmra.mxu1 %v2670_v33  ;;  %2862 = vmatmul.mubr.bf16.gmra.mxu0 %v2672_v50 }
 0x890   :  { %5370 = vmatprep.mubr.msk.bf16.mxu1 %vm5788_vm2, %v8036_v12  ;;  %5378 = vmatprep.mubr.msk.bf16.mxu0 %vm5788_vm2, %v8036_v12 }
 0x927   :  { %v5047_v11 = vpop.f32.mrf.mxu1  ;;  %v5075_v24 = vpop.f32.mrf.mxu0 }
 0x929   :  { %v5048_v54 = vpop.f32.mrf.mxu1  ;;  %v5076_v29 = vpop.f32.mrf.mxu0 }
 0x92a   :  { %v5049_v23 = vadd.f32 %v5048_v54, %v5047_v11  ;;  %v5077_v45 = vadd.f32 %v5076_v29, %v5075_v24 }
 0x92b   :  { %v5050_v0 = vpop.f32.mrf.mxu1  ;;  %v5078_v19 = vpop.f32.mrf.mxu0 }
 0x92d   :  { %v5051_v35 = vpop.f32.mrf.mxu1  ;;  %v5079_v5 = vpop.f32.mrf.mxu0 }
 0x92e   :  { %v5052_v34 = vadd.f32 %v5051_v35, %v5050_v0  ;;  %v5080_v2 = vadd.f32 %v5079_v5, %v5078_v19  ;;  %v2758_v0 = vadd.f32 %v5077_v45, %v5049_v23 }
 0x92f   :  { %v5053_v52 = vpop.f32.mrf.mxu1  ;;  %v5081_v8 = vpop.f32.mrf.mxu0 }
 0x930   :  { %v2761_v30 = vadd.f32 %v5080_v2, %v5052_v34 }
 0x931   :  { %v5054_v42 = vpop.f32.mrf.mxu1  ;;  %v5082_v44 = vpop.f32.mrf.mxu0 }
 0x932   :  { %v5055_v25 = vadd.f32 %v5054_v42, %v5053_v52  ;;  %v5083_v58 = vadd.f32 %v5082_v44, %v5081_v8 }
 0x933   :  { %v5056_v22 = vpop.f32.mrf.mxu1  ;;  %v5084_v17 = vpop.f32.mrf.mxu0 }
 0x934   :  { %v2766_v21 = vadd.f32 %v5083_v58, %v5055_v25 }
 0x935   :  { %v5057_v16 = vpop.f32.mrf.mxu1  ;;  %v5085_v26 = vpop.f32.mrf.mxu0 }
 0x936   :  { %v5058_v1 = vadd.f32 %v5057_v16, %v5056_v22  ;;  %v5086_v60 = vadd.f32 %v5085_v26, %v5084_v17 }
 0x938   :  { %v2769_v62 = vadd.f32 %v5086_v60, %v5058_v1 }
 0x947   :  { %v5103_v51 = vpop.f32.mrf.mxu1  ;;  %v5131_v9 = vpop.f32.mrf.mxu0 }
 0x949   :  { %v5104_v53 = vpop.f32.mrf.mxu1  ;;  %v5132_v33 = vpop.f32.mrf.mxu0 }
 0x94a   :  { %v5105_v36 = vadd.f32 %v5104_v53, %v5103_v51  ;;  %v5133_v54 = vadd.f32 %v5132_v33, %v5131_v9 }
 0x94b   :  { %v5106_v50 = vpop.f32.mrf.mxu1  ;;  %v5134_v39 = vpop.f32.mrf.mxu0 }
 0x94d   :  { %v5107_v18 = vpop.f32.mrf.mxu1  ;;  %v5135_v56 = vpop.f32.mrf.mxu0 }
 0x94e   :  { %v5108_v14 = vadd.f32 %v5107_v18, %v5106_v50 }
 0x94f   :  { %v5109_v31 = vpop.f32.mrf.mxu1  ;;  %v5137_v27 = vpop.f32.mrf.mxu0 }
 0x950   :  { %v2810_v19 = vadd.f32 %v5108_v14, %v2761_v30 }
 0x951   :  { %v5110_v37 = vpop.f32.mrf.mxu1  ;;  %v5138_v61 = vpop.f32.mrf.mxu0 }
 0x952   :  { %v5111_v3 = vadd.f32 %v5110_v37, %v5109_v31  ;;  %v5139_v35 = vadd.f32 %v5138_v61, %v5137_v27  ;;  %v2807_v37 = vadd.f32 %v5105_v36, %v2758_v0  ;;  %v5136_v31 = vadd.f32 %v5135_v56, %v5134_v39 }
 0x953   :  { %v5112_v4 = vpop.f32.mrf.mxu1  ;;  %v5140_v32 = vpop.f32.mrf.mxu0 }
 0x954   :  { %v2815_v52 = vadd.f32 %v5111_v3, %v2766_v21  ;;  %v2859_v58 = vadd.f32 %v5136_v31, %v2810_v19  ;;  %v2856_v18 = vadd.f32 %v5133_v54, %v2807_v37 }
 0x955   :  { %v5113_v48 = vpop.f32.mrf.mxu1  ;;  %v5141_v42 = vpop.f32.mrf.mxu0 }
 0x956   :  { %v5114_v8 = vadd.f32 %v5113_v48, %v5112_v4  ;;  %v5142_v44 = vadd.f32 %v5141_v42, %v5140_v32  ;;  %v2864_v11 = vadd.f32 %v5139_v35, %v2815_v52  ;;  %v2870_v60 = vpack.c.bf16 %v2859_v58, %v2856_v18  ;;  %v5694_v4 = vld [vmem:[%s7931_s10] sm:$0xff]  }
 0x958   :  { %v2818_v5 = vadd.f32 %v5114_v8, %v2769_v62 }
 0x95a   :  { %v2867_v24 = vadd.f32 %v5142_v44, %v2818_v5 }
 0x95c   :  { %v2871_v25 = vpack.c.bf16 %v2867_v24, %v2864_v11 }
 0x95e   :  { %5367 = vmatpush3.bf16.msra.mxu1 %v2871_v25 }
 0x95f   :  { %5368 = vmatprep.subr.bf16.mxu1 %v8036_v12 }
 0x962   :  { %5369 = vmatpush3.bf16.msra.mxu1 %v2870_v60 }
 0x963   :  { %5382 = vmatprep.subr.bf16.mxu1 %v8036_v12 }
 0x965   :  { %5371 = vmatmul.mubr.msk.bf16.vlgmr.msra.gmra.mxu1 %vm1099_vm4, %v6939_v43 }
 0x966   :  { %5383 = vmatpush3.bf16.msra.mxu1 %v6944_v59  ;;  %5386 = vmatprep.mubr.msk.bf16.mxu1 %vm5788_vm2, %v8036_v12 }
 0x967   :  { %5384 = vmatprep.subr.bf16.mxu1 %v8036_v12 }
 0x96a   :  { %5385 = vmatpush3.bf16.msra.mxu1 %v6953_v6 }
 0x96b   :  { %3140 = vmatprep.subr.bf16.mxu1 %v6205_v47 }
 0x96d   :  { %5387 = vmatmul.mubr.msk.bf16.vlgmr.msra.gmra.mxu1 %vm1099_vm4, %v7036_v20 }
 0x96e   :  { %3141 = vmatpush1.bf16.msra.mxu1 %v6210_v49  ;;  %3160 = vmatprep.mubr.bf16.mxu1 %v8043_v10 }
 0x96f   :  { %3142 = vmatprep.subr.bf16.mxu1 %v6229_v55 }
 0x972   :  { %3143 = vmatpush1.bf16.msra.mxu1 %v6234_v57 }
 0x973   :  { %3246 = vmatprep.subr.bf16.mxu1 %v6253_v63 }
 0xa25   :  { %v2906_v3 = vpop.f32.mrf.mxu1 }
 0xa26   :  { %v2913_v43 = vmul.f32 %v2906_v3, %v6980_v40 }
 0xa27   :  { %v5372_v59 = vpop.f32.mrf.mxu1 }
 0xa28   :  { %v2915_v47 = vadd.f32 %v6986_v38, %v2913_v43 }
 0xa29   :  { %v2909_v6 = vpop.f32.mrf.mxu1 }
 0xa2a   :  { %v2914_v36 = vmul.f32 %v2909_v6, %v6991_v7  ;;  %v2917_v48 = vmax.f32 %v2915_v47, 0.0  ;;  %v8146_v6 = vld [vmem:[#allocation10_spill] sm:$0xff]  ;;  %v8149_v47 = vld [vmem:[#allocation12_spill] sm:$0xff] }
 0xa2b   :  { %v5373_v20 = vpop.f32.mrf.mxu1 }
 0xa2c   :  { %v2916_v49 = vadd.f32 %v6986_v38, %v2914_v36  ;;  %v8150_v36 = vld [vmem:[#allocation11_spill] sm:$0xff] }
 0xa2d   :  { %v3001_v62 = vpop.f32.mrf.mxu1  ;;  %v8151_v20 = vld [vmem:[#allocation15_spill] sm:$0xff] }
 0xa2e   :  { %v2918_v30 = vmax.f32 %v2916_v49, 0.0  ;;  %v3026_v55 = vadd.f32 %v3001_v62, %v6996_v13 }
 0xa2f   :  { %v5388_v57 = vpop.f32.mrf.mxu1 }
 0xa30   :  { %v2919_v32 = vpack.c.bf16 %v2918_v30, %v2917_v48  ;;  %3030 = vrot.lane.b32.xlu1 %v3026_v55, %s5790_s18  ;;  %v8152_v57 = vld [vmem:[#allocation13_spill] sm:$0xff] }
 0xa31   :  { %v3004_v63 = vpop.f32.mrf.mxu1 }
 0xa32   :  { %v3027_v14 = vadd.f32 %v3004_v63, %v6996_v13  ;;  %5379 = vmatmul.mubr.msk.bf16.vlgmr.msra.gmra.mxu0 %vm1099_vm4, %v2919_v32  ;;  %v8153_v32 = vld [vmem:[#allocation14_spill] sm:$0xff] }
 0xa33   :  { %v5389_v21 = vpop.f32.mrf.mxu1  ;;  %5392 = vmatprep.mubr.msk.bf16.mxu0 %vm94_vm3, %v5694_v4  ;;  %v8156_v4 = vld [vmem:[#allocation18_spill] sm:$0xff] }
 0xa34   :  { %3032 = vrot.lane.b32.xlu0 %v3027_v14, %s5790_s18  ;;  %v8155_v14 = vld [vmem:[#allocation17_spill] sm:$0xff] }
 0xaa2   :  { %v3031_v51 = vpop.permute.xlu1 %3030 }
 0xaa6   :  { %v3033_v33 = vpop.permute.xlu0 %3032 }
 0xaf2   :  { %v2957_v38 = vpop.f32.mrf.mxu0 }
 0xaf3   :  { %v3008_v45 = vadd.f32 %v3001_v62, %v2957_v38  ;;  %v3024_v52 = vadd.f32 %v2957_v38, %v7017_v15  ;;  %v8157_v38 = vld [vmem:[#allocation19_spill] sm:$0xff] }
 0xaf4   :  { %v5380_v23 = vpop.f32.mrf.mxu0 }
 0xaf5   :  { %v3010_v61 = vadd.f32 %v3008_v45, %v7010_v46  ;;  %v5695_v45 = vld [vmem:[%s7945_s7 + $0x78] sm:$0xff]  }
 0xaf6   :  { %v2960_v27 = vpop.f32.mrf.mxu0  ;;  %v5696_v23 = vld [vmem:[%s7945_s7 + $0xf8] sm:$0xff]  }
 0xaf7   :  { %v4860_v34 = vmul.f32 -1.442695, %v3010_v61  ;;  %v3009_v1 = vadd.f32 %v3004_v63, %v2960_v27  ;;  %v3025_v0 = vadd.f32 %v2960_v27, %v7017_v15  ;;  %v8154_v63 = vld [vmem:[#allocation16_spill] sm:$0xff] }
 0xaf8   :  { %v5381_v2 = vpop.f32.mrf.mxu0  ;;  %v5697_v61 = vld [vmem:[%s7945_s7 + $0x38] sm:$0xff]  }
 0xaf9   :  { %5633 = vpow2.f32 %v4860_v34  ;;  %v3011_v56 = vadd.f32 %v3009_v1, %v7010_v46  ;;  %v5698_v27 = vld [vmem:[%s7945_s7 + $0xb8] sm:$0xff]   ;;  %v5699_v34 = vld [vmem:[%s7945_s7 + $0x70] sm:$0xff]  }
 0xafa   :  { %v5700_v1 = vld [vmem:[%s7945_s7 + $0xf0] sm:$0xff]  }
 0xafb   :  { %v4861_v39 = vmul.f32 -1.442695, %v3011_v56  ;;  %v5701_v2 = vld [vmem:[%s7945_s7 + $0x30] sm:$0xff]  }
 0xafc   :  { %v5702_v56 = vld [vmem:[%s7945_s7 + $0xb0] sm:$0xff]  }
 0xafd   :  { %5635 = vpow2.f32 %v4861_v39  ;;  %v5703_v39 = vld [vmem:[%s7945_s7 + $0x68] sm:$0xff]  }
 0xb06   :  { %v5634_v29 = vpop.eup %5633 }
 0xb07   :  { %v3018_v22 = vadd.f32 1.0, %v5634_v29  ;;  %v5704_v29 = vld [vmem:[%s7945_s7 + $0xe8] sm:$0xff]  }
 0xb09   :  { %5637 = vrcp.f32 %v3018_v22  ;;  %v5705_v22 = vld [vmem:[%s7945_s7 + $0x28] sm:$0xff]  }
 0xb0a   :  { %v5636_v17 = vpop.eup %5635 }
 0xb0b   :  { %v3019_v16 = vadd.f32 1.0, %v5636_v17  ;;  %v5706_v17 = vld [vmem:[%s7945_s7 + $0xa8] sm:$0xff]  }
 0xb0d   :  { %5639 = vrcp.f32 %v3019_v16  ;;  %v5707_v16 = vld [vmem:[%s7945_s7 + $0x60] sm:$0xff]  }
 0xb16   :  { %v5638_v26 = vpop.eup %5637 }
 0xb17   :  { %v3036_v9 = vmul.f32 %v5638_v26, %v3031_v51  ;;  %v3050_v31 = vsub.f32 1.0, %v5638_v26  ;;  %v3062_v58 = vmul.f32 %v5638_v26, %v7029_v28  ;;  %v8147_v28 = vld [vmem:[#allocation8_spill] sm:$0xff]  ;;  %v5708_v26 = vld [vmem:[%s7945_s7 + $0xe0] sm:$0xff]  }
 0xb18   :  { %v5709_v51 = vld [vmem:[%s7945_s7 + $0x20] sm:$0xff]  }
 0xb19   :  { %3040 = vrot.lane.b32.xlu1 %v3036_v9, %s5790_s18  ;;  %v5710_v9 = vld [vmem:[%s7945_s7 + $0xa0] sm:$0xff]  }
 0xb1a   :  { %v5640_v53 = vpop.eup %5639 }
 0xb1b   :  { %v3037_v50 = vmul.f32 %v5640_v53, %v3033_v33  ;;  %v3051_v24 = vsub.f32 1.0, %v5640_v53  ;;  %v3063_v25 = vmul.f32 %v5640_v53, %v7031_v41  ;;  %v8148_v41 = vld [vmem:[#allocation9_spill] sm:$0xff] }
 0xb1c   :  { %v5711_v53 = vld [vmem:[%s7945_s7 + $0x58] sm:$0xff]  }
 0xb1d   :  { %3042 = vrot.lane.b32.xlu0 %v3037_v50, %s5790_s18  ;;  %v5712_v33 = vld [vmem:[%s7945_s7 + $0xd8] sm:$0xff]  }
 0xb1e   :  { %v5713_v50 = vld [vmem:[%s7945_s7 + $0x18] sm:$0xff]  }
 0xb8b   :  { %v3041_v8 = vpop.permute.xlu1 %3040 }
 0xb8c   :  { %v3046_v42 = vadd.f32 %v3041_v8, %v3024_v52  ;;  %v5714_v52 = vld [vmem:[%s7945_s7 + $0x98] sm:$0xff]   ;;  %v5715_v8 = vld [vmem:[%s7945_s7 + $0x50] sm:$0xff]  }
 0xb8e   :  { %5641 = vtanh.f32 %v3046_v42  ;;  %v5716_v42 = vld [vmem:[%s7945_s7 + $0xd0] sm:$0xff]  }
 0xb8f   :  { %v3043_v19 = vpop.permute.xlu0 %3042 }
 0xb90   :  { %v3047_v35 = vadd.f32 %v3043_v19, %v3025_v0  ;;  %v5717_v0 = vld [vmem:[%s7945_s7 + $0x10] sm:$0xff]  }
 0xb91   :  { %v5718_v19 = vld [vmem:[%s7945_s7 + $0x90] sm:$0xff]  }
 0xb92   :  { %5643 = vtanh.f32 %v3047_v35  ;;  %v5719_v35 = vld [vmem:[%s7945_s7 + $0x48] sm:$0xff]  }
 0xb9b   :  { %v5642_v5 = vpop.eup %5641 }
 0xb9c   :  { %3054 = vrot.lane.b32.xlu1 %v5642_v5, %s5791_s17  ;;  %v5720_v5 = vld [vmem:[%s7945_s7 + $0xc8] sm:$0xff]  }
 0xb9f   :  { %v5644_v44 = vpop.eup %5643 }
 0xba0   :  { %3056 = vrot.lane.b32.xlu0 %v5644_v44, %s5791_s17  ;;  %v5721_v44 = vld [vmem:[%s7945_s7 + $0x8] sm:$0xff]  }
 0xc0e   :  { %v3055_v37 = vpop.permute.xlu1 %3054 }
 0xc0f   :  { %v3060_v11 = vmul.f32 %v3055_v37, %v3050_v31  ;;  %v5722_v37 = vld [vmem:[%s7945_s7 + $0x88] sm:$0xff]   ;;  %v5723_v31 = vld [vmem:[%s7945_s7 + $0x40] sm:$0xff]  }
 0xc11   :  { %v7218_v60 = vadd.f32 %v3062_v58, %v3060_v11  ;;  %v5724_v11 = vld [vmem:[%s7945_s7 + $0xc0] sm:$0xff]   ;;  %v5727_v58 = vld [vmem:[%s7945_s7 + $0x178] sm:$0xff]  }
 0xc12   :  { %v3057_v54 = vpop.permute.xlu0 %3056 }
 0xc13   :  { %v3061_v18 = vmul.f32 %v3057_v54, %v3051_v24  ;;  %v5725_v24 = vld [vmem:[%s7945_s7] sm:$0xff]  }
 0xc14   :  { %v5726_v54 = vld [vmem:[%s7945_s7 + $0x80] sm:$0xff]  }
 0xc15   :  { %v7220_v3 = vadd.f32 %v3063_v25, %v3061_v18  ;;  %v5728_v25 = vld [vmem:[%s7945_s7 + $0x1f8] sm:$0xff]  }
 0xc17   :  { %v3066_v43 = vpack.c.bf16 %v7220_v3, %v7218_v60 }
 0xc19   :  { %3068 = vrot.lane.b32.xlu1 %v3066_v43, %s5791_s17 }
 0xc8b   :  { %v7225_v59 = vpop.permute.xlu1 %3068 }
 0xc8c   :  { %5390 = vmatprep.subr.bf16.mxu0 %v7225_v59 }
 0xc8d   :  { %5391 = vmatpush3.bf16.msra.mxu0 %v7225_v59 }
 0xc8e   :  { %3193 = vmatprep.subr.bf16.mxu0 %v8146_v6 }
 0xc90   :  { %5393 = vmatmul.mubr.msk.bf16.vlgmr.msra.gmra.mxu0 %vm94_vm3, %v8147_v28 }
 0xc91   :  { %3194 = vmatpush1.bf16.msra.mxu0 %v8148_v41  ;;  %3213 = vmatprep.mubr.bf16.mxu0 %v8043_v10 }
 0xc92   :  { %3195 = vmatprep.subr.bf16.mxu0 %v8149_v47 }
 0xc95   :  { %3196 = vmatpush1.bf16.msra.mxu0 %v8150_v36  ;;  %v8158_v36 = vld [vmem:[#allocation54_spill] sm:$0xff] }
 0xc96   :  { %3299 = vmatprep.subr.bf16.mxu0 %v8151_v20 }
 0xd50   :  { %v5394_v49 = vpop.f32.mrf.mxu0 }
 0xd52   :  { %v3105_v62 = vpop.f32.mrf.mxu0 }
 0xd54   :  { %v5395_v48 = vpop.f32.mrf.mxu0 }
 0xd55   :  { %v3121_v21 = vpack.c.bf16 %v5395_v48, %v5394_v49  ;;  %v8159_v49 = vld [vmem:[#allocation55_spill] sm:$0xff] }
 0xd56   :  { %v3108_v30 = vpop.f32.mrf.mxu0 }
 0xd57   :  { %v3120_v55 = vpack.c.bf16 %v3108_v30, %v3105_v62 }
 0xd59   :  { %4864 = vmatmul.mubr.msk.bf16.vlgmr.msra.gmra.mxu1 %vm1099_vm4, %v3120_v55  ;;  %4866 = vmatmul.mubr.msk.bf16.vlgmr.msra.gmra.mxu0 %vm1099_vm4, %v3120_v55 }
 0xd5a   :  { %3170 = vmatprep.mubr.bf16.mxu1 %v8043_v10  ;;  %3223 = vmatprep.mubr.bf16.mxu0 %v8043_v10 }
 0xd5b   :  { %3247 = vmatpush1.bf16.msra.mxu1 %v8152_v57  ;;  %3300 = vmatpush1.bf16.msra.mxu0 %v8153_v32  ;;  %v8161_v32 = vld [vmem:[#allocation57_spill] sm:$0xff] }
 0xd5c   :  { %3248 = vmatprep.subr.bf16.mxu1 %v8154_v63  ;;  %3301 = vmatprep.subr.bf16.mxu0 %v8155_v14  ;;  %v8162_v14 = vld [vmem:[#allocation58_spill] sm:$0xff] }
 0xd5f   :  { %3249 = vmatpush1.bf16.msra.mxu1 %v8156_v4  ;;  %3302 = vmatpush1.bf16.msra.mxu0 %v8157_v38  ;;  %v8163_v4 = vld [vmem:[#allocation59_spill] sm:$0xff] }
 0xd60   :  { %5155 = vmatprep.subr.bf16.mxu1 %v5695_v45  ;;  %5183 = vmatprep.subr.bf16.mxu0 %v5696_v23  ;;  %v8164_v45 = vld [vmem:[#allocation60_spill] sm:$0xff] }
 0xd61   :  { %4865 = vmatmul.mubr.msk.bf16.gmra.mxu1 %vm1099_vm4, %v3121_v21  ;;  %4867 = vmatmul.mubr.msk.bf16.gmra.mxu0 %vm1099_vm4, %v3121_v21 }
 0xd62   :  { %3266 = vmatprep.mubr.bf16.mxu1 %v8043_v10  ;;  %3319 = vmatprep.mubr.bf16.mxu0 %v8043_v10 }
 0xd69   :  { %4868 = vmatmul.mubr.msk.bf16.vlgmr.msra.gmra.mxu1 %vm1099_vm4, %v3120_v55  ;;  %4870 = vmatmul.mubr.msk.bf16.vlgmr.msra.gmra.mxu0 %vm1099_vm4, %v3120_v55  ;;  %v8160_v55 = vld [vmem:[#allocation56_spill] sm:$0xff] }
 0xd6a   :  { %3276 = vmatprep.mubr.bf16.mxu1 %v8043_v10  ;;  %3329 = vmatprep.mubr.bf16.mxu0 %v8043_v10 }
 0xd6b   :  { %5156 = vmatpush3.bf16.msra.mxu1 %v5697_v61  ;;  %5184 = vmatpush3.bf16.msra.mxu0 %v5698_v27  ;;  %v8165_v61 = vld [vmem:[#allocation61_spill] sm:$0xff] }
 0xd6c   :  { %5157 = vmatprep.subr.bf16.mxu1 %v5699_v34  ;;  %5185 = vmatprep.subr.bf16.mxu0 %v5700_v1 }
 0xd6f   :  { %5158 = vmatpush3.bf16.msra.mxu1 %v5701_v2  ;;  %5186 = vmatpush3.bf16.msra.mxu0 %v5702_v56 }
 0xd70   :  { %5159 = vmatprep.subr.bf16.mxu1 %v5703_v39  ;;  %5187 = vmatprep.subr.bf16.mxu0 %v5704_v29 }
 0xd71   :  { %4869 = vmatmul.mubr.msk.bf16.gmra.mxu1 %vm1099_vm4, %v3121_v21  ;;  %4871 = vmatmul.mubr.msk.bf16.gmra.mxu0 %vm1099_vm4, %v3121_v21 }
 0xd73   :  { %5160 = vmatpush3.bf16.msra.mxu1 %v5705_v22  ;;  %5188 = vmatpush3.bf16.msra.mxu0 %v5706_v17 }
 0xd74   :  { %5161 = vmatprep.subr.bf16.mxu1 %v5707_v16  ;;  %5189 = vmatprep.subr.bf16.mxu0 %v5708_v26 }
 0xd77   :  { %5162 = vmatpush3.bf16.msra.mxu1 %v5709_v51  ;;  %5190 = vmatpush3.bf16.msra.mxu0 %v5710_v9  ;;  %v5729_v51 = vld [vmem:[%s7945_s7 + $0x138] sm:$0xff]  }
 0xd78   :  { %5163 = vmatprep.subr.bf16.mxu1 %v5711_v53  ;;  %5191 = vmatprep.subr.bf16.mxu0 %v5712_v33  ;;  %v5730_v9 = vld [vmem:[%s7945_s7 + $0x1b8] sm:$0xff]  }
 0xd79   :  { %v8166_v53 = vld [vmem:[#allocation65_spill] sm:$0xff] }
 0xd7b   :  { %5164 = vmatpush3.bf16.msra.mxu1 %v5713_v50  ;;  %5192 = vmatpush3.bf16.msra.mxu0 %v5714_v52  ;;  %v8167_v50 = vld [vmem:[#allocation67_spill] sm:$0xff] }
 0xd7c   :  { %5165 = vmatprep.subr.bf16.mxu1 %v5715_v8  ;;  %5193 = vmatprep.subr.bf16.mxu0 %v5716_v42 }
 0xd7f   :  { %5166 = vmatpush3.bf16.msra.mxu1 %v5717_v0  ;;  %5194 = vmatpush3.bf16.msra.mxu0 %v5718_v19  ;;  %v5731_v0 = vld [vmem:[%s7945_s7 + $0x170] sm:$0xff]  }
 0xd80   :  { %5167 = vmatprep.subr.bf16.mxu1 %v5719_v35  ;;  %5195 = vmatprep.subr.bf16.mxu0 %v5720_v5  ;;  %v5732_v19 = vld [vmem:[%s7945_s7 + $0x1f0] sm:$0xff]   ;;  %v8168_v35 = vld [vmem:[#allocation66_spill] sm:$0xff] }
 0xd83   :  { %5168 = vmatpush3.bf16.msra.mxu1 %v5721_v44  ;;  %5196 = vmatpush3.bf16.msra.mxu0 %v5722_v37  ;;  %v8169_v44 = vld [vmem:[#allocation68_spill] sm:$0xff] }
 0xd84   :  { %5169 = vmatprep.subr.bf16.mxu1 %v5723_v31  ;;  %5197 = vmatprep.subr.bf16.mxu0 %v5724_v11  ;;  %v8170_v31 = vld [vmem:[#allocation69_spill] sm:$0xff] }
 0xd87   :  { %5170 = vmatpush3.bf16.msra.mxu1 %v5725_v24  ;;  %5198 = vmatpush3.bf16.msra.mxu0 %v5726_v54  ;;  %v8171_v24 = vld [vmem:[#allocation70_spill] sm:$0xff] }
 0xd88   :  { %5211 = vmatprep.subr.bf16.mxu1 %v5727_v58  ;;  %5239 = vmatprep.subr.bf16.mxu0 %v5728_v25  ;;  %v8172_v58 = vld [vmem:[#allocation64_spill] sm:$0xff] }
 0xe19   :  { %v3162_v18 = vpop.f32.mrf.mxu1  ;;  %v3215_v43 = vpop.f32.mrf.mxu0 }
 0xe1a   :  { %v3340_v23 = vmul.f32 %v3162_v18, %v8164_v45  ;;  %v3342_v27 = vmul.f32 %v3215_v43, %v8165_v61  ;;  %v5739_v45 = vld [vmem:[%s7945_s7 + $0x160] sm:$0xff]  }
 0xe1b   :  { %v3164_v6 = vpop.f32.mrf.mxu1  ;;  %v3217_v28 = vpop.f32.mrf.mxu0 }
 0xe1c   :  { %v3341_v57 = vmul.f32 %v3164_v6, %v8160_v55  ;;  %v3343_v63 = vmul.f32 %v3217_v28, %v8161_v32  ;;  %v8173_v6 = vld [vmem:[#allocation72_spill] sm:$0xff] }
 0xe1d   :  { %v3166_v41 = vpop.f32.mrf.mxu1  ;;  %v3219_v47 = vpop.f32.mrf.mxu0 }
 0xe1e   :  { %v3348_v20 = vmul.f32 %v3166_v41, %v8158_v36  ;;  %v3350_v62 = vmul.f32 %v3219_v47, %v8159_v49  ;;  %v5733_v36 = vld [vmem:[%s7945_s7 + $0x130] sm:$0xff]  }
 0xe1f   :  { %v3168_v48 = vpop.f32.mrf.mxu1  ;;  %v3221_v30 = vpop.f32.mrf.mxu0  ;;  %v5734_v49 = vld [vmem:[%s7945_s7 + $0x1b0] sm:$0xff]  }
 0xe20   :  { %v3349_v21 = vmul.f32 %v3168_v48, %v8162_v14  ;;  %v3351_v38 = vmul.f32 %v3221_v30, %v8163_v4  ;;  %v3372_v39 = vpack.c.bf16 %v3348_v20, %v3340_v23  ;;  %v3374_v29 = vpack.c.bf16 %v3350_v62, %v3342_v27  ;;  %v5735_v30 = vld [vmem:[%s7945_s7 + $0x168] sm:$0xff]   ;;  %v8174_v23 = vld [vmem:[#allocation80_spill] sm:$0xff]  ;;  %v8175_v27 = vld [vmem:[#allocation81_spill] sm:$0xff] }
 0xe21   :  { %v3172_v34 = vpop.f32.mrf.mxu1  ;;  %v3225_v1 = vpop.f32.mrf.mxu0  ;;  %v5737_v14 = vld [vmem:[%s7945_s7 + $0x128] sm:$0xff]  }
 0xe22   :  { %v3373_v2 = vpack.c.bf16 %v3349_v21, %v3341_v57  ;;  %v3375_v56 = vpack.c.bf16 %v3351_v38, %v3343_v63  ;;  %v3356_v25 = vmul.f32 %v3172_v34, %v8172_v58  ;;  %v3358_v28 = vmul.f32 %v3225_v1, %v8173_v6  ;;  %v5736_v57 = vld [vmem:[%s7945_s7 + $0x1e8] sm:$0xff]  }
 0xe23   :  { %v3174_v22 = vpop.f32.mrf.mxu1  ;;  %v3227_v17 = vpop.f32.mrf.mxu0  ;;  %v5738_v21 = vld [vmem:[%s7945_s7 + $0x1a8] sm:$0xff]  }
 0xe24   :  { %3420 = vmatprep.mubr.bf16.mxu1 %v3373_v2  ;;  %3469 = vmatprep.mubr.bf16.mxu0 %v3375_v56  ;;  %v3357_v33 = vmul.f32 %v3174_v22, %v8166_v53  ;;  %v3359_v5 = vmul.f32 %v3227_v17, %v8168_v35  ;;  %v8176_v1 = vld [vmem:[#allocation82_spill] sm:$0xff]  ;;  %v8177_v56 = vld [vmem:[#allocation83_spill] sm:$0xff]  ;;  %v5743_v53 = vld [vmem:[%s7945_s7 + $0x158] sm:$0xff]  }
 0xe25   :  { %v3176_v16 = vpop.f32.mrf.mxu1  ;;  %v3229_v26 = vpop.f32.mrf.mxu0  ;;  %3421 = vmatmul.mubr.bf16.vlgmr.msra.gmra.mxu1 %v3372_v39  ;;  %3470 = vmatmul.mubr.bf16.vlgmr.msra.gmra.mxu0 %v3374_v29  ;;  %v5740_v29 = vld [vmem:[%s7945_s7 + $0x1e0] sm:$0xff]   ;;  %v5753_v58 = vld [vmem:[%s7945_s7 + $0x108] sm:$0xff]  }
 0xe26   :  { %5212 = vmatpush3.bf16.msra.mxu1 %v5729_v51  ;;  %5240 = vmatpush3.bf16.msra.mxu0 %v5730_v9  ;;  %v3364_v52 = vmul.f32 %v3176_v16, %v8167_v50  ;;  %v3366_v37 = vmul.f32 %v3229_v26, %v8169_v44  ;;  %v5741_v51 = vld [vmem:[%s7945_s7 + $0x120] sm:$0xff]   ;;  %v5749_v44 = vld [vmem:[%s7945_s7 + $0x110] sm:$0xff]  }
 0xe27   :  { %v3178_v8 = vpop.f32.mrf.mxu1  ;;  %v3231_v42 = vpop.f32.mrf.mxu0  ;;  %5213 = vmatprep.subr.bf16.mxu1 %v5731_v0  ;;  %5241 = vmatprep.subr.bf16.mxu0 %v5732_v19  ;;  %v5742_v9 = vld [vmem:[%s7945_s7 + $0x1a0] sm:$0xff]   ;;  %v5747_v0 = vld [vmem:[%s7945_s7 + $0x150] sm:$0xff]  }
 0xe28   :  { %v3365_v11 = vmul.f32 %v3178_v8, %v8170_v31  ;;  %v3367_v54 = vmul.f32 %v3231_v42, %v8171_v24  ;;  %v3380_v20 = vpack.c.bf16 %v3364_v52, %v3356_v25  ;;  %v3382_v55 = vpack.c.bf16 %v3366_v37, %v3358_v28  ;;  %v5745_v8 = vld [vmem:[%s7945_s7 + $0x118] sm:$0xff]   ;;  %v5748_v19 = vld [vmem:[%s7945_s7 + $0x1d0] sm:$0xff]   ;;  %v5751_v31 = vld [vmem:[%s7945_s7 + $0x148] sm:$0xff]  }
 0xe29   :  { %v7386_v18 = vpop.f32.mrf.mxu1  ;;  %v7388_v43 = vpop.f32.mrf.mxu0  ;;  %v5746_v42 = vld [vmem:[%s7945_s7 + $0x198] sm:$0xff]   ;;  %v5750_v37 = vld [vmem:[%s7945_s7 + $0x190] sm:$0xff]   ;;  %v5754_v28 = vld [vmem:[%s7945_s7 + $0x188] sm:$0xff]  }
 0xe2a   :  { %v3381_v41 = vpack.c.bf16 %v3365_v11, %v3357_v33  ;;  %v3383_v47 = vpack.c.bf16 %v3367_v54, %v3359_v5  ;;  %5214 = vmatpush3.bf16.msra.mxu1 %v5733_v36  ;;  %5242 = vmatpush3.bf16.msra.mxu0 %v5734_v49  ;;  %v5744_v33 = vld [vmem:[%s7945_s7 + $0x1d8] sm:$0xff]   ;;  %v5752_v11 = vld [vmem:[%s7945_s7 + $0x1c8] sm:$0xff]  }
 0xe2b   :  { %v3270_v62 = vpop.f32.mrf.mxu1  ;;  %v3323_v48 = vpop.f32.mrf.mxu0  ;;  %5215 = vmatprep.subr.bf16.mxu1 %v5735_v30  ;;  %5243 = vmatprep.subr.bf16.mxu0 %v5736_v57  ;;  %v8178_v25 = vld [vmem:[#allocation100_spill] sm:$0xff] }
 0xe2c   :  { %3428 = vmatprep.mubr.bf16.mxu1 %v3381_v41  ;;  %3477 = vmatprep.mubr.bf16.mxu0 %v3383_v47  ;;  %v3345_v61 = vmul.f32 %v3270_v62, %v8174_v23  ;;  %v3347_v34 = vmul.f32 %v3323_v48, %v8175_v27  ;;  %v5755_v41 = vld [vmem:[%s7945_s7 + $0x140] sm:$0xff]   ;;  %v8181_v48 = vld [vmem:[#allocation104_spill] sm:$0xff] }
 0xe2d   :  { %v3272_v32 = vpop.f32.mrf.mxu1  ;;  %v3325_v63 = vpop.f32.mrf.mxu0  ;;  %3429 = vmatmul.mubr.bf16.gmra.mxu1 %v3380_v20  ;;  %3478 = vmatmul.mubr.bf16.gmra.mxu0 %v3382_v55  ;;  %v8179_v47 = vld [vmem:[#allocation101_spill] sm:$0xff]  ;;  %v8180_v20 = vld [vmem:[#allocation102_spill] sm:$0xff]  ;;  %v3344_v30 = vmul.f32 %v7386_v18, %v8181_v48 }
 0xe2e   :  { %5216 = vmatpush3.bf16.msra.mxu1 %v5737_v14  ;;  %5244 = vmatpush3.bf16.msra.mxu0 %v5738_v21  ;;  %v3352_v6 = vmul.f32 %v3272_v32, %v8178_v25  ;;  %v3354_v36 = vmul.f32 %v3325_v63, %v8179_v47  ;;  %v5756_v62 = vld [vmem:[%s7945_s7 + $0x1c0] sm:$0xff]   ;;  %v8183_v32 = vld [vmem:[#allocation107_spill] sm:$0xff]  ;;  %v8184_v21 = vld [vmem:[#allocation108_spill] sm:$0xff] }
 0xe2f   :  { %v3274_v4 = vpop.f32.mrf.mxu1  ;;  %v3327_v38 = vpop.f32.mrf.mxu0  ;;  %5217 = vmatprep.subr.bf16.mxu1 %v5739_v45  ;;  %5245 = vmatprep.subr.bf16.mxu0 %v5740_v29  ;;  %v8182_v55 = vld [vmem:[#allocation105_spill] sm:$0xff]  ;;  %v3346_v14 = vmul.f32 %v7388_v43, %v8183_v32  ;;  %v8188_v29 = vld [vmem:[#allocation112_spill] sm:$0xff] }
 0xe30   :  { %v3353_v2 = vmul.f32 %v3274_v4, %v8176_v1  ;;  %v3355_v39 = vmul.f32 %v3327_v38, %v8177_v56  ;;  %v5757_v63 = vld [vmem:[%s7945_s7 + $0x100] sm:$0xff]   ;;  %v3376_v38 = vpack.c.bf16 %v3352_v6, %v3344_v30  ;;  %v8187_v56 = vld [vmem:[#allocation111_spill] sm:$0xff] }
 0xe31   :  { %v7419_v22 = vpop.f32.mrf.mxu1  ;;  %v7421_v26 = vpop.f32.mrf.mxu0  ;;  %v8185_v45 = vld [vmem:[#allocation109_spill] sm:$0xff]  ;;  %v3378_v18 = vpack.c.bf16 %v3354_v36, %v3346_v14 }
 0xe32   :  { %v3377_v17 = vpack.c.bf16 %v3353_v2, %v3345_v61  ;;  %v3379_v16 = vpack.c.bf16 %v3355_v39, %v3347_v34  ;;  %5218 = vmatpush3.bf16.msra.mxu1 %v5741_v51  ;;  %5246 = vmatpush3.bf16.msra.mxu0 %v5742_v9  ;;  %v5758_v61 = vld [vmem:[%s7945_s7 + $0x180] sm:$0xff]   ;;  %v5759_v2 = vld [vmem:[%s7754_s15 + $0x8] sm:$0xff]  }
 0xe33   :  { %5219 = vmatprep.subr.bf16.mxu1 %v5743_v53  ;;  %5247 = vmatprep.subr.bf16.mxu0 %v5744_v33  ;;  %v3280_v50 = vpop.f32.mrf.mxu1  ;;  %v3333_v52 = vpop.f32.mrf.mxu0  ;;  %v8186_v34 = vld [vmem:[#allocation110_spill] sm:$0xff] }
 0xe34   :  { %3518 = vmatprep.mubr.bf16.mxu1 %v3377_v17  ;;  %3567 = vmatprep.mubr.bf16.mxu0 %v3379_v16  ;;  %v3361_v4 = vmul.f32 %v3280_v50, %v8184_v21  ;;  %v3363_v23 = vmul.f32 %v3333_v52, %v8185_v45  ;;  %v3360_v17 = vmul.f32 %v7419_v22, %v8188_v29  ;;  %v8189_v16 = vld [vmem:[#allocation113_spill] sm:$0xff] }
 0xe35   :  { %v3282_v35 = vpop.f32.mrf.mxu1  ;;  %v3335_v5 = vpop.f32.mrf.mxu0  ;;  %v3362_v51 = vmul.f32 %v7421_v26, %v8189_v16  ;;  %v5760_v53 = vld [vmem:[%s7754_s15] sm:$0xff]  }
 0xe36   :  { %5220 = vmatpush3.bf16.msra.mxu1 %v5745_v8  ;;  %5248 = vmatpush3.bf16.msra.mxu0 %v5746_v42  ;;  %v3368_v1 = vmul.f32 %v3282_v35, %v8186_v34  ;;  %v3370_v39 = vmul.f32 %v3335_v5, %v8187_v56 }
 0xe37   :  { %5221 = vmatprep.subr.bf16.mxu1 %v5747_v0  ;;  %5249 = vmatprep.subr.bf16.mxu0 %v5748_v19  ;;  %v3284_v24 = vpop.f32.mrf.mxu1  ;;  %v3337_v54 = vpop.f32.mrf.mxu0 }
 0xe38   :  { %v3369_v49 = vmul.f32 %v3284_v24, %v8180_v20  ;;  %v3371_v57 = vmul.f32 %v3337_v54, %v8182_v55  ;;  %v3384_v9 = vpack.c.bf16 %v3368_v1, %v3360_v17  ;;  %v3386_v33 = vpack.c.bf16 %v3370_v39, %v3362_v51 }
 0xe3a   :  { %5222 = vmatpush3.bf16.msra.mxu1 %v5749_v44  ;;  %5250 = vmatpush3.bf16.msra.mxu0 %v5750_v37  ;;  %v3385_v27 = vpack.c.bf16 %v3369_v49, %v3361_v4  ;;  %v3387_v43 = vpack.c.bf16 %v3371_v57, %v3363_v23 }
 0xe3b   :  { %5223 = vmatprep.subr.bf16.mxu1 %v5751_v31  ;;  %5251 = vmatprep.subr.bf16.mxu0 %v5752_v11 }
 0xe3e   :  { %5224 = vmatpush3.bf16.msra.mxu1 %v5753_v58  ;;  %5252 = vmatpush3.bf16.msra.mxu0 %v5754_v28 }
 0xe3f   :  { %5225 = vmatprep.subr.bf16.mxu1 %v5755_v41  ;;  %5253 = vmatprep.subr.bf16.mxu0 %v5756_v62 }
 0xe42   :  { %5226 = vmatpush3.bf16.msra.mxu1 %v5757_v63  ;;  %5254 = vmatpush3.bf16.msra.mxu0 %v5758_v61 }
 0xe43   :  { %5396 = vmatprep.subr.bf16.mxu1 %v8036_v12  ;;  %5404 = vmatprep.subr.bf16.mxu0 %v8036_v12 }
 0xe45   :  { %3519 = vmatmul.mubr.bf16.vlgmr.msra.gmra.mxu1 %v3376_v38  ;;  %3568 = vmatmul.mubr.bf16.vlgmr.msra.gmra.mxu0 %v3378_v18 }
 0xe46   :  { %3526 = vmatprep.mubr.bf16.mxu1 %v3385_v27  ;;  %3575 = vmatprep.mubr.bf16.mxu0 %v3387_v43 }
 0xe47   :  { %5405 = vmatpush3.bf16.msra.mxu0 %v5759_v2 }
 0xe48   :  { %5406 = vmatprep.subr.bf16.mxu0 %v8036_v12 }
 0xe4b   :  { %5407 = vmatpush3.bf16.msra.mxu0 %v5760_v53 }
 0xe4c   :  { %5420 = vmatprep.subr.bf16.mxu0 %v8036_v12 }
 0xe4d   :  { %3527 = vmatmul.mubr.bf16.gmra.mxu1 %v3384_v9  ;;  %3576 = vmatmul.mubr.bf16.gmra.mxu0 %v3386_v33 }
 0xe4e   :  { %5400 = vmatprep.mubr.msk.bf16.mxu1 %vm5788_vm2, %v8036_v12  ;;  %5408 = vmatprep.mubr.msk.bf16.mxu0 %vm5788_vm2, %v8036_v12 }
 0xee5   :  { %v5171_v22 = vpop.f32.mrf.mxu1  ;;  %v5199_v50 = vpop.f32.mrf.mxu0 }
 0xee7   :  { %v5172_v26 = vpop.f32.mrf.mxu1  ;;  %v5200_v52 = vpop.f32.mrf.mxu0 }
 0xee8   :  { %v5173_v38 = vadd.f32 %v5172_v26, %v5171_v22  ;;  %v5201_v45 = vadd.f32 %v5200_v52, %v5199_v50 }
 0xee9   :  { %v5174_v8 = vpop.f32.mrf.mxu1  ;;  %v5202_v42 = vpop.f32.mrf.mxu0 }
 0xeea   :  { %v3472_v17 = vadd.f32 %v5201_v45, %v5173_v38 }
 0xeeb   :  { %v5175_v0 = vpop.f32.mrf.mxu1  ;;  %v5203_v19 = vpop.f32.mrf.mxu0 }
 0xeec   :  { %v5176_v55 = vadd.f32 %v5175_v0, %v5174_v8  ;;  %v5204_v57 = vadd.f32 %v5203_v19, %v5202_v42 }
 0xeed   :  { %v5177_v35 = vpop.f32.mrf.mxu1  ;;  %v5205_v5 = vpop.f32.mrf.mxu0 }
 0xeee   :  { %v3475_v43 = vadd.f32 %v5204_v57, %v5176_v55  ;;  %v7562_v57 = vld [vmem:[%s7759_s20] sm:$0xff]  }
 0xeef   :  { %v5178_v44 = vpop.f32.mrf.mxu1  ;;  %v5206_v37 = vpop.f32.mrf.mxu0 }
 0xef0   :  { %v5179_v62 = vadd.f32 %v5178_v44, %v5177_v35  ;;  %v5207_v48 = vadd.f32 %v5206_v37, %v5205_v5  ;;  %v5761_v35 = vld [vmem:[%s8042_s30] sm:$0xff]   ;;  %v5762_v5 = vld [vmem:[%s7755_s16 + $0x8] sm:$0xff]  }
 0xef1   :  { %v5180_v31 = vpop.f32.mrf.mxu1  ;;  %v5208_v11 = vpop.f32.mrf.mxu0  ;;  %v5763_v44 = vld [vmem:[%s7755_s16] sm:$0xff]   ;;  %v7530_v37 = vld [vmem:[%s7758_s19 + $0x8] sm:$0xff]  }
 0xef2   :  { %v3480_v61 = vadd.f32 %v5207_v48, %v5179_v62 }
 0xef3   :  { %v5181_v24 = vpop.f32.mrf.mxu1  ;;  %v5209_v54 = vpop.f32.mrf.mxu0 }
 0xef4   :  { %v5182_v14 = vadd.f32 %v5181_v24, %v5180_v31  ;;  %v5210_v21 = vadd.f32 %v5209_v54, %v5208_v11  ;;  %v7537_v31 = vld [vmem:[%s7758_s19] sm:$0xff]  }
 0xef6   :  { %v3483_v1 = vadd.f32 %v5210_v21, %v5182_v14 }
 0xf05   :  { %v5227_v58 = vpop.f32.mrf.mxu1  ;;  %v5255_v25 = vpop.f32.mrf.mxu0 }
 0xf07   :  { %v5228_v6 = vpop.f32.mrf.mxu1  ;;  %v5256_v28 = vpop.f32.mrf.mxu0 }
 0xf08   :  { %v5229_v2 = vadd.f32 %v5228_v6, %v5227_v58  ;;  %v5257_v26 = vadd.f32 %v5256_v28, %v5255_v25  ;;  %v5764_v58 = vld [vmem:[%s7753_s14] ss:$0 sm:$0xff] }
 0xf09   :  { %v5230_v41 = vpop.f32.mrf.mxu1  ;;  %v5258_v47 = vpop.f32.mrf.mxu0 }
 0xf0a   :  { %v3521_v33 = vadd.f32 %v5229_v2, %v3472_v17 }
 0xf0b   :  { %v5231_v36 = vpop.f32.mrf.mxu1  ;;  %v5259_v20 = vpop.f32.mrf.mxu0 }
 0xf0c   :  { %v5232_v18 = vadd.f32 %v5231_v36, %v5230_v41  ;;  %v5260_v8 = vadd.f32 %v5259_v20, %v5258_v47  ;;  %v3570_v0 = vadd.f32 %v5257_v26, %v3521_v33 }
 0xf0d   :  { %v5233_v49 = vpop.f32.mrf.mxu1  ;;  %v5261_v30 = vpop.f32.mrf.mxu0 }
 0xf0e   :  { %v3524_v16 = vadd.f32 %v5232_v18, %v3475_v43 }
 0xf0f   :  { %v5234_v32 = vpop.f32.mrf.mxu1  ;;  %v5262_v63 = vpop.f32.mrf.mxu0 }
 0xf10   :  { %v5235_v4 = vadd.f32 %v5234_v32, %v5233_v49  ;;  %v5263_v51 = vadd.f32 %v5262_v63, %v5261_v30  ;;  %v3573_v52 = vadd.f32 %v5260_v8, %v3524_v16  ;;  %v7580_v32 = vld [vmem:[%s7760_s21] sm:$0xff]  }
 0xf11   :  { %v5236_v23 = vpop.f32.mrf.mxu1  ;;  %v5264_v27 = vpop.f32.mrf.mxu0  ;;  %v7595_v16 = vld [vmem:[%s7761_s22] ss:$0 sm:$0xff] }
 0xf12   :  { %v3529_v56 = vadd.f32 %v5235_v4, %v3480_v61  ;;  %v3584_v19 = vpack.c.bf16 %v3573_v52, %v3570_v0 }
 0xf13   :  { %v5237_v34 = vpop.f32.mrf.mxu1  ;;  %v5265_v29 = vpop.f32.mrf.mxu0 }
 0xf14   :  { %v5238_v39 = vadd.f32 %v5237_v34, %v5236_v23  ;;  %v5266_v53 = vadd.f32 %v5265_v29, %v5264_v27  ;;  %v3578_v22 = vadd.f32 %v5263_v51, %v3529_v56 }
 0xf16   :  { %v3532_v9 = vadd.f32 %v5238_v39, %v3483_v1 }
 0xf18   :  { %v3581_v50 = vadd.f32 %v5266_v53, %v3532_v9 }
 0xf1a   :  { %v3585_v42 = vpack.c.bf16 %v3581_v50, %v3578_v22 }
 0xf1c   :  { %5397 = vmatpush3.bf16.msra.mxu1 %v3585_v42 }
 0xf1d   :  { %5398 = vmatprep.subr.bf16.mxu1 %v8036_v12 }
 0xf20   :  { %5399 = vmatpush3.bf16.msra.mxu1 %v3584_v19 }
 0xf21   :  { %5412 = vmatprep.subr.bf16.mxu1 %v8036_v12 }
 0xf23   :  { %5401 = vmatmul.mubr.msk.bf16.vlgmr.msra.gmra.mxu1 %vm1099_vm4, %v5761_v35 }
 0xf24   :  { %5413 = vmatpush3.bf16.msra.mxu1 %v5762_v5  ;;  %5416 = vmatprep.mubr.msk.bf16.mxu1 %vm5788_vm2, %v8036_v12 }
 0xf25   :  { %5414 = vmatprep.subr.bf16.mxu1 %v8036_v12 }
 0xf28   :  { %5415 = vmatpush3.bf16.msra.mxu1 %v5763_v44 }
 0xf29   :  { %5428 = vmatprep.subr.bf16.mxu1 %v8036_v12 }
 0xf2b   :  { %5417 = vmatmul.mubr.msk.bf16.vlgmr.msra.gmra.mxu1 %vm1099_vm4, %v7225_v59 }
 0xf2c   :  { %5432 = vmatprep.mubr.msk.bf16.mxu1 %vm5788_vm2, %v8036_v12  ;;  %5429 = vmatpush3.bf16.msra.mxu1 %v7530_v37 }
 0xf2d   :  { %5430 = vmatprep.subr.bf16.mxu1 %v8036_v12 }
 0xf30   :  { %5431 = vmatpush3.bf16.msra.mxu1 %v7537_v31 }
 0xf31   :  { %5444 = vmatprep.subr.bf16.mxu1 %v8036_v12 }
 0xf33   :  { %5433 = vmatmul.mubr.bf16.vlgmr.msra.gmra.mxu1 %v8043_v10 }
 0xf34   :  { %5448 = vmatprep.mubr.msk.bf16.mxu1 %vm5788_vm2, %v8036_v12 }
 0xfe3   :  { %v3620_v59 = vpop.f32.mrf.mxu1 }
 0xfe4   :  { %v3627_v11 = vmul.f32 %v3620_v59, %v6980_v40  ;;  %v7553_v40 = vld [vmem:[%s7759_s20 + $0x8] sm:$0xff]  }
 0xfe5   :  { %v5402_v24 = vpop.f32.mrf.mxu1 }
 0xfe6   :  { %v3629_v25 = vadd.f32 %v5764_v58, %v3627_v11 }
 0xfe7   :  { %v3623_v54 = vpop.f32.mrf.mxu1 }
 0xfe8   :  { %v3628_v6 = vmul.f32 %v3623_v54, %v6991_v7  ;;  %v3631_v36 = vmax.f32 %v3629_v25, 0.0 }
 0xfe9   :  { %v5403_v28 = vpop.f32.mrf.mxu1 }
 0xfea   :  { %v3630_v41 = vadd.f32 %v5764_v58, %v3628_v6 }
 0xfeb   :  { %v3715_v47 = vpop.f32.mrf.mxu1 }
 0xfec   :  { %v3632_v20 = vmax.f32 %v3630_v41, 0.0  ;;  %v3740_v49 = vadd.f32 %v3715_v47, %v6996_v13 }
 0xfed   :  { %v5418_v62 = vpop.f32.mrf.mxu1 }
 0xfee   :  { %v3633_v48 = vpack.c.bf16 %v3632_v20, %v3631_v36  ;;  %3744 = vrot.lane.b32.xlu0 %v3740_v49, %s5790_s18 }
 0xfef   :  { %v3718_v30 = vpop.f32.mrf.mxu1 }
 0xff0   :  { %v3741_v55 = vadd.f32 %v3718_v30, %v6996_v13  ;;  %5409 = vmatmul.mubr.msk.bf16.vlgmr.msra.gmra.mxu0 %vm1099_vm4, %v3633_v48  ;;  %v7572_v13 = vld [vmem:[%s7760_s21 + $0x8] sm:$0xff]  }
 0xff1   :  { %v5419_v7 = vpop.f32.mrf.mxu1  ;;  %5421 = vmatpush3.bf16.msra.mxu0 %v7553_v40  ;;  %5424 = vmatprep.mubr.msk.bf16.mxu0 %vm5788_vm2, %v8036_v12 }
 0xff2   :  { %3746 = vrot.lane.b32.xlu1 %v3741_v55, %s5790_s18  ;;  %5422 = vmatprep.subr.bf16.mxu0 %v8036_v12 }
 0xff3   :  { %v3945_v14 = vpop.f32.mrf.mxu1 }
 0xff5   :  { %5423 = vmatpush3.bf16.msra.mxu0 %v7562_v57  ;;  %v5434_v21 = vpop.f32.mrf.mxu1 }
 0xff6   :  { %5436 = vmatprep.subr.bf16.mxu0 %v8036_v12 }
 0xff7   :  { %v3948_v4 = vpop.f32.mrf.mxu1 }
 0xff8   :  { %5425 = vmatmul.mubr.bf16.vlgmr.msra.gmra.mxu0 %v8043_v10 }
 0xff9   :  { %5437 = vmatpush3.bf16.msra.mxu0 %v7572_v13  ;;  %5440 = vmatprep.mubr.msk.bf16.mxu0 %vm5788_vm2, %v8036_v12  ;;  %v5435_v63 = vpop.f32.mrf.mxu1 }
 0xffa   :  { %5438 = vmatprep.subr.bf16.mxu0 %v8036_v12 }
 0xffd   :  { %5439 = vmatpush3.bf16.msra.mxu0 %v7580_v32 }
 0xffe   :  { %5452 = vmatprep.subr.bf16.mxu0 %v8036_v12 }
0x1000   :  { %5441 = vmatmul.mubr.bf16.vlgmr.msra.gmra.mxu0 %v8043_v10 }
0x1001   :  { %5454 = vmatprep.mubr.msk.bf16.mxu0 %vm5788_vm2, %v8036_v12 }
0x1060   :  { %v3745_v19 = vpop.permute.xlu0 %3744 }
0x1064   :  { %v3747_v44 = vpop.permute.xlu1 %3746 }
0x10b0   :  { %v3671_v38 = vpop.f32.mrf.mxu0 }
0x10b1   :  { %v3722_v45 = vadd.f32 %v3715_v47, %v3671_v38  ;;  %v3738_v28 = vadd.f32 %v3671_v38, %v7017_v15 }
0x10b2   :  { %v5410_v23 = vpop.f32.mrf.mxu0 }
0x10b3   :  { %v3724_v61 = vadd.f32 %v3722_v45, %v7010_v46 }
0x10b4   :  { %v3674_v18 = vpop.f32.mrf.mxu0 }
0x10b5   :  { %v4875_v27 = vmul.f32 -1.442695, %v3724_v61  ;;  %v3723_v43 = vadd.f32 %v3718_v30, %v3674_v18  ;;  %v3739_v36 = vadd.f32 %v3674_v18, %v7017_v15 }
0x10b6   :  { %v5411_v34 = vpop.f32.mrf.mxu0 }
0x10b7   :  { %5645 = vpow2.f32 %v4875_v27  ;;  %v3725_v1 = vadd.f32 %v3723_v43, %v7010_v46 }
0x10b8   :  { %v3893_v10 = vpop.f32.mrf.mxu0 }
0x10b9   :  { %v4876_v2 = vmul.f32 -1.442695, %v3725_v1  ;;  %v3946_v17 = vadd.f32 %v3945_v14, %v3893_v10 }
0x10ba   :  { %v5426_v56 = vpop.f32.mrf.mxu0 }
0x10bb   :  { %5647 = vpow2.f32 %v4876_v2 }
0x10bc   :  { %v3896_v39 = vpop.f32.mrf.mxu0 }
0x10be   :  { %v5427_v29 = vpop.f32.mrf.mxu0 }
0x10c0   :  { %v3997_v51 = vpop.f32.mrf.mxu0 }
0x10c1   :  { %v4003_v9 = vadd.f32 %v3997_v51, %v3946_v17 }
0x10c2   :  { %v5442_v53 = vpop.f32.mrf.mxu0 }
0x10c3   :  { %v4004_v33 = vadd.f32 %v7595_v16, %v4003_v9  ;;  %v7633_v53 = vld [vmem:[%s8190_s5] sm:$0x3] }
0x10c4   :  { %v5646_v8 = vpop.eup %5645  ;;  %v4000_v22 = vpop.f32.mrf.mxu0  ;;  %vm3781_vm5 = vcmp.gt.f32.partialorder %v7633_v53, 0.0 }
0x10c5   :  { %v3732_v46 = vadd.f32 1.0, %v5646_v8  ;;  %5649 = vtanh.f32 %v4004_v33  ;;  %v4884_v11 = vmul.f32 -1.442695, %v4004_v33 }
0x10c6   :  { %v5443_v50 = vpop.f32.mrf.mxu0 }
0x10c7   :  { %5651 = vrcp.f32 %v3732_v46 }
0x10c8   :  { %v5648_v26 = vpop.eup %5647 }
0x10c9   :  { %v3733_v52 = vadd.f32 1.0, %v5648_v26 }
0x10cb   :  { %5653 = vrcp.f32 %v3733_v52 }
0x10cc   :  { %5655 = vpow2.f32 %v4884_v11 }
0x10d2   :  { %v5650_v42 = vpop.eup %5649 }
0x10d3   :  { %4014 = vrot.lane.b32.xlu0 %v5650_v42, %s5792_s11 }
0x10d4   :  { %v5652_v0 = vpop.eup %5651 }
0x10d5   :  { %v3750_v35 = vmul.f32 %v5652_v0, %v3745_v19  ;;  %v3764_v15 = vsub.f32 1.0, %v5652_v0  ;;  %v3776_v4 = vmul.f32 %v5652_v0, %v7218_v60 }
0x10d7   :  { %3754 = vrot.lane.b32.xlu1 %v3750_v35, %s5790_s18 }
0x10d8   :  { %v5654_v5 = vpop.eup %5653 }
0x10d9   :  { %v3751_v59 = vmul.f32 %v5654_v5, %v3747_v44  ;;  %v5656_v24 = vpop.eup %5655  ;;  %v3765_v45 = vsub.f32 1.0, %v5654_v5  ;;  %v3777_v61 = vmul.f32 %v5654_v5, %v7220_v3 }
0x10da   :  { %v4008_v54 = vadd.f32 1.0, %v5656_v24 }
0x10db   :  { %3756 = vrot.lane.b32.xlu0 %v3751_v59, %s5790_s18 }
0x10dc   :  { %5657 = vrcp.f32 %v4008_v54 }
0x10e9   :  { %v5658_v58 = vpop.eup %5657 }
0x10ea   :  { %v4012_v30 = vmul.f32 0.0, %v5658_v58 }
0x1145   :  { %v4015_v25 = vpop.permute.xlu0 %4014 }
0x1146   :  { %v4017_v6 = vmul.f32 %v5658_v58, %v4015_v25 }
0x1148   :  { %4019 = vrot.lane.b32.xlu1 %v4017_v6, %s5792_s11 }
0x1149   :  { %v3755_v41 = vpop.permute.xlu1 %3754 }
0x114a   :  { %v3760_v47 = vadd.f32 %v3755_v41, %v3738_v28 }
0x114c   :  { %5659 = vtanh.f32 %v3760_v47 }
0x114d   :  { %v3757_v20 = vpop.permute.xlu0 %3756 }
0x114e   :  { %v3761_v49 = vadd.f32 %v3757_v20, %v3739_v36 }
0x1150   :  { %5661 = vtanh.f32 %v3761_v49 }
0x1159   :  { %v5660_v62 = vpop.eup %5659 }
0x115a   :  { %3768 = vrot.lane.b32.xlu0 %v5660_v62, %s5791_s17 }
0x115d   :  { %v5662_v48 = vpop.eup %5661 }
0x115e   :  { %3770 = vrot.lane.b32.xlu1 %v5662_v48, %s5791_s17 }
0x11ba   :  { %v4020_v55 = vpop.permute.xlu1 %4019 }
0x11bb   :  { %v7606_v7 = vadd.f32 %v4020_v55, %v4012_v30 }
0x11bd   :  { %5663 = vtanh.f32 %v7606_v7 }
0x11ca   :  { %v5664_v14 = vpop.eup %5663 }
0x11cb   :  { %4025 = vrot.lane.b32.xlu0 %v5664_v14, %s5792_s11 }
0x11cc   :  { %v3769_v21 = vpop.permute.xlu0 %3768 }
0x11cd   :  { %v3774_v63 = vmul.f32 %v3769_v21, %v3764_v15 }
0x11cf   :  { %v3778_v38 = vadd.f32 %v3776_v4, %v3774_v63 }
0x11d0   :  { %v3771_v23 = vpop.permute.xlu1 %3770 }
0x11d1   :  { %v3775_v18 = vmul.f32 %v3771_v23, %v3765_v45  ;;  %3785 = vrot.lane.b32.xlu1 %v3778_v38, %s5791_s17 }
0x11d3   :  { %v3779_v27 = vadd.f32 %v3777_v61, %v3775_v18 }
0x11d5   :  { %3787 = vrot.lane.b32.xlu0 %v3779_v27, %s5791_s17  ;;  %v3782_v43 = vpack.c.bf16 %v3779_v27, %v3778_v38 }
0x123d   :  { %v4026_v34 = vpop.permute.xlu0 %4025 }
0x123e   :  { %v4028_v1 = vmul.f32 %v5658_v58, %v4026_v34 }
0x1240   :  { %v4029_v10 = vpack.c.bf16 %v4028_v1, %v4028_v1 }
0x1242   :  { %4031 = vrot.lane.b32.xlu1 %v4029_v10, %s5790_s18 }
0x1243   :  { %v3786_v2 = vpop.permute.xlu1 %3785 }
0x1244   :  { %3791 = vxpose.xlu0.b32.start [1/2] (short) (narrow) %v3786_v2, 32 }
0x1247   :  { %v3788_v60 = vpop.permute.xlu0 %3787 }
0x1248   :  { %3792 = vxpose.xlu0.b32.end [2/2] (short) (narrow) %v3788_v60, 32 }
0x12b4   :  { %v4032_v9 = vpop.permute.xlu1 %4031 }
0x12c0   :  { %v3807_v56 = vpop.trf.xlu0 }
0x12c4   :  { %v3808_v39 = vpop.trf.xlu0 }
0x12c5   :  { %v7619_v51 = vpack.c.bf16 %v3808_v39, %v3807_v56 }
0x12c8   :  { %v3809_v29 = vpop.trf.xlu0 }
0x12cc   :  { %v3810_v3 = vpop.trf.xlu0 }
0x12cd   :  { %v7615_v17 = vpack.c.bf16 %v3810_v3, %v3809_v29 }
0x12cf   :  { %5445 = vmatpush3.bf16.msra.mxu1 %v7615_v17 }
0x12d0   :  { %5446 = vmatprep.subr.bf16.mxu1 %v8036_v12 }
0x12d3   :  { %5447 = vmatpush3.bf16.msra.mxu1 %v7619_v51 }
0x12d4   :  { %5458 = vmatprep.subr.bf16.mxu1 %v8036_v12 }
0x12d6   :  { %5449 = vmatmul.mubr.msk.bf16.vlgmr.msra.gmra.mxu1 %vm1099_vm4, %v4032_v9 }
0x12d7   :  { %5459 = vmatpush3.bf16.msra.mxu1 %v7553_v40  ;;  %5462 = vmatprep.mubr.msk.bf16.mxu1 %vm5788_vm2, %v8036_v12 }
0x12d8   :  { %5460 = vmatprep.subr.bf16.mxu1 %v8036_v12 }
0x12db   :  { %5461 = vmatpush3.bf16.msra.mxu1 %v7562_v57 }
0x12dc   :  { %5474 = vmatprep.subr.bf16.mxu1 %v8036_v12 }
0x1396   :  { %v4070_v33 = vpop.f32.mrf.mxu1 }
0x1397   :  { %v4076_v8 = vsel %vm3781_vm5, %v4070_v33, -1.7014117e+38 }
0x1398   :  { %v5450_v22 = vpop.f32.mrf.mxu1  ;;  %v4078_v46 = vsel %vm4077_vm6, %v4076_v8, -inf }
0x1399   :  { %4079 = vmax.xlane.f32.xlu1 %v4078_v46 }
0x139a   :  { %v4073_v50 = vpop.f32.mrf.mxu1 }
0x139c   :  { %v5451_v26 = vpop.f32.mrf.mxu1 }
0x13aa   :  { %4093 = vrot.lane.b32.xlu1 %v3782_v43, %s5791_s17 }
0x1422   :  { %v4080_v52 = vpop.xlane.xlu1 %4079 }
0x1423   :  { %v4081_v42 = vsub.f32 %v4076_v8, %v4080_v52 }
0x1425   :  { %v4082_v0 = vmul.f32 1.442695, %v4081_v42 }
0x1426   :  { %v7640_v19 = vpop.permute.xlu1 %4093 }
0x1427   :  { %5665 = vpow2.f32 %v4082_v0  ;;  %5453 = vmatpush3.bf16.msra.mxu0 %v7640_v19 }
0x1428   :  { %5466 = vmatprep.subr.bf16.mxu0 %v8036_v12 }
0x1434   :  { %v5666_v35 = vpop.eup %5665 }
0x1435   :  { %v4084_v5 = vsel %vm3781_vm5, %v5666_v35, 0.0 }
0x1436   :  { %v4085_v44 = vsel %vm4077_vm6, %v4084_v5, 0.0 }
0x1437   :  { %4086 = vadd.xlane.f32.xlu0 %v4085_v44 }
0x14c0   :  { %v4087_v59 = vpop.xlane.xlu0 %4086 }
0x14c1   :  { %v4088_v11 = vmax.f32 %v4087_v59, 1e-30 }
0x14c3   :  { %5667 = vrcp.f32 %v4088_v11 }
0x14d0   :  { %v5668_v24 = vpop.eup %5667 }
0x14d1   :  { %v4090_v54 = vmul.f32 %v5668_v24, %v4084_v5 }
0x14d3   :  { %v4091_v58 = vpack.c.bf16 %v4090_v54, %v4090_v54 }
0x14d5   :  { %5455 = vmatmul.mubr.msk.bf16.vlgmr.msra.gmra.mxu0 %vm94_vm3, %v4091_v58 }
0x14d6   :  { %5467 = vmatpush3.bf16.msra.mxu0 %v7530_v37  ;;  %5470 = vmatprep.mubr.msk.bf16.mxu0 %vm5788_vm2, %v8036_v12 }
0x14d7   :  { %5468 = vmatprep.subr.bf16.mxu0 %v8036_v12 }
0x14da   :  { %5469 = vmatpush3.bf16.msra.mxu0 %v7537_v31 }
0x14db   :  { %5482 = vmatprep.subr.bf16.mxu0 %v8036_v12 }
0x14dd   :  { %5471 = vmatmul.mubr.msk.bf16.vlgmr.msra.gmra.mxu0 %vm1099_vm4, %v4032_v9 }
0x14de   :  { %5483 = vmatpush3.bf16.msra.mxu0 %v7615_v17  ;;  %5486 = vmatprep.mubr.msk.bf16.mxu0 %vm5788_vm2, %v8036_v12 }
0x14df   :  { %5484 = vmatprep.subr.bf16.mxu0 %v8036_v12 }
0x14e2   :  { %5485 = vmatpush3.bf16.msra.mxu0 %v7619_v51 }
0x14e3   :  { %5496 = vmatprep.subr.bf16.mxu0 %v8036_v12 }
0x1595   :  { %v4133_v25 = vpop.f32.mrf.mxu0 }
0x1596   :  { %v4139_v6 = vpack.c.bf16 %v4133_v25, %v4133_v25 }
0x1597   :  { %v5456_v28 = vpop.f32.mrf.mxu0 }
0x1598   :  { %5463 = vmatmul.mubr.msk.bf16.vlgmr.msra.gmra.mxu1 %vm1099_vm4, %v4139_v6 }
0x1599   :  { %5475 = vmatpush3.bf16.msra.mxu1 %v7572_v13  ;;  %v4136_v41 = vpop.f32.mrf.mxu0  ;;  %5478 = vmatprep.mubr.msk.bf16.mxu1 %vm5788_vm2, %v8036_v12 }
0x159a   :  { %5476 = vmatprep.subr.bf16.mxu1 %v8036_v12 }
0x159b   :  { %v5457_v47 = vpop.f32.mrf.mxu0 }
0x159d   :  { %5477 = vmatpush3.bf16.msra.mxu1 %v7580_v32  ;;  %v4217_v36 = vpop.f32.mrf.mxu0 }
0x159e   :  { %5490 = vmatprep.subr.bf16.mxu1 %v8036_v12 }
0x159f   :  { %v5472_v20 = vpop.f32.mrf.mxu0 }
0x15a0   :  { %5479 = vmatmul.mubr.msk.bf16.vlgmr.msra.gmra.mxu1 %vm1099_vm4, %v4032_v9 }
0x15a1   :  { %5491 = vmatpush3.bf16.msra.mxu1 %v7640_v19  ;;  %v4220_v49 = vpop.f32.mrf.mxu0  ;;  %5492 = vmatprep.mubr.msk.bf16.mxu1 %vm5788_vm2, %v8036_v12 }
0x15a2   :  { %5504 = vmatprep.subr.bf16.mxu1 %v8036_v12 }
0x15a3   :  { %v5473_v62 = vpop.f32.mrf.mxu0 }
0x1658   :  { %v4177_v48 = vpop.f32.mrf.mxu1 }
0x1659   :  { %v4218_v15 = vadd.f32 %v4217_v36, %v4177_v48 }
0x165a   :  { %v5464_v30 = vpop.f32.mrf.mxu1 }
0x165c   :  { %v4180_v55 = vpop.f32.mrf.mxu1 }
0x165e   :  { %v5465_v14 = vpop.f32.mrf.mxu1 }
0x1660   :  { %v4257_v21 = vpop.f32.mrf.mxu1 }
0x1661   :  { %v4263_v4 = vadd.f32 %v4257_v21, %v4218_v15 }
0x1662   :  { %v5480_v63 = vpop.f32.mrf.mxu1 }
0x1663   :  { %v4264_v38 = vadd.f32 %v7595_v16, %v4263_v4 }
0x1664   :  { %v4260_v45 = vpop.f32.mrf.mxu1 }
0x1665   :  { %5669 = vtanh.f32 %v4264_v38  ;;  %v4890_v18 = vmul.f32 -1.442695, %v4264_v38 }
0x1666   :  { %v5481_v23 = vpop.f32.mrf.mxu1 }
0x1667   :  { %5671 = vpow2.f32 %v4890_v18 }
0x1672   :  { %v5670_v61 = vpop.eup %5669 }
0x1673   :  { %4274 = vrot.lane.b32.xlu1 %v5670_v61, %s5792_s11 }
0x1674   :  { %v5672_v27 = vpop.eup %5671 }
0x1675   :  { %v4268_v43 = vadd.f32 1.0, %v5672_v27 }
0x1677   :  { %5673 = vrcp.f32 %v4268_v43 }
0x1684   :  { %v5674_v34 = vpop.eup %5673 }
0x1685   :  { %v4272_v2 = vmul.f32 %v5674_v34, %v7606_v7 }
0x16e5   :  { %v4275_v1 = vpop.permute.xlu1 %4274 }
0x16e6   :  { %v4277_v10 = vmul.f32 %v5674_v34, %v4275_v1 }
0x16e8   :  { %4279 = vrot.lane.b32.xlu1 %v4277_v10, %s5792_s11 }
0x175a   :  { %v4280_v60 = vpop.permute.xlu1 %4279 }
0x175b   :  { %v7677_v56 = vadd.f32 %v4280_v60, %v4272_v2 }
0x175d   :  { %5675 = vtanh.f32 %v7677_v56 }
0x176a   :  { %v5676_v39 = vpop.eup %5675 }
0x176b   :  { %4285 = vrot.lane.b32.xlu1 %v5676_v39, %s5792_s11 }
0x17dd   :  { %v4286_v29 = vpop.permute.xlu1 %4285 }
0x17de   :  { %v4288_v3 = vmul.f32 %v5674_v34, %v4286_v29 }
0x17e0   :  { %v4289_v9 = vpack.c.bf16 %v4288_v3, %v4288_v3 }
0x17e2   :  { %4291 = vrot.lane.b32.xlu1 %v4289_v9, %s5790_s18 }
0x1854   :  { %v4292_v33 = vpop.permute.xlu1 %4291 }
0x1855   :  { %5487 = vmatmul.mubr.msk.bf16.vlgmr.msra.gmra.mxu0 %vm1099_vm4, %v4292_v33 }
0x1856   :  { %5497 = vmatpush3.bf16.msra.mxu0 %v7553_v40  ;;  %5500 = vmatprep.mubr.msk.bf16.mxu0 %vm5788_vm2, %v8036_v12 }
0x1857   :  { %5498 = vmatprep.subr.bf16.mxu0 %v8036_v12 }
0x185a   :  { %5499 = vmatpush3.bf16.msra.mxu0 %v7562_v57 }
0x185b   :  { %5512 = vmatprep.subr.bf16.mxu0 %v8036_v12 }
0x1915   :  { %v4330_v7 = vpop.f32.mrf.mxu0 }
0x1916   :  { %v4336_v8 = vsel %vm3781_vm5, %v4330_v7, -1.7014117e+38 }
0x1917   :  { %v5488_v22 = vpop.f32.mrf.mxu0  ;;  %v4337_v46 = vsel %vm4077_vm6, %v4336_v8, -inf }
0x1918   :  { %4338 = vmax.xlane.f32.xlu1 %v4337_v46 }
0x1919   :  { %v4333_v50 = vpop.f32.mrf.mxu0 }
0x191b   :  { %v5489_v26 = vpop.f32.mrf.mxu0 }
0x19a1   :  { %v4339_v40 = vpop.xlane.xlu1 %4338 }
0x19a2   :  { %v4340_v52 = vsub.f32 %v4336_v8, %v4339_v40 }
0x19a4   :  { %v4341_v42 = vmul.f32 1.442695, %v4340_v52 }
0x19a6   :  { %5677 = vpow2.f32 %v4341_v42 }
0x19b3   :  { %v5678_v0 = vpop.eup %5677 }
0x19b4   :  { %v4343_v57 = vsel %vm3781_vm5, %v5678_v0, 0.0 }
0x19b5   :  { %v4344_v35 = vsel %vm4077_vm6, %v4343_v57, 0.0 }
0x19b6   :  { %4345 = vadd.xlane.f32.xlu0 %v4344_v35 }
0x1a3f   :  { %v4346_v5 = vpop.xlane.xlu0 %4345 }
0x1a40   :  { %v4347_v44 = vmax.f32 %v4346_v5, 1e-30 }
0x1a42   :  { %5679 = vrcp.f32 %v4347_v44 }
0x1a4f   :  { %v5680_v59 = vpop.eup %5679 }
0x1a50   :  { %v4349_v11 = vmul.f32 %v5680_v59, %v4343_v57 }
0x1a52   :  { %v4350_v24 = vpack.c.bf16 %v4349_v11, %v4349_v11 }
0x1a54   :  { %5493 = vmatmul.mubr.msk.bf16.vlgmr.msra.gmra.mxu1 %vm94_vm3, %v4350_v24 }
0x1a55   :  { %5505 = vmatpush3.bf16.msra.mxu1 %v7530_v37  ;;  %5508 = vmatprep.mubr.msk.bf16.mxu1 %vm5788_vm2, %v8036_v12 }
0x1a56   :  { %5506 = vmatprep.subr.bf16.mxu1 %v8036_v12 }
0x1a59   :  { %5507 = vmatpush3.bf16.msra.mxu1 %v7537_v31 }
0x1a5a   :  { %5520 = vmatprep.subr.bf16.mxu1 %v8036_v12 }
0x1a5c   :  { %5509 = vmatmul.mubr.msk.bf16.vlgmr.msra.gmra.mxu1 %vm1099_vm4, %v4292_v33 }
0x1a5d   :  { %5521 = vmatpush3.bf16.msra.mxu1 %v7615_v17  ;;  %5524 = vmatprep.mubr.msk.bf16.mxu1 %vm5788_vm2, %v8036_v12 }
0x1a5e   :  { %5522 = vmatprep.subr.bf16.mxu1 %v8036_v12 }
0x1a61   :  { %5523 = vmatpush3.bf16.msra.mxu1 %v7619_v51 }
0x1b14   :  { %v4388_v37 = vpop.f32.mrf.mxu1 }
0x1b15   :  { %v4394_v54 = vpack.c.bf16 %v4388_v37, %v4388_v37 }
0x1b16   :  { %v5494_v58 = vpop.f32.mrf.mxu1 }
0x1b17   :  { %5501 = vmatmul.mubr.msk.bf16.vlgmr.msra.gmra.mxu0 %vm1099_vm4, %v4394_v54 }
0x1b18   :  { %5513 = vmatpush3.bf16.msra.mxu0 %v7572_v13  ;;  %v4391_v31 = vpop.f32.mrf.mxu1  ;;  %5516 = vmatprep.mubr.msk.bf16.mxu0 %vm5788_vm2, %v8036_v12 }
0x1b19   :  { %5514 = vmatprep.subr.bf16.mxu0 %v8036_v12 }
0x1b1a   :  { %v5495_v17 = vpop.f32.mrf.mxu1 }
0x1b1c   :  { %5515 = vmatpush3.bf16.msra.mxu0 %v7580_v32  ;;  %v4472_v25 = vpop.f32.mrf.mxu1 }
0x1b1d   :  { %5528 = vmatprep.subr.bf16.mxu0 %v8036_v12 }
0x1b1e   :  { %v5510_v51 = vpop.f32.mrf.mxu1 }
0x1b1f   :  { %5517 = vmatmul.mubr.msk.bf16.vlgmr.msra.gmra.mxu0 %vm1099_vm4, %v4292_v33 }
0x1b20   :  { %5529 = vmatpush3.bf16.msra.mxu0 %v7640_v19  ;;  %v4475_v6 = vpop.f32.mrf.mxu1  ;;  %5530 = vmatprep.mubr.msk.bf16.mxu0 %vm5788_vm2, %v8036_v12 }
0x1b22   :  { %v5511_v13 = vpop.f32.mrf.mxu1 }
0x1bd7   :  { %v4432_v28 = vpop.f32.mrf.mxu0 }
0x1bd8   :  { %v4473_v20 = vadd.f32 %v4472_v25, %v4432_v28 }
0x1bd9   :  { %v5502_v41 = vpop.f32.mrf.mxu0 }
0x1bdb   :  { %v4435_v47 = vpop.f32.mrf.mxu0 }
0x1bdd   :  { %v5503_v36 = vpop.f32.mrf.mxu0 }
0x1bdf   :  { %v4512_v49 = vpop.f32.mrf.mxu0 }
0x1be0   :  { %v4518_v32 = vadd.f32 %v4512_v49, %v4473_v20 }
0x1be1   :  { %v5518_v62 = vpop.f32.mrf.mxu0 }
0x1be2   :  { %v4519_v48 = vadd.f32 %v7595_v16, %v4518_v32 }
0x1be3   :  { %v4515_v30 = vpop.f32.mrf.mxu0 }
0x1be4   :  { %5681 = vtanh.f32 %v4519_v48  ;;  %v4896_v19 = vmul.f32 -1.442695, %v4519_v48 }
0x1be5   :  { %v5519_v55 = vpop.f32.mrf.mxu0 }
0x1be6   :  { %5683 = vpow2.f32 %v4896_v19 }
0x1bf1   :  { %v5682_v14 = vpop.eup %5681 }
0x1bf2   :  { %4529 = vrot.lane.b32.xlu0 %v5682_v14, %s5792_s11 }
0x1bf3   :  { %v5684_v12 = vpop.eup %5683 }
0x1bf4   :  { %v4523_v15 = vadd.f32 1.0, %v5684_v12 }
0x1bf6   :  { %5685 = vrcp.f32 %v4523_v15 }
0x1c03   :  { %v5686_v21 = vpop.eup %5685 }
0x1c04   :  { %v4527_v38 = vmul.f32 %v5686_v21, %v7677_v56 }
0x1c64   :  { %v4530_v4 = vpop.permute.xlu0 %4529 }
0x1c65   :  { %v4532_v63 = vmul.f32 %v5686_v21, %v4530_v4 }
0x1c67   :  { %4534 = vrot.lane.b32.xlu1 %v4532_v63, %s5792_s11 }
0x1cd9   :  { %v4535_v45 = vpop.permute.xlu1 %4534 }
0x1cda   :  { %v4537_v16 = vadd.f32 %v4535_v45, %v4527_v38 }
0x1cdc   :  { %5687 = vtanh.f32 %v4537_v16 }
0x1ce9   :  { %v5688_v23 = vpop.eup %5687 }
0x1cea   :  { %4540 = vrot.lane.b32.xlu0 %v5688_v23, %s5792_s11 }
0x1d5c   :  { %v4541_v61 = vpop.permute.xlu0 %4540 }
0x1d5d   :  { %v4543_v18 = vmul.f32 %v5686_v21, %v4541_v61 }
0x1d5f   :  { %v4544_v27 = vpack.c.bf16 %v4543_v18, %v4543_v18 }
0x1d61   :  { %4546 = vrot.lane.b32.xlu0 %v4544_v27, %s5790_s18 }
0x1dd3   :  { %v4547_v43 = vpop.permute.xlu0 %4546 }
0x1dd4   :  { %5525 = vmatmul.mubr.msk.bf16.vlgmr.msra.gmra.mxu1 %vm1099_vm4, %v4547_v43 }
0x1e94   :  { %v4585_v34 = vpop.f32.mrf.mxu1 }
0x1e95   :  { %v4591_v1 = vsel %vm3781_vm5, %v4585_v34, -1.7014117e+38 }
0x1e96   :  { %v5526_v10 = vpop.f32.mrf.mxu1  ;;  %v4592_v2 = vsel %vm4077_vm6, %v4591_v1, -inf }
0x1e97   :  { %4593 = vmax.xlane.f32.xlu0 %v4592_v2 }
0x1e98   :  { %v4588_v60 = vpop.f32.mrf.mxu1 }
0x1e9a   :  { %v5527_v56 = vpop.f32.mrf.mxu1 }
0x1ead   :  { %4650 = vrot.lane.b32.xlu0 %v4543_v18, %s5790_s18  ;;  %s5793_s18 = smov [#allocation3]  }
0x1eae   :  { %s4666_s17 = sshll.u32 %s5793_s18, 4  ;;  %s4667_s17 = int_to_ptr.vmem [resolvable:$true] %s4666_s17 }
0x1eaf   :  { %s5765_s7 = scalar_lea.vmem %s4667_s17, 32  ;;  %p5770_p1 = scmp.lt.s32.totalorder %s4667_s17, %s4667_s17 }
0x1eb0   :  { %p5766_p0 = scmp.ne.s32.totalorder %s4667_s17, %s5765_s7  ;;  %p5771_p2 = scmp.lt.s32.totalorder %s5765_s7, %s5765_s7 }
0x1eb2   :  { %p5772_p3 = por %p5771_p2, %p5770_p1 }
0x1eb4   :  { %p5773_p4 = pnand %p5772_p3, %p5766_p0 }
0x1f20   :  { %v4594_v39 = vpop.xlane.xlu0 %4593 }
0x1f21   :  { %v4595_v29 = vsub.f32 %v4591_v1, %v4594_v39 }
0x1f23   :  { %v4596_v3 = vmul.f32 1.442695, %v4595_v29 }
0x1f24   :  { %v4651_v53 = vpop.permute.xlu0 %4650 }
0x1f25   :  { %5689 = vpow2.f32 %v4596_v3 }
0x1f32   :  { %v5690_v9 = vpop.eup %5689 }
0x1f33   :  { %v4598_v33 = vsel %vm3781_vm5, %v5690_v9, 0.0 }
0x1f34   :  { %v4599_v7 = vsel %vm4077_vm6, %v4598_v33, 0.0 }
0x1f35   :  { %4600 = vadd.xlane.f32.xlu1 %v4599_v7 }
0x1fbe   :  { %v4601_v8 = vpop.xlane.xlu1 %4600 }
0x1fbf   :  { %v4602_v22 = vmax.f32 %v4601_v8, 1e-30 }
0x1fc1   :  { %5691 = vrcp.f32 %v4602_v22 }
0x1fce   :  { %v5692_v46 = vpop.eup %5691 }
0x1fcf   :  { %v4604_v50 = vmul.f32 %v5692_v46, %v4598_v33 }
0x1fd1   :  { %v4605_v26 = vpack.c.bf16 %v4604_v50, %v4604_v50 }
0x1fd3   :  { %5531 = vmatmul.mubr.msk.bf16.vlgmr.msra.gmra.mxu0 %vm94_vm3, %v4605_v26 }
0x2093   :  { %v4643_v40 = vpop.f32.mrf.mxu0 }
0x2094   :  { %4654 = vrot.lane.b32.xlu1 %v4643_v40, %s5792_s11 }
0x2095   :  { %v5532_v52 = vpop.f32.mrf.mxu0 }
0x2097   :  { %v4646_v42 = vpop.f32.mrf.mxu0 }
0x2099   :  { %v5533_v0 = vpop.f32.mrf.mxu0 }
0x2106   :  { %v4655_v57 = vpop.permute.xlu1 %4654 }
0x2107   :  { %v4657_v35 = vsel %vm1099_vm4, %v4651_v53, %v4655_v57 }
0x2108   :  { %4659 = vst.msk [vmem:[#allocation3] sm:$0x3] %vm4658_vm7, %v4657_v35 }
0x2109   :  { %5776 = shalt.err (!%p5773_p4)
}
0x210a   :  { %4669 = dma.vmem_to_hbm [thread:$0]  %s4667_s17, 32, %s7762_s23, [#allocation4]  }
0x210b   :  { %5785 = dma.done.wait [#allocation4], 32  }
0x210c   :  { %5786 = vsyncadd [#allocation4], 4294967264 }
0x210d   :  { %4673 = vsyncpa [#allocation4], 1 }

</bundles_post_ra>
